<compile_context>
chip_gen: v7x
topology: tpu7x:2x2x1
jax: 0.10.0
libtpu: 0.0.40
codegen_flags: <defaults>
</compile_context>

<pallas_src>
import jax
import jax.numpy as jnp
from jax.experimental import pallas as pl
from jax.experimental.pallas import tpu as pltpu

HIDDEN = 300       # as in the PyTorch module
HIDDEN_PAD = 384   # 3 * 128 lanes


def _round_up(x, m):
    return (x + m - 1) // m * m


# --------------------------------------------------------------------------- #
# Kernel bodies
# --------------------------------------------------------------------------- #
def _hidden_branches(x_ref, wcat_ref, bcat_ref, hp):
    """Fused branch Linears: sigmoid([x1|x2] @ Wcat + bcat) -> (h1, h2)."""
    mm = wcat_ref.dtype  # matmul operand dtype; accumulation is always f32
    h = jax.nn.sigmoid(
        jnp.dot(x_ref[...].astype(mm), wcat_ref[...],
                preferred_element_type=jnp.float32) + bcat_ref[...])  # (Bt, 2*HP)
    return h[:, :hp], h[:, hp:]                                       # lane-aligned


def _make_reduce_kernel(hp, n_cls):
    """Small-C epilogue: per-class VPU multiply + XLU row reduce (no MXU)."""
    def kernel(x_ref, wcat_ref, bcat_ref, wbf_ref, bb_ref, out_ref):
        h1, h2 = _hidden_branches(x_ref, wcat_ref, bcat_ref, hp)
        mm = wbf_ref.dtype
        # p[b, c*HP + j] = sum_i h1[b, i] * Wb[c, i, j]   (one MXU matmul)
        p = jnp.dot(h1.astype(mm), wbf_ref[...],
                    preferred_element_type=jnp.float32)               # (Bt, C*HP)
        cols = [jnp.sum(p[:, c * hp:(c + 1) * hp] * h2, axis=-1, keepdims=True)
                for c in range(n_cls)]                                # C x (Bt, 1)
        cp = out_ref.shape[1]
        if cp > n_cls:
            cols.append(jnp.zeros((p.shape[0], cp - n_cls), jnp.float32))
        out_ref[...] = (jnp.concatenate(cols, axis=1) + bb_ref[...]
                        ).astype(out_ref.dtype)
    return kernel


def _make_matmul_kernel(hp):
    """Larger-C epilogue: replicate h2 + segment-sum selector matmul, both in
    the matmul dtype (bf16 recommended on v6e/v7x; keep f32 on v5e)."""
    def kernel(x_ref, wcat_ref, bcat_ref, wbf_ref, sel_ref, bb_ref, out_ref):
        h1, h2 = _hidden_branches(x_ref, wcat_ref, bcat_ref, hp)
        mm = wbf_ref.dtype
        p = jnp.dot(h1.astype(mm), wbf_ref[...],
                    preferred_element_type=jnp.float32)               # (Bt, C*HP)
        n_cls = wbf_ref.shape[1] // hp                                 # static
        sd = sel_ref.dtype
        q = p.astype(sd) * jnp.concatenate([h2.astype(sd)] * n_cls, axis=1)
        out = jnp.dot(q, sel_ref[...],
                      preferred_element_type=jnp.float32) + bb_ref[...]
        out_ref[...] = out.astype(out_ref.dtype)
    return kernel


# --------------------------------------------------------------------------- #
# One-time parameter packing (hoisted out of the per-call path)
# --------------------------------------------------------------------------- #
def pack_params(params, matmul_dtype=jnp.bfloat16):
    """Pad / transpose / flatten PyTorch-layout params into kernel layout.

    matmul_dtype: dtype of MXU matmul operands (bf16 recommended on
    v5e/v6e/v7x; jnp.float32 for near-exactness). Accumulation is always f32.
    """
    H, HP = HIDDEN, HIDDEN_PAD
    C = params["wb"].shape[0]
    CP = max(128, _round_up(C, 128))          # lane-dense output width
    E1 = params["w1"].shape[1]
    E2 = params["w2"].shape[1]

    # Block-diagonal fused branch weight: [x1|x2] @ w_cat -> [h1|h2] pre-bias.
    w_cat = jnp.zeros((E1 + E2, 2 * HP), jnp.float32)
    w_cat = w_cat.at[:E1, :H].set(params["w1"].T)
    w_cat = w_cat.at[E1:, HP:HP + H].set(params["w2"].T)
    b_cat = jnp.zeros((1, 2 * HP), jnp.float32)
    b_cat = b_cat.at[:, :H].set(params["b1"][None, :])
    b_cat = b_cat.at[:, HP:HP + H].set(params["b2"][None, :])

    # wb_flat[i, c*HP + j] = Wb[c, i, j]; padded rows/cols are zero so the
    # sigmoid(0)=0.5 values in padded hidden lanes of h1/h2 contribute nothing.
    wbp = jnp.zeros((C, HP, HP), jnp.float32).at[:, :H, :H].set(params["wb"])
    wb_flat = jnp.transpose(wbp, (1, 0, 2)).reshape(HP, C * HP)

    # Segment-sum selector (only used on the matmul-epilogue path).
    # sel[k, c] = 1 iff k // HP == c; 0/1 are exact in bf16.
    k_cls = (jnp.arange(C * HP) // HP)[:, None]                    # (C*HP, 1)
    c_ids = jnp.arange(CP)[None, :]                                # (1, CP)
    sel = (k_cls == c_ids).astype(matmul_dtype)                    # (C*HP, CP)

    bb = jnp.zeros((1, CP), jnp.float32).at[:, :C].set(params["bb"][None, :])

    return {
        "w_cat": w_cat.astype(matmul_dtype),
        "b_cat": b_cat,
        "wb_flat": wb_flat.astype(matmul_dtype),
        "sel": sel,
        "bb": bb,
        "num_classes": int(C),
    }


# --------------------------------------------------------------------------- #
# Wrapper
# --------------------------------------------------------------------------- #
def bilinear_link_predictor(x1, x2, packed, *, batch_tile=512, epilogue="auto",
                            single_buffer_weights=True):
    """Forward pass.

    batch_tile: upper bound on the batch tile; 512 amortizes per-step pipeline
      overhead on v5e/v6e. The actual tile is clamped so the batch grid has
      >= 2 steps whenever possible (v7x: both TensorCores get work).
    epilogue: "auto" (reduce for C<=16, else matmul), "reduce", or "matmul".
    """
    B, E1 = x1.shape
    B2, E2 = x2.shape
    assert B == B2
    HP = HIDDEN_PAD
    C = packed["num_classes"]
    CP = packed["bb"].shape[1]
    CHP = packed["wb_flat"].shape[1]
    E = packed["w_cat"].shape[0]
    assert E == E1 + E2

    if epilogue == "auto":
        epilogue = "reduce" if C <= 16 else "matmul"

    # Batch tile: multiple of 8 sublanes; >= 2 grid steps when B allows it.
    Bt = min(batch_tile, _round_up(pl.cdiv(B, 2), 8))
    Bt = max(8, _round_up(Bt, 8))
    Bp = _round_up(B, Bt)

    x = jnp.concatenate([x1, x2], axis=1)                # single streamed input
    if Bp != B:
        x = jnp.pad(x, ((0, Bp - B), (0, 0)))

    grid = (Bp // Bt,)
    zero2 = lambda i: (0, 0)

    def res_spec(shape):
        # Resident weights never change across the batch grid -> single buffer.
        if single_buffer_weights:
            return pl.BlockSpec(shape, zero2, pipeline_mode=pl.Buffered(1))
        return pl.BlockSpec(shape, zero2)

    in_specs = [
        pl.BlockSpec((Bt, E), lambda i: (i, 0)),         # [x1|x2] tile (streamed)
        res_spec((E, 2 * HP)),                           # fused branch weights
        res_spec((1, 2 * HP)),                           # fused branch biases
        res_spec((HP, CHP)),                             # wb_flat (resident)
    ]
    args = [x, packed["w_cat"], packed["b_cat"], packed["wb_flat"]]
    if epilogue == "matmul":
        in_specs.append(res_spec((CHP, CP)))             # selector (resident)
        args.append(packed["sel"])
        kernel = _make_matmul_kernel(HP)
    else:
        kernel = _make_reduce_kernel(HP, C)
    in_specs.append(res_spec((1, CP)))                   # bb
    args.append(packed["bb"])

    # Explicit scoped-VMEM sizing: resident weights (1x or 2x buffered) +
    # double-buffered x/out tiles + p/q temporaries, ~30% headroom, >= 32 MiB.
    itemsize = jnp.dtype(packed["wb_flat"].dtype).itemsize
    weight_bytes = ((packed["w_cat"].size + packed["wb_flat"].size) * itemsize
                    + (packed["b_cat"].size + packed["bb"].size) * 4
                    + (packed["sel"].size * itemsize if epilogue == "matmul" else 0))
    if not single_buffer_weights:
        weight_bytes *= 2
    stream_bytes = 2 * (Bt * E * x.dtype.itemsize + Bt * CP * 4)
    temp_bytes = 2 * Bt * CHP * 4                        # p and q (f32 worst case)
    vmem_limit = min(64 * 2**20,
                     max(int(1.3 * (weight_bytes + stream_bytes + temp_bytes)),
                         32 * 2**20))
    # Note: for large C, add a class grid axis (tile wb_flat/sel/bb/out over
    # classes, axis marked "parallel") instead of growing the resident slab.

    out = pl.pallas_call(
        kernel,
        out_shape=jax.ShapeDtypeStruct((Bp, CP), jnp.float32),
        grid=grid,
        in_specs=in_specs,
        out_specs=pl.BlockSpec((Bt, CP), lambda i: (i, 0)),
        compiler_params=pltpu.CompilerParams(
            dimension_semantics=("parallel",),           # v7x: split over 2 TCs
            vmem_limit_bytes=vmem_limit),
    )(*args)

    return out[:B, :C]


# --------------------------------------------------------------------------- #
# Synthetic init + pure-JAX reference
# --------------------------------------------------------------------------- #
def init_params(key, e1, e2, target_classes=2):
    """PyTorch-style uniform(-1/sqrt(fan_in), 1/sqrt(fan_in)) init."""
    k = jax.random.split(key, 6)
    s1 = 1.0 / jnp.sqrt(e1)
    s2 = 1.0 / jnp.sqrt(e2)
    sb = 1.0 / jnp.sqrt(HIDDEN)
    return {
        "w1": jax.random.uniform(k[0], (HIDDEN, e1), jnp.float32, -s1, s1),
        "b1": jax.random.uniform(k[1], (HIDDEN,), jnp.float32, -s1, s1),
        "w2": jax.random.uniform(k[2], (HIDDEN, e2), jnp.float32, -s2, s2),
        "b2": jax.random.uniform(k[3], (HIDDEN,), jnp.float32, -s2, s2),
        "wb": jax.random.uniform(k[4], (target_classes, HIDDEN, HIDDEN),
                                 jnp.float32, -sb, sb),
        "bb": jax.random.uniform(k[5], (target_classes,), jnp.float32, -sb, sb),
    }


def reference(x1, x2, p):
    hi = jax.lax.Precision.HIGHEST
    h1 = jax.nn.sigmoid(jnp.dot(x1, p["w1"].T, precision=hi) + p["b1"])
    h2 = jax.nn.sigmoid(jnp.dot(x2, p["w2"].T, precision=hi) + p["b2"])
    return jnp.einsum("bi,cij,bj->bc", h1, p["wb"], h2, precision=hi) + p["bb"]


# --------------------------------------------------------------------------- #
if __name__ == "__main__":
    B, E1, E2, C = 13, 32, 48, 2           # odd batch exercises padding + grid
    key = jax.random.PRNGKey(0)
    kx1, kx2, kp = jax.random.split(key, 3)

    x1 = jax.random.normal(kx1, (B, E1), jnp.float32)
    x2 = jax.random.normal(kx2, (B, E2), jnp.float32)
    params = init_params(kp, E1, E2, C)
    ref = reference(x1, x2, params)

    def run(packed, **kw):
        try:
            return jax.block_until_ready(
                bilinear_link_predictor(x1, x2, packed, **kw))
        except Exception:
            # Fallback if this JAX build rejects pipeline_mode=pl.Buffered(1)
            # on resident-weight BlockSpecs (perf-only feature).
            return jax.block_until_ready(
                bilinear_link_predictor(x1, x2, packed,
                                        single_buffer_weights=False, **kw))

    # f32 matmul operands, reduce epilogue (C<=16), 2-step pipelined grid.
    packed_f32 = pack_params(params, matmul_dtype=jnp.float32)
    out_reduce = run(packed_f32, batch_tile=8)
    assert out_reduce.shape == (B, C), out_reduce.shape
    assert jnp.allclose(out_reduce, ref, atol=1e-3, rtol=1e-3), (out_reduce, ref)

    # f32, forced selector-matmul epilogue (the large-C path) for coverage.
    out_matmul = run(packed_f32, batch_tile=8, epilogue="matmul")
    assert out_matmul.shape == (B, C), out_matmul.shape
    assert jnp.allclose(out_matmul, ref, atol=1e-3, rtol=1e-3), (out_matmul, ref)

    # bf16 matmul-operand path (MXU peak on v5e/v6e/v7x); f32 accumulation.
    packed_bf16 = pack_params(params, matmul_dtype=jnp.bfloat16)
    out_bf16 = run(packed_bf16)
    assert out_bf16.shape == (B, C), out_bf16.shape
    assert jnp.allclose(out_bf16, ref, atol=1e-1, rtol=5e-2), (out_bf16, ref)

    print("KERNEL_OK")
</pallas_src>

<mosaic_0001>
module attributes {stable_mosaic.version = 11 : i64} {
  func.func @kernel(%arg0: i32, %arg1: memref<8x80xf32, #tpu.memory_space<vmem>>, %arg2: memref<80x768xf32, #tpu.memory_space<vmem>>, %arg3: memref<1x768xf32, #tpu.memory_space<vmem>>, %arg4: memref<384x768xf32, #tpu.memory_space<vmem>>, %arg5: memref<1x128xf32, #tpu.memory_space<vmem>>, %arg6: memref<8x128xf32, #tpu.memory_space<vmem>>) attributes {dimension_semantics = [#tpu.dimension_semantics<parallel>], iteration_bounds = array<i64: 2>, scalar_prefetch = 0 : i64, scratch_operands = 0 : i64, tpu.core_type = #tpu.core_type<tc>, window_params = [{transform_indices = @transform_0, window_bounds = array<i64: 8, 80>}, {pipeline_mode = #tpu.pipeline_mode<synchronous>, transform_indices = @transform_1, window_bounds = array<i64: 80, 768>}, {pipeline_mode = #tpu.pipeline_mode<synchronous>, transform_indices = @transform_2, window_bounds = array<i64: 1, 768>}, {pipeline_mode = #tpu.pipeline_mode<synchronous>, transform_indices = @transform_3, window_bounds = array<i64: 384, 768>}, {pipeline_mode = #tpu.pipeline_mode<synchronous>, transform_indices = @transform_4, window_bounds = array<i64: 1, 128>}, {transform_indices = @transform_5, window_bounds = array<i64: 8, 128>}]} {
    %c0 = arith.constant 0 : index
    %c0_0 = arith.constant 0 : index
    %0 = vector.load %arg1[%c0, %c0_0] : memref<8x80xf32, #tpu.memory_space<vmem>>, vector<8x80xf32>
    %c0_1 = arith.constant 0 : index
    %c0_2 = arith.constant 0 : index
    %1 = vector.load %arg2[%c0_1, %c0_2] : memref<80x768xf32, #tpu.memory_space<vmem>>, vector<80x768xf32>
    %cst = arith.constant dense<0.000000e+00> : vector<8x768xf32>
    %2 = tpu.matmul %0, %1, %cst {dimension_numbers = #tpu.dot_dimension_numbers<[1], [0], [0], [1], [0, 0, 1, 1], [], []>} : vector<8x80xf32>, vector<80x768xf32>, vector<8x768xf32> -> vector<8x768xf32>
    %c0_3 = arith.constant 0 : index
    %c0_4 = arith.constant 0 : index
    %3 = vector.load %arg3[%c0_3, %c0_4] : memref<1x768xf32, #tpu.memory_space<vmem>>, vector<1x768xf32>
    %4 = vector.broadcast %3 : vector<1x768xf32> to vector<8x768xf32>
    %5 = arith.addf %2, %4 : vector<8x768xf32>
    %6 = arith.negf %5 : vector<8x768xf32>
    %7 = math.exp %6 : vector<8x768xf32>
    %cst_5 = arith.constant 1.000000e+00 : f32
    %8 = vector.broadcast %cst_5 : f32 to vector<8x768xf32>
    %9 = arith.addf %8, %7 : vector<8x768xf32>
    %10 = arith.divf %8, %9 : vector<8x768xf32>
    %11 = vector.extract_strided_slice %10 {offsets = [0, 0], sizes = [8, 384], strides = [1, 1]} : vector<8x768xf32> to vector<8x384xf32>
    %12 = vector.extract_strided_slice %10 {offsets = [0, 384], sizes = [8, 384], strides = [1, 1]} : vector<8x768xf32> to vector<8x384xf32>
    %c0_6 = arith.constant 0 : index
    %c0_7 = arith.constant 0 : index
    %13 = vector.load %arg4[%c0_6, %c0_7] : memref<384x768xf32, #tpu.memory_space<vmem>>, vector<384x768xf32>
    %cst_8 = arith.constant dense<0.000000e+00> : vector<8x768xf32>
    %14 = tpu.matmul %11, %13, %cst_8 {dimension_numbers = #tpu.dot_dimension_numbers<[1], [0], [0], [1], [0, 0, 1, 1], [], []>} : vector<8x384xf32>, vector<384x768xf32>, vector<8x768xf32> -> vector<8x768xf32>
    %15 = vector.extract_strided_slice %14 {offsets = [0, 0], sizes = [8, 384], strides = [1, 1]} : vector<8x768xf32> to vector<8x384xf32>
    %16 = arith.mulf %15, %12 : vector<8x384xf32>
    %cst_9 = arith.constant dense<0.000000e+00> : vector<8xf32>
    %17 = vector.multi_reduction <add>, %16, %cst_9 [1] : vector<8x384xf32> to vector<8xf32>
    %18 = vector.shape_cast %17 : vector<8xf32> to vector<8x1xf32>
    %19 = vector.extract_strided_slice %14 {offsets = [0, 384], sizes = [8, 384], strides = [1, 1]} : vector<8x768xf32> to vector<8x384xf32>
    %20 = arith.mulf %19, %12 : vector<8x384xf32>
    %cst_10 = arith.constant dense<0.000000e+00> : vector<8xf32>
    %21 = vector.multi_reduction <add>, %20, %cst_10 [1] : vector<8x384xf32> to vector<8xf32>
    %22 = vector.shape_cast %21 : vector<8xf32> to vector<8x1xf32>
    %cst_11 = arith.constant 0.000000e+00 : f32
    %23 = vector.broadcast %cst_11 : f32 to vector<8x126xf32>
    %24 = tpu.concatenate %18, %22, %23 in 1 : vector<8x1xf32>, vector<8x1xf32>, vector<8x126xf32> -> vector<8x128xf32>
    %c0_12 = arith.constant 0 : index
    %c0_13 = arith.constant 0 : index
    %25 = vector.load %arg5[%c0_12, %c0_13] : memref<1x128xf32, #tpu.memory_space<vmem>>, vector<1x128xf32>
    %26 = vector.broadcast %25 : vector<1x128xf32> to vector<8x128xf32>
    %27 = arith.addf %24, %26 : vector<8x128xf32>
    %c0_14 = arith.constant 0 : index
    %c0_15 = arith.constant 0 : index
    %28 = vector.load %arg6[%c0_14, %c0_15] : memref<8x128xf32, #tpu.memory_space<vmem>>, vector<8x128xf32>
    tpu.vector_store %arg6[%c0_14, %c0_15], %27 {strides = array<i32>} : memref<8x128xf32, #tpu.memory_space<vmem>>, vector<8x128xf32>,
    return
  }
  func.func @transform_0(%arg0: i32) -> (i32, i32) {
    %c0_i32 = arith.constant 0 : i32
    %c0_i32_0 = arith.constant 0 : i32
    return %arg0, %c0_i32 : i32, i32
  }
  func.func @transform_1(%arg0: i32) -> (i32, i32) {
    %c0_i32 = arith.constant 0 : i32
    %c0_i32_0 = arith.constant 0 : i32
    %c0_i32_1 = arith.constant 0 : i32
    return %c0_i32, %c0_i32_0 : i32, i32
  }
  func.func @transform_2(%arg0: i32) -> (i32, i32) {
    %c0_i32 = arith.constant 0 : i32
    %c0_i32_0 = arith.constant 0 : i32
    %c0_i32_1 = arith.constant 0 : i32
    return %c0_i32, %c0_i32_0 : i32, i32
  }
  func.func @transform_3(%arg0: i32) -> (i32, i32) {
    %c0_i32 = arith.constant 0 : i32
    %c0_i32_0 = arith.constant 0 : i32
    %c0_i32_1 = arith.constant 0 : i32
    return %c0_i32, %c0_i32_0 : i32, i32
  }
  func.func @transform_4(%arg0: i32) -> (i32, i32) {
    %c0_i32 = arith.constant 0 : i32
    %c0_i32_0 = arith.constant 0 : i32
    %c0_i32_1 = arith.constant 0 : i32
    return %c0_i32, %c0_i32_0 : i32, i32
  }
  func.func @transform_5(%arg0: i32) -> (i32, i32) {
    %c0_i32 = arith.constant 0 : i32
    %c0_i32_0 = arith.constant 0 : i32
    return %arg0, %c0_i32 : i32, i32
  }
}

module attributes {stable_mosaic.version = 11 : i64} {
  func.func @kernel(%arg0: i32, %arg1: memref<8x80xf32, #tpu.memory_space<vmem>>, %arg2: memref<80x768xf32, #tpu.memory_space<vmem>>, %arg3: memref<1x768xf32, #tpu.memory_space<vmem>>, %arg4: memref<384x768xf32, #tpu.memory_space<vmem>>, %arg5: memref<1x128xf32, #tpu.memory_space<vmem>>, %arg6: memref<8x128xf32, #tpu.memory_space<vmem>>) attributes {dimension_semantics = [#tpu.dimension_semantics<parallel>], iteration_bounds = array<i64: 2>, scalar_prefetch = 0 : i64, scratch_operands = 0 : i64, tpu.core_type = #tpu.core_type<tc>, window_params = [{transform_indices = @transform_0, window_bounds = array<i64: 8, 80>}, {pipeline_mode = #tpu.pipeline_mode<synchronous>, transform_indices = @transform_1, window_bounds = array<i64: 80, 768>}, {pipeline_mode = #tpu.pipeline_mode<synchronous>, transform_indices = @transform_2, window_bounds = array<i64: 1, 768>}, {pipeline_mode = #tpu.pipeline_mode<synchronous>, transform_indices = @transform_3, window_bounds = array<i64: 384, 768>}, {pipeline_mode = #tpu.pipeline_mode<synchronous>, transform_indices = @transform_4, window_bounds = array<i64: 1, 128>}, {transform_indices = @transform_5, window_bounds = array<i64: 8, 128>}]} {
    %c0 = arith.constant 0 : index
    %c0_0 = arith.constant 0 : index
    %0 = vector.load %arg1[%c0, %c0_0] : memref<8x80xf32, #tpu.memory_space<vmem>>, vector<8x80xf32>
    %c0_1 = arith.constant 0 : index
    %c0_2 = arith.constant 0 : index
    %1 = vector.load %arg2[%c0_1, %c0_2] : memref<80x768xf32, #tpu.memory_space<vmem>>, vector<80x768xf32>
    %cst = arith.constant dense<0.000000e+00> : vector<8x768xf32>
    %2 = tpu.matmul %0, %1, %cst {dimension_numbers = #tpu.dot_dimension_numbers<[1], [0], [0], [1], [0, 0, 1, 1], [], []>} : vector<8x80xf32>, vector<80x768xf32>, vector<8x768xf32> -> vector<8x768xf32>
    %c0_3 = arith.constant 0 : index
    %c0_4 = arith.constant 0 : index
    %3 = vector.load %arg3[%c0_3, %c0_4] : memref<1x768xf32, #tpu.memory_space<vmem>>, vector<1x768xf32>
    %4 = vector.broadcast %3 : vector<1x768xf32> to vector<8x768xf32>
    %5 = arith.addf %2, %4 : vector<8x768xf32>
    %6 = arith.negf %5 : vector<8x768xf32>
    %7 = math.exp %6 : vector<8x768xf32>
    %cst_5 = arith.constant 1.000000e+00 : f32
    %8 = vector.broadcast %cst_5 : f32 to vector<8x768xf32>
    %9 = arith.addf %8, %7 : vector<8x768xf32>
    %10 = arith.divf %8, %9 : vector<8x768xf32>
    %11 = vector.extract_strided_slice %10 {offsets = [0, 0], sizes = [8, 384], strides = [1, 1]} : vector<8x768xf32> to vector<8x384xf32>
    %12 = vector.extract_strided_slice %10 {offsets = [0, 384], sizes = [8, 384], strides = [1, 1]} : vector<8x768xf32> to vector<8x384xf32>
    %c0_6 = arith.constant 0 : index
    %c0_7 = arith.constant 0 : index
    %13 = vector.load %arg4[%c0_6, %c0_7] : memref<384x768xf32, #tpu.memory_space<vmem>>, vector<384x768xf32>
    %cst_8 = arith.constant dense<0.000000e+00> : vector<8x768xf32>
    %14 = tpu.matmul %11, %13, %cst_8 {dimension_numbers = #tpu.dot_dimension_numbers<[1], [0], [0], [1], [0, 0, 1, 1], [], []>} : vector<8x384xf32>, vector<384x768xf32>, vector<8x768xf32> -> vector<8x768xf32>
    %15 = vector.extract_strided_slice %14 {offsets = [0, 0], sizes = [8, 384], strides = [1, 1]} : vector<8x768xf32> to vector<8x384xf32>
    %16 = arith.mulf %15, %12 : vector<8x384xf32>
    %cst_9 = arith.constant dense<0.000000e+00> : vector<8xf32>
    %17 = vector.multi_reduction <add>, %16, %cst_9 [1] : vector<8x384xf32> to vector<8xf32>
    %18 = vector.shape_cast %17 : vector<8xf32> to vector<8x1xf32>
    %19 = vector.extract_strided_slice %14 {offsets = [0, 384], sizes = [8, 384], strides = [1, 1]} : vector<8x768xf32> to vector<8x384xf32>
    %20 = arith.mulf %19, %12 : vector<8x384xf32>
    %cst_10 = arith.constant dense<0.000000e+00> : vector<8xf32>
    %21 = vector.multi_reduction <add>, %20, %cst_10 [1] : vector<8x384xf32> to vector<8xf32>
    %22 = vector.shape_cast %21 : vector<8xf32> to vector<8x1xf32>
    %cst_11 = arith.constant 0.000000e+00 : f32
    %23 = vector.broadcast %cst_11 : f32 to vector<8x126xf32>
    %24 = tpu.concatenate %18, %22, %23 in 1 : vector<8x1xf32>, vector<8x1xf32>, vector<8x126xf32> -> vector<8x128xf32>
    %c0_12 = arith.constant 0 : index
    %c0_13 = arith.constant 0 : index
    %25 = vector.load %arg5[%c0_12, %c0_13] : memref<1x128xf32, #tpu.memory_space<vmem>>, vector<1x128xf32>
    %26 = vector.broadcast %25 : vector<1x128xf32> to vector<8x128xf32>
    %27 = arith.addf %24, %26 : vector<8x128xf32>
    %c0_14 = arith.constant 0 : index
    %c0_15 = arith.constant 0 : index
    %28 = vector.load %arg6[%c0_14, %c0_15] : memref<8x128xf32, #tpu.memory_space<vmem>>, vector<8x128xf32>
    tpu.vector_store %arg6[%c0_14, %c0_15], %27 {strides = array<i32>} : memref<8x128xf32, #tpu.memory_space<vmem>>, vector<8x128xf32>,
    return
  }
  func.func @transform_0(%arg0: i32) -> (i32, i32) {
    %c0_i32 = arith.constant 0 : i32
    %c0_i32_0 = arith.constant 0 : i32
    return %arg0, %c0_i32 : i32, i32
  }
  func.func @transform_1(%arg0: i32) -> (i32, i32) {
    %c0_i32 = arith.constant 0 : i32
    %c0_i32_0 = arith.constant 0 : i32
    %c0_i32_1 = arith.constant 0 : i32
    return %c0_i32, %c0_i32_0 : i32, i32
  }
  func.func @transform_2(%arg0: i32) -> (i32, i32) {
    %c0_i32 = arith.constant 0 : i32
    %c0_i32_0 = arith.constant 0 : i32
    %c0_i32_1 = arith.constant 0 : i32
    return %c0_i32, %c0_i32_0 : i32, i32
  }
  func.func @transform_3(%arg0: i32) -> (i32, i32) {
    %c0_i32 = arith.constant 0 : i32
    %c0_i32_0 = arith.constant 0 : i32
    %c0_i32_1 = arith.constant 0 : i32
    return %c0_i32, %c0_i32_0 : i32, i32
  }
  func.func @transform_4(%arg0: i32) -> (i32, i32) {
    %c0_i32 = arith.constant 0 : i32
    %c0_i32_0 = arith.constant 0 : i32
    %c0_i32_1 = arith.constant 0 : i32
    return %c0_i32, %c0_i32_0 : i32, i32
  }
  func.func @transform_5(%arg0: i32) -> (i32, i32) {
    %c0_i32 = arith.constant 0 : i32
    %c0_i32_0 = arith.constant 0 : i32
    return %arg0, %c0_i32 : i32, i32
  }
}

</mosaic_0001>

<bundles_post_ra>
// kernel: tpu_custom_call.1
= control target key start
LH: loop header
LB: loop body
LE: loop exit
PB: predicated region body
PF: predicated region fallthrough
CT: control target
= control target key end

     0   :  { %10 = vsyncpa [#allocation3], 0  ;;  %s2594_s0 = inlined_call_operand.hbm [shape: f32[16,80], index: 0, kind: input, shape index: {}]   ;;  %s2595_s1 = inlined_call_operand.hbm [shape: f32[80,768], index: 1, kind: input, shape index: {}]   ;;  %s2596_s2 = inlined_call_operand.hbm [shape: f32[1,768], index: 2, kind: input, shape index: {}]   ;;  %s2597_s3 = inlined_call_operand.hbm [shape: f32[384,768], index: 3, kind: input, shape index: {}]   ;;  %s2598_s4 = inlined_call_operand.hbm [shape: f32[1,128], index: 4, kind: input, shape index: {}]   ;;  %s2599_s5 = inlined_call_operand.hbm [shape: f32[16,128], index: 5, kind: output, shape index: {}]  }
   0x1   :  { %12 = vsyncpa [#allocation3 + $0x1], 0 }
   0x2   :  { %13 = vsyncpa [#allocation6], 0 }
   0x3   :  { %14 = vsyncpa [#allocation9], 0 }
   0x4   :  { %15 = vsyncpa [#allocation4], 0 }
   0x5   :  { %17 = vsyncpa [#allocation4 + $0x1], 0  ;;  %s2258_s18 = smov 0   ;;  %s2260_s19 = smov 0  }
   0x6   :  { %s2262_s20 = smov 0   ;;  %s2264_s21 = smov 0  }
   0x7 LB: > { %s2219_s22 = smov [#allocation5]   ;;  %s2279_s24 = sadd.s32 4294967295, %s2217_s21   ;;  %s2217_s21 = sphi %s2264_s21, %s2623_s21   ;;  %s2213_s20 = sphi %s2262_s20, %s2622_s20   ;;  %s2209_s19 = sphi %s2260_s19, %s2621_s19   ;;  %s2205_s18 = sphi %s2258_s18, %s2620_s18  }
   0x8   : > { %s176_s23 = sshll.u32 %s2219_s22, 4  ;;  %p1504_p0 = scmp.ge.s32.totalorder %s2217_s21, 1  ;;  %s2284_s23 = int_to_ptr.vmem [resolvable:$true] %s176_s23 }
   0x9   : > { %p2600_p1 = scmp.eq.s32.totalorder %s2279_s24, 0  ;;  %p164_p2 = scmp.lt.s32.totalorder %s2217_s21, 3 }
   0xa   : > { %s2220_s26 = smov [#allocation8]   ;;  %s2221_s29 = smov [#allocation7]  }
   0xb   : > { %p2286_p3 = pnand %p1504_p0, %p164_p2  ;;  %s200_s27 = sshll.u32 %s2220_s26, 4  ;;  %s2299_s27 = int_to_ptr.vmem [resolvable:$true] %s200_s27 }
   0xc   : > { %s190_s30 = sshll.u32 %s2221_s29, 4  ;;  %s2001_s8 = scalar_lea.hbm %s2595_s1, 7680  ;;  %s2301_s30 = int_to_ptr.vmem [resolvable:$true] %s190_s30 }
   0xd   : > { %s2603_s25 = scalar_select %p2286_p3, 1, 0 }
   0xe   : > { %p1907_p5 = pneg %p2286_p3  ;;  %p2002_p7 = scmp.ne.s32.totalorder %s2595_s1, %s2001_s8 }
   0xf   : > { %p2008_p11 = scmp.lt.u32.totalorder %s2001_s8, %s2595_s1 }
  0x10   : > { %p2295_p6 = pnand %p1907_p5, %p2600_p1 }
  0x12   : > { %p2311_p8 = pneg %p2295_p6 }
  0x14   : > { %p2004_p9 = pnand %p2311_p8, %p2002_p7 }
  0x16   : > { %p2005_p10 = pneg %p2004_p9 }
  0x18   : > { %p2010_p12 = pnand %p2008_p11, %p2005_p10 }
  0x1a   : > { %2013 = shalt.err (!%p2010_p12)
}
  0x1b   : > { %s2014_s14 = scalar_lea.vmem %s2284_s23, 7680  ;;  %p2022_p5 = scmp.lt.s32.totalorder %s2284_s23, %s2284_s23 }
  0x1c   : > { %p2015_p13 = scmp.ne.s32.totalorder %s2284_s23, %s2014_s14  ;;  %p2023_p4 = scmp.lt.s32.totalorder %s2014_s14, %s2014_s14 }
  0x1e   : > { %p2017_p0 = pnand %p2015_p13, %p2311_p8  ;;  %p2024_p7 = por %p2023_p4, %p2022_p5 }
  0x20   : > { %p2018_p2 = pneg %p2017_p0 }
  0x22   : > { %p2025_p9 = pnand %p2024_p7, %p2018_p2 }
  0x24   : > { %2028 = shalt.err (!%p2025_p9)
}
  0x25   : > { %s2222_s15 = smov 768   ;;  %s2223_s16 = smov 48  }
  0x26   : > { %1910 = dma.hbm_to_vmem [thread:$0]  (!%p2295_p6), %s2595_s1, 7680, %s2284_s23, [#allocation6], %s2222_s15, %s2222_s15, %s2223_s16  }
  0x27   : > { %s2029_s6 = scalar_lea.hbm %s2597_s3, 36864 }
  0x28   : > { %p2030_p4 = scmp.ne.s32.totalorder %s2597_s3, %s2029_s6  ;;  %p2036_p12 = scmp.lt.u32.totalorder %s2029_s6, %s2597_s3 }
  0x2a   : > { %p2032_p10 = pnand %p2030_p4, %p2311_p8 }
  0x2c   : > { %p2033_p11 = pneg %p2032_p10 }
  0x2e   : > { %p2038_p13 = pnand %p2036_p12, %p2033_p11 }
  0x30   : > { %2041 = shalt.err (!%p2038_p13)
}
  0x31   : > { %s2042_s23 = scalar_lea.vmem %s2299_s27, 36864  ;;  %p2050_p7 = scmp.lt.s32.totalorder %s2299_s27, %s2299_s27 }
  0x32   : > { %p2043_p0 = scmp.ne.s32.totalorder %s2299_s27, %s2042_s23  ;;  %p2051_p9 = scmp.lt.s32.totalorder %s2042_s23, %s2042_s23 }
  0x34   : > { %p2045_p2 = pnand %p2043_p0, %p2311_p8  ;;  %p2052_p4 = por %p2051_p9, %p2050_p7 }
  0x36   : > { %p2046_p5 = pneg %p2045_p2 }
  0x38   : > { %p2053_p10 = pnand %p2052_p4, %p2046_p5 }
  0x3a   : > { %2056 = shalt.err (!%p2053_p10)
}
  0x3b   : > { %1916 = dma.hbm_to_vmem [thread:$0]  (!%p2295_p6), %s2597_s3, 36864, %s2299_s27, [#allocation9], %s2222_s15, %s2222_s15, %s2223_s16  }
  0x3c   : > { %s2057_s22 = scalar_lea.hbm %s2596_s2, 96 }
  0x3d   : > { %p2058_p11 = scmp.ne.s32.totalorder %s2596_s2, %s2057_s22  ;;  %p2064_p0 = scmp.lt.u32.totalorder %s2057_s22, %s2596_s2 }
  0x3f   : > { %p2060_p12 = pnand %p2058_p11, %p2311_p8 }
  0x41   : > { %p2061_p13 = pneg %p2060_p12 }
  0x43   : > { %p2066_p2 = pnand %p2064_p0, %p2061_p13 }
  0x45   : > { %2069 = shalt.err (!%p2066_p2)
}
  0x46   : > { %s2070_s27 = scalar_lea.vmem %s2301_s30, 96  ;;  %p2078_p4 = scmp.lt.s32.totalorder %s2301_s30, %s2301_s30 }
  0x47   : > { %p2071_p5 = scmp.ne.s32.totalorder %s2301_s30, %s2070_s27  ;;  %p2079_p10 = scmp.lt.s32.totalorder %s2070_s27, %s2070_s27 }
  0x49   : > { %p2073_p7 = pnand %p2071_p5, %p2311_p8  ;;  %p2080_p11 = por %p2079_p10, %p2078_p4 }
  0x4b   : > { %p2074_p9 = pneg %p2073_p7 }
  0x4d   : > { %p2081_p12 = pnand %p2080_p11, %p2074_p9 }
  0x4f   : > { %2084 = shalt.err (!%p2081_p12)
}
  0x50   : > { %1913 = dma.hbm_to_vmem [thread:$0]  (!%p2295_p6), %s2596_s2, 96, %s2301_s30, [#allocation6]  }
  0x51   : > { %s2224_s8 = smov [#allocation10]   ;;  %s2085_s12 = scalar_lea.hbm %s2598_s4, 16 }
  0x52   : > { %s214_s9 = sshll.u32 %s2224_s8, 4  ;;  %p2086_p13 = scmp.ne.s32.totalorder %s2598_s4, %s2085_s12  ;;  %s215_s9 = int_to_ptr.vmem [resolvable:$true] %s214_s9 }
  0x53   : > { %p2092_p5 = scmp.lt.u32.totalorder %s2085_s12, %s2598_s4 }
  0x54   : > { %p2088_p0 = pnand %p2086_p13, %p2311_p8 }
  0x56   : > { %p2089_p2 = pneg %p2088_p0 }
  0x58   : > { %p2094_p7 = pnand %p2092_p5, %p2089_p2 }
  0x5a   : > { %2097 = shalt.err (!%p2094_p7)
}
  0x5b   : > { %s2098_s30 = scalar_lea.vmem %s215_s9, 16  ;;  %s2105_s26 = scalar_lea.vmem %s215_s9, 32 }
  0x5c   : > { %p2099_p9 = scmp.ne.s32.totalorder %s215_s9, %s2098_s30  ;;  %p2106_p11 = scmp.lt.s32.totalorder %s215_s9, %s215_s9 }
  0x5d   : > { %p2107_p12 = scmp.lt.s32.totalorder %s2105_s26, %s2098_s30 }
  0x5e   : > { %p2101_p4 = pnand %p2099_p9, %p2311_p8 }
  0x5f   : > { %p2108_p1 = por %p2107_p12, %p2106_p11 }
  0x60   : > { %p2102_p10 = pneg %p2101_p4 }
  0x62   : > { %p2109_p3 = pnand %p2108_p1, %p2102_p10 }
  0x64   : > { %2112 = shalt.err (!%p2109_p3)
}
  0x65   : > { %1919 = dma.hbm_to_vmem [thread:$0]  (!%p2295_p6), %s2598_s4, 16, %s215_s9, [#allocation9]  }
  0x66   : > { %s1503_s11 = sadd.s32 4294967294, %s2217_s21   ;;  %s2398_s28 = sadd.s32 1, %s2217_s21  }
  0x67   : > { %s27_s7 = ssub.s32 %s2217_s21, %s2398_s28  ;;  %s30_s27 = sadd.s32 1, %s2213_s20 }
  0x68   : > { %p28_p1 = scmp.eq.s32.totalorder %s27_s7, 0  ;;  %p37_p3 = scmp.ne.s32.totalorder %s2213_s20, %s2209_s19 }
  0x69   : > { %p38_p8 = scmp.eq.s32.totalorder %s2217_s21, 0  ;;  %p43_p13 = scmp.ne.s32.totalorder %s2209_s19, %s2205_s18 }
  0x6a   : > { %s2409_s15 = scalar_select %p28_p1, %s2213_s20, %s30_s27  }
  0x6b   : > { %p2411_p0 = por %p38_p8, %p37_p3  ;;  %p2607_p2 = scmp.eq.s32.totalorder %s2279_s24, 0 }
  0x6c   : > { %p151_p5 = scmp.eq.s32.totalorder %s2279_s24, 1  ;;  %p157_p7 = scmp.eq.s32.totalorder %s1503_s11, 1 }
  0x6d   : > { %p2417_p6 = por %p2607_p2, %p43_p13  ;;  %p1932_p9 = scmp.lt.s32.totalorder %s2217_s21, 2 }
  0x6e   : > { %s225_s9 = sand.u32 1, %s2213_s20   ;;  %p2424_p4 = por %p151_p5, %p37_p3 }
  0x6f   : > { %p2428_p10 = por %p157_p7, %p43_p13  ;;  %s1510_s12 = sshll.u32 %s225_s9, 3 }
  0x70   : > { %s2609_s10 = scalar_select %p2424_p4, 1, 0 }
  0x71   : > { %s2610_s23 = scalar_select %p2428_p10, 1, 0 }
  0x72   : > { %s1511_s13 = sshll.u32 %s2217_s21, 7  ;;  %s229_s30 = scalar_lea.vmem [#allocation2], %s1510_s12 }
  0x73   : > { %s2436_s22 = scalar_lea.hbm %s2594_s0, %s1511_s13  ;;  %s236_s26 = sshll.u32 %s229_s30, 4  ;;  %s2438_s26 = int_to_ptr.vmem [resolvable:$true] %s236_s26 }
  0x74   : > { %p2442_p11 = pnand %p1932_p9, %p2411_p0  ;;  %s226_s6 = scalar_lea.sflag [#allocation3], %s225_s9 }
  0x75   : > { %s2113_s11 = scalar_lea.hbm %s2436_s22, 128  ;;  %s2118_s12 = scalar_lea.hbm %s2594_s0, 256 }
  0x76   : > { %p2114_p12 = scmp.ne.s32.totalorder %s2436_s22, %s2113_s11  ;;  %p2115_p1 = pneg %p2442_p11 }
  0x77   : > { %p2119_p13 = scmp.lt.u32.totalorder %s2436_s22, %s2594_s0  ;;  %p2120_p0 = scmp.lt.u32.totalorder %s2118_s12, %s2113_s11 }
  0x78   : > { %p2116_p3 = pnand %p2115_p1, %p2114_p12  ;;  %p2122_p5 = scmp.lt.u32.totalorder %s2113_s11, %s2436_s22 }
  0x79   : > { %p2121_p2 = por %p2120_p0, %p2119_p13 }
  0x7a   : > { %p2117_p8 = pneg %p2116_p3 }
  0x7b   : > { %p2123_p7 = por %p2122_p5, %p2121_p2 }
  0x7d   : > { %p2124_p9 = pnand %p2123_p7, %p2117_p8 }
  0x7f   : > { %2127 = shalt.err (!%p2124_p9)
}
  0x80   : > { %s2128_s9 = scalar_lea.vmem %s2438_s26, 128  ;;  %s2225_s14 = smov [#allocation2]  }
  0x81   : > { %p2129_p12 = scmp.ne.s32.totalorder %s2438_s26, %s2128_s9  ;;  %s2133_s17 = sshll.u32 %s2225_s14, 4  ;;  %s2134_s17 = int_to_ptr.vmem [resolvable:$false] %s2133_s17 }
  0x82   : > { %s2135_s30 = scalar_lea.vmem %s2134_s17, 256  ;;  %p2136_p4 = scmp.lt.s32.totalorder %s2438_s26, %s2134_s17 }
  0x83   : > { %p2131_p3 = pnand %p2129_p12, %p2115_p1  ;;  %p2137_p13 = scmp.lt.s32.totalorder %s2135_s30, %s2128_s9 }
  0x85   : > { %p2132_p10 = pneg %p2131_p3  ;;  %p2138_p0 = por %p2137_p13, %p2136_p4 }
  0x87   : > { %p2139_p2 = pnand %p2138_p0, %p2132_p10 }
  0x89   : > { %2142 = shalt.err (!%p2139_p2)
}
  0x8a   : > { %1923 = dma.hbm_to_vmem [thread:$0]  (!%p2442_p11), %s2436_s22, 128, %s2438_s26, %s226_s6  }
  0x8b   : > { %p2612_p8 = scmp.ne.s32.totalorder %s2603_s25, 0 }
  0x8c   : > { %s2474_s11 = sand.u32 (!%p2612_p8), 1, %s2209_s19  }
  0x8d   : > { %245 = sbr.rel (%p2612_p8) target bundleno = 896 (0x380), region = 40  ;;  %s1513_s7 = sshll.u32 (!%p2612_p8), %s2474_s11, 3 }
  0x8e   : > { %s248_s27 = scalar_lea.sflag (!%p2612_p8), [#allocation3], %s2474_s11  ;;  %s2480_s12 = scalar_lea.vmem (!%p2612_p8), [#allocation2], %s1513_s7 }
  0x94   : > { %2188 = dma.done.wait (%p2417_p6), %s248_s27, 128  }
  0x95   : > { %2190 = vsyncadd (%p2417_p6), %s248_s27, 4294967168  ;;  %p2613_p4 = scmp.eq.s32.totalorder %s2279_s24, 0 }
  0x97   : > { %2192 = dma.done.wait (%p2613_p4), [#allocation6], 7776   ;;  %p2614_p10 = pmov %p2613_p4 }
  0x98   : > { %p2615_p11 = pmov %p2613_p4 }
  0x99   : > { %2194 = vsyncadd (%p2614_p10), [#allocation6], 4294959520 }
  0x9a   : > { %2196 = dma.done.wait (%p2615_p11), [#allocation9], 36880   ;;  %p2616_p1 = pmov %p2613_p4 }
  0x9b   : > { %v2226_v0 = vmov 0.0   ;;  %v296_v1 = vld [vmem:[#allocation5 + $0x8] sm:$0xff]  ;;  %v302_v2 = vld [vmem:[#allocation5 + $0x38] sm:$0xff]  ;;  %v295_v6 = vld [vmem:[#allocation5] sm:$0xff]  ;;  %vm387_vm0 = vcmask 654336   ;;  %vm1368_vm1 = vcmask 7168  }
  0x9c   : > { %2198 = vsyncadd (%p2616_p1), [#allocation9], 4294930416  ;;  %455 = vmatprep.mubr.f32.mxu0 %v2226_v0  ;;  %526 = vmatprep.mubr.f32.mxu1 %v2226_v0  ;;  %v298_v3 = vld [vmem:[#allocation5 + $0x18] sm:$0xff]  ;;  %v1533_v4 = vpack.c.bf16 %v302_v2, %v296_v1  ;;  %v304_v5 = vld [vmem:[#allocation5 + $0x48] sm:$0xff]  ;;  %vm1370_vm2 = vcmask 15360   ;;  %s1530_s25 = sshll.u32 %s2279_s24, 7 }
  0x9d   : > { %v301_v7 = vld [vmem:[#allocation5 + $0x30] sm:$0xff]  ;;  %v1553_v8 = vpack.c.bf16 %v304_v5, %v298_v3  ;;  %v303_v11 = vld [vmem:[#allocation5 + $0x40] sm:$0xff]  ;;  %v308_v12 = vld [vmem:[#allocation5 + $0x68] sm:$0xff]  ;;  %s293_s8 = scalar_lea.vmem [#allocation11], %s1513_s7  ;;  %s2550_s6 = scalar_lea.hbm %s2599_s5, %s1530_s25 }
  0x9e   : > { %v1535_v9 = vpack.c.bf16 %v301_v7, %v295_v6  ;;  %v297_v10 = vld [vmem:[#allocation5 + $0x10] sm:$0xff]  ;;  %1534 = vmatprep.subr.bf16.mxu0 %v1533_v4  ;;  %v314_v14 = vld [vmem:[#allocation5 + $0x98] sm:$0xff]  ;;  %v316_v16 = vld [vmem:[#allocation5 + $0xa8] sm:$0xff]  ;;  %s1395_s22 = sshll.u32 %s293_s8, 4  ;;  %s1382_s16 = scalar_lea.sflag [#allocation4], %s2474_s11  ;;  %s2552_s22 = int_to_ptr.vmem [resolvable:$true] %s1395_s22 }
  0x9f   : > { %v1555_v13 = vpack.c.bf16 %v303_v11, %v297_v10  ;;  %v310_v15 = vld [vmem:[#allocation5 + $0x78] sm:$0xff]  ;;  %1554 = vmatprep.subr.bf16.mxu1 %v1553_v8  ;;  %v1537_v17 = vpack.c.bf16 %v314_v14, %v308_v12  ;;  %v307_v19 = vld [vmem:[#allocation5 + $0x60] sm:$0xff]  ;;  %v313_v20 = vld [vmem:[#allocation5 + $0x90] sm:$0xff]  ;;  %s2143_s13 = scalar_lea.vmem %s2552_s22, 128  ;;  %p2617_p5 = scmp.ne.s32.totalorder %s2609_s10, 0 }
  0xa0   : > { %1536 = vmatpush1.bf16.msra.mxu0 %v1535_v9  ;;  %v1557_v18 = vpack.c.bf16 %v316_v16, %v310_v15  ;;  %v309_v21 = vld [vmem:[#allocation5 + $0x70] sm:$0xff]  ;;  %v1539_v22 = vpack.c.bf16 %v313_v20, %v307_v19  ;;  %v315_v23 = vld [vmem:[#allocation5 + $0xa0] sm:$0xff]  ;;  %v320_v24 = vld [vmem:[#allocation5 + $0xc8] sm:$0xff]  ;;  %p2144_p6 = scmp.ne.s32.totalorder %s2552_s22, %s2143_s13  ;;  %s2227_s24 = smov [#allocation11]  }
  0xa1   : > { %1556 = vmatpush1.bf16.msra.mxu1 %v1555_v13  ;;  %v326_v25 = vld [vmem:[#allocation5 + $0xf8] sm:$0xff]  ;;  %1538 = vmatprep.subr.bf16.mxu0 %v1537_v17  ;;  %v1559_v26 = vpack.c.bf16 %v315_v23, %v309_v21  ;;  %v328_v29 = vld [vmem:[#allocation5 + $0x108] sm:$0xff]  ;;  %v319_v30 = vld [vmem:[#allocation5 + $0xc0] sm:$0xff]  ;;  %s2147_s9 = sshll.u32 %s2227_s24, 4  ;;  %s2148_s9 = int_to_ptr.vmem [resolvable:$false] %s2147_s9 }
  0xa2   : > { %1558 = vmatprep.subr.bf16.mxu1 %v1557_v18  ;;  %v1541_v27 = vpack.c.bf16 %v326_v25, %v320_v24  ;;  %v322_v28 = vld [vmem:[#allocation5 + $0xd8] sm:$0xff]  ;;  %v325_v32 = vld [vmem:[#allocation5 + $0xf0] sm:$0xff]  ;;  %v327_v34 = vld [vmem:[#allocation5 + $0x100] sm:$0xff]  ;;  %p2145_p7 = pnand %p2144_p6, %p2617_p5  ;;  %s2149_s14 = scalar_lea.vmem %s2148_s9, 256 }
  0xa3   : > { %v1561_v31 = vpack.c.bf16 %v328_v29, %v322_v28  ;;  %v321_v33 = vld [vmem:[#allocation5 + $0xd0] sm:$0xff]  ;;  %v1543_v35 = vpack.c.bf16 %v325_v32, %v319_v30  ;;  %v332_v36 = vld [vmem:[#allocation5 + $0x128] sm:$0xff]  ;;  %v338_v37 = vld [vmem:[#allocation5 + $0x158] sm:$0xff]  ;;  %p2150_p12 = scmp.lt.s32.totalorder %s2552_s22, %s2148_s9  ;;  %p2151_p3 = scmp.lt.s32.totalorder %s2149_s14, %s2143_s13 }
  0xa4   : > { %1540 = vmatpush1.bf16.msra.mxu0 %v1539_v22  ;;  %v334_v38 = vld [vmem:[#allocation5 + $0x138] sm:$0xff]  ;;  %v1563_v39 = vpack.c.bf16 %v327_v34, %v321_v33  ;;  %v1545_v40 = vpack.c.bf16 %v338_v37, %v332_v36  ;;  %v340_v41 = vld [vmem:[#allocation5 + $0x168] sm:$0xff]  ;;  %v331_v42 = vld [vmem:[#allocation5 + $0x120] sm:$0xff]  ;;  %p2146_p9 = pneg %p2145_p7 }
  0xa5   : > { %1560 = vmatpush1.bf16.msra.mxu1 %v1559_v26  ;;  %1542 = vmatprep.subr.bf16.mxu0 %v1541_v27  ;;  %v337_v43 = vld [vmem:[#allocation5 + $0x150] sm:$0xff]  ;;  %v1565_v44 = vpack.c.bf16 %v340_v41, %v334_v38  ;;  %v339_v46 = vld [vmem:[#allocation5 + $0x160] sm:$0xff]  ;;  %v344_v47 = vld [vmem:[#allocation5 + $0x188] sm:$0xff]  ;;  %p2152_p13 = por %p2151_p3, %p2150_p12 }
  0xa6   : > { %1562 = vmatprep.subr.bf16.mxu1 %v1561_v31  ;;  %v333_v45 = vld [vmem:[#allocation5 + $0x130] sm:$0xff]  ;;  %v350_v48 = vld [vmem:[#allocation5 + $0x1b8] sm:$0xff]  ;;  %v352_v50 = vld [vmem:[#allocation5 + $0x1c8] sm:$0xff]  ;;  %v1547_v51 = vpack.c.bf16 %v337_v43, %v331_v42 }
  0xa7   : > { %v346_v49 = vld [vmem:[#allocation5 + $0x198] sm:$0xff]  ;;  %v1567_v52 = vpack.c.bf16 %v339_v46, %v333_v45  ;;  %v1549_v53 = vpack.c.bf16 %v350_v48, %v344_v47  ;;  %v343_v54 = vld [vmem:[#allocation5 + $0x180] sm:$0xff]  ;;  %v349_v55 = vld [vmem:[#allocation5 + $0x1b0] sm:$0xff]  ;;  %p2153_p0 = pnand %p2152_p13, %p2146_p9 }
  0xa8   : > { %1544 = vmatpush1.bf16.msra.mxu0 %v1543_v35  ;;  %v1569_v56 = vpack.c.bf16 %v352_v50, %v346_v49  ;;  %v345_v57 = vld [vmem:[#allocation5 + $0x190] sm:$0xff]  ;;  %v351_v58 = vld [vmem:[#allocation5 + $0x1c0] sm:$0xff]  ;;  %v1551_v61 = vpack.c.bf16 %v349_v55, %v343_v54  ;;  %v300_v2 = vld [vmem:[#allocation5 + $0x28] sm:$0xff] }
  0xa9   : > { %1564 = vmatpush1.bf16.msra.mxu1 %v1563_v39  ;;  %1546 = vmatprep.subr.bf16.mxu0 %v1545_v40  ;;  %v641_v59 = vld [vmem:[#allocation8 + $0x8] sm:$0xff]  ;;  %v647_v60 = vld [vmem:[#allocation8 + $0x38] sm:$0xff]  ;;  %v1571_v62 = vpack.c.bf16 %v351_v58, %v345_v57  ;;  %v640_v63 = vld [vmem:[#allocation8] sm:$0xff] }
  0xaa   : > { %1566 = vmatprep.subr.bf16.mxu1 %v1565_v44  ;;  %v646_v1 = vld [vmem:[#allocation8 + $0x30] sm:$0xff]  ;;  %v1593_v3 = vpack.c.bf16 %v647_v60, %v641_v59  ;;  %v299_v5 = vld [vmem:[#allocation5 + $0x20] sm:$0xff]  ;;  %v653_v7 = vld [vmem:[#allocation8 + $0x68] sm:$0xff] }
  0xab   : > { %v306_v4 = vld [vmem:[#allocation5 + $0x58] sm:$0xff]  ;;  %v305_v6 = vld [vmem:[#allocation5 + $0x50] sm:$0xff]  ;;  %v312_v12 = vld [vmem:[#allocation5 + $0x88] sm:$0xff]  ;;  %v1595_v14 = vpack.c.bf16 %v646_v1, %v640_v63 }
  0xac   : > { %1548 = vmatpush1.bf16.msra.mxu0 %v1547_v51  ;;  %v659_v8 = vld [vmem:[#allocation8 + $0x98] sm:$0xff]  ;;  %v1573_v9 = vpack.c.bf16 %v306_v4, %v300_v2  ;;  %v1575_v11 = vpack.c.bf16 %v305_v6, %v299_v5  ;;  %v317_v17 = vld [vmem:[#allocation5 + $0xb0] sm:$0xff]  ;;  %v652_v19 = vld [vmem:[#allocation8 + $0x60] sm:$0xff] }
  0xad   : > { %1568 = vmatpush1.bf16.msra.mxu1 %v1567_v52  ;;  %1550 = vmatprep.subr.bf16.mxu0 %v1549_v53  ;;  %v2497_v10 = vld [vmem:[%s2480_s12] sm:$0xff]  ;;  %v311_v16 = vld [vmem:[#allocation5 + $0x80] sm:$0xff]  ;;  %v1597_v18 = vpack.c.bf16 %v659_v8, %v653_v7  ;;  %v324_v23 = vld [vmem:[#allocation5 + $0xe8] sm:$0xff] }
  0xae   : > { %1570 = vmatprep.subr.bf16.mxu1 %v1569_v56  ;;  %v318_v13 = vld [vmem:[#allocation5 + $0xb8] sm:$0xff]  ;;  %v665_v21 = vld [vmem:[#allocation8 + $0xc8] sm:$0xff]  ;;  %v1579_v25 = vpack.c.bf16 %v317_v17, %v311_v16  ;;  %v664_v27 = vld [vmem:[#allocation8 + $0xc0] sm:$0xff] }
  0xaf   : > { %v1577_v15 = vpack.c.bf16 %v318_v13, %v312_v12  ;;  %v658_v20 = vld [vmem:[#allocation8 + $0x90] sm:$0xff]  ;;  %v671_v22 = vld [vmem:[#allocation8 + $0xf8] sm:$0xff]  ;;  %v336_v33 = vld [vmem:[#allocation5 + $0x148] sm:$0xff] }
  0xb0   : > { %1552 = vmatpush1.bf16.msra.mxu0 %v1551_v61  ;;  %v330_v24 = vld [vmem:[#allocation5 + $0x118] sm:$0xff]  ;;  %v1599_v26 = vpack.c.bf16 %v658_v20, %v652_v19  ;;  %v323_v29 = vld [vmem:[#allocation5 + $0xe0] sm:$0xff]  ;;  %v329_v30 = vld [vmem:[#allocation5 + $0x110] sm:$0xff]  ;;  %v1601_v31 = vpack.c.bf16 %v671_v22, %v665_v21 }
  0xb1   : > { %1572 = vmatpush1.bf16.msra.mxu1 %v1571_v62  ;;  %1574 = vmatprep.subr.bf16.mxu0 %v1573_v9  ;;  %v1581_v28 = vpack.c.bf16 %v330_v24, %v324_v23  ;;  %v670_v32 = vld [vmem:[#allocation8 + $0xf0] sm:$0xff]  ;;  %v677_v35 = vld [vmem:[#allocation8 + $0x128] sm:$0xff]  ;;  %v683_v36 = vld [vmem:[#allocation8 + $0x158] sm:$0xff]  ;;  %v1583_v37 = vpack.c.bf16 %v329_v30, %v323_v29 }
  0xb2   : > { %1594 = vmatprep.subr.bf16.mxu1 %v1593_v3  ;;  %v342_v34 = vld [vmem:[#allocation5 + $0x178] sm:$0xff]  ;;  %v1603_v38 = vpack.c.bf16 %v670_v32, %v664_v27  ;;  %v676_v39 = vld [vmem:[#allocation8 + $0x120] sm:$0xff]  ;;  %v341_v42 = vld [vmem:[#allocation5 + $0x170] sm:$0xff]  ;;  %v1605_v43 = vpack.c.bf16 %v683_v36, %v677_v35 }
  0xb3   : > { %1519 = vmatmul.mubr.msk.f32.vlgmr.msra.gmra.mrb[0].mxu0 %vm387_vm0, %v2497_v10  ;;  %v1585_v40 = vpack.c.bf16 %v342_v34, %v336_v33  ;;  %v335_v41 = vld [vmem:[#allocation5 + $0x140] sm:$0xff]  ;;  %v682_v44 = vld [vmem:[#allocation8 + $0x150] sm:$0xff]  ;;  %v348_v45 = vld [vmem:[#allocation5 + $0x1a8] sm:$0xff] }
  0xb4   : > { %1520 = vmatmul.mubr.msk.f32.vlgmr.msra.gmra.mrb[0].mxu1 %vm387_vm0, %v2497_v10  ;;  %1576 = vmatpush1.bf16.msra.mxu0 %v1575_v11  ;;  %v354_v46 = vld [vmem:[#allocation5 + $0x1d8] sm:$0xff]  ;;  %v689_v47 = vld [vmem:[#allocation8 + $0x188] sm:$0xff]  ;;  %v1587_v49 = vpack.c.bf16 %v341_v42, %v335_v41  ;;  %v1607_v50 = vpack.c.bf16 %v682_v44, %v676_v39  ;;  %v688_v51 = vld [vmem:[#allocation8 + $0x180] sm:$0xff] }
  0xb5   : > { %1596 = vmatpush1.bf16.msra.mxu1 %v1595_v14  ;;  %1578 = vmatprep.subr.bf16.mxu0 %v1577_v15  ;;  %v695_v48 = vld [vmem:[#allocation8 + $0x1b8] sm:$0xff]  ;;  %v1589_v52 = vpack.c.bf16 %v354_v46, %v348_v45  ;;  %v353_v54 = vld [vmem:[#allocation5 + $0x1d0] sm:$0xff]  ;;  %v832_v1 = vld [vmem:[#allocation8 + $0x600] sm:$0xff] }
  0xb6   : > { %1598 = vmatprep.subr.bf16.mxu1 %v1597_v18  ;;  %597 = vmatprep.mubr.f32.mxu0 %v2226_v0  ;;  %v347_v53 = vld [vmem:[#allocation5 + $0x1a0] sm:$0xff]  ;;  %v1609_v55 = vpack.c.bf16 %v695_v48, %v689_v47  ;;  %v694_v56 = vld [vmem:[#allocation8 + $0x1b0] sm:$0xff]  ;;  %v833_v57 = vld [vmem:[#allocation8 + $0x608] sm:$0xff] }
  0xb7   : > { %v839_v58 = vld [vmem:[#allocation8 + $0x638] sm:$0xff]  ;;  %v701_v59 = vld [vmem:[#allocation8 + $0x1e8] sm:$0xff]  ;;  %v1591_v61 = vpack.c.bf16 %v353_v54, %v347_v53  ;;  %v1611_v62 = vpack.c.bf16 %v694_v56, %v688_v51  ;;  %v838_v2 = vld [vmem:[#allocation8 + $0x630] sm:$0xff] }
  0xb8   : > { %1580 = vmatpush1.bf16.msra.mxu0 %v1579_v25  ;;  %v707_v60 = vld [vmem:[#allocation8 + $0x218] sm:$0xff]  ;;  %v1657_v63 = vpack.c.bf16 %v839_v58, %v833_v57  ;;  %v700_v4 = vld [vmem:[#allocation8 + $0x1e0] sm:$0xff]  ;;  %v706_v5 = vld [vmem:[#allocation8 + $0x210] sm:$0xff]  ;;  %v1659_v8 = vpack.c.bf16 %v838_v2, %v832_v1 }
  0xb9   : > { %1600 = vmatpush1.bf16.msra.mxu1 %v1599_v26  ;;  %1582 = vmatprep.subr.bf16.mxu0 %v1581_v28  ;;  %v1613_v3 = vpack.c.bf16 %v707_v60, %v701_v59  ;;  %v713_v6 = vld [vmem:[#allocation8 + $0x248] sm:$0xff]  ;;  %v719_v7 = vld [vmem:[#allocation8 + $0x278] sm:$0xff]  ;;  %v1615_v9 = vpack.c.bf16 %v706_v5, %v700_v4  ;;  %v712_v12 = vld [vmem:[#allocation8 + $0x240] sm:$0xff] }
  0xba   : > { %1602 = vmatprep.subr.bf16.mxu1 %v1601_v31  ;;  %v1617_v11 = vpack.c.bf16 %v719_v7, %v713_v6  ;;  %v718_v13 = vld [vmem:[#allocation8 + $0x270] sm:$0xff]  ;;  %v725_v14 = vld [vmem:[#allocation8 + $0x2a8] sm:$0xff]  ;;  %v731_v15 = vld [vmem:[#allocation8 + $0x2d8] sm:$0xff] }
  0xbb   : > { %v1619_v16 = vpack.c.bf16 %v718_v13, %v712_v12  ;;  %v1621_v17 = vpack.c.bf16 %v731_v15, %v725_v14  ;;  %v724_v18 = vld [vmem:[#allocation8 + $0x2a0] sm:$0xff]  ;;  %v730_v19 = vld [vmem:[#allocation8 + $0x2d0] sm:$0xff]  ;;  %v737_v20 = vld [vmem:[#allocation8 + $0x308] sm:$0xff] }
  0xbc   : > { %1584 = vmatpush1.bf16.msra.mxu0 %v1583_v37  ;;  %v743_v21 = vld [vmem:[#allocation8 + $0x338] sm:$0xff]  ;;  %v1623_v22 = vpack.c.bf16 %v730_v19, %v724_v18  ;;  %v736_v24 = vld [vmem:[#allocation8 + $0x300] sm:$0xff]  ;;  %v742_v25 = vld [vmem:[#allocation8 + $0x330] sm:$0xff] }
  0xbd   : > { %1604 = vmatpush1.bf16.msra.mxu1 %v1603_v38  ;;  %1586 = vmatprep.subr.bf16.mxu0 %v1585_v40  ;;  %v1625_v23 = vpack.c.bf16 %v743_v21, %v737_v20  ;;  %v1627_v26 = vpack.c.bf16 %v742_v25, %v736_v24  ;;  %v851_v27 = vld [vmem:[#allocation8 + $0x698] sm:$0xff]  ;;  %v844_v29 = vld [vmem:[#allocation8 + $0x660] sm:$0xff]  ;;  %v850_v30 = vld [vmem:[#allocation8 + $0x690] sm:$0xff] }
  0xbe   : > { %1606 = vmatprep.subr.bf16.mxu1 %v1605_v43  ;;  %v1663_v31 = vpack.c.bf16 %v850_v30, %v844_v29  ;;  %v749_v32 = vld [vmem:[#allocation8 + $0x368] sm:$0xff]  ;;  %v755_v33 = vld [vmem:[#allocation8 + $0x398] sm:$0xff]  ;;  %v748_v35 = vld [vmem:[#allocation8 + $0x360] sm:$0xff] }
  0xbf   : > { %v1629_v34 = vpack.c.bf16 %v755_v33, %v749_v32  ;;  %v754_v36 = vld [vmem:[#allocation8 + $0x390] sm:$0xff]  ;;  %v857_v38 = vld [vmem:[#allocation8 + $0x6c8] sm:$0xff]  ;;  %v863_v39 = vld [vmem:[#allocation8 + $0x6f8] sm:$0xff] }
  0xc0   : > { %1588 = vmatpush1.bf16.msra.mxu0 %v1587_v49  ;;  %v1631_v37 = vpack.c.bf16 %v754_v36, %v748_v35  ;;  %v1665_v40 = vpack.c.bf16 %v863_v39, %v857_v38  ;;  %v856_v41 = vld [vmem:[#allocation8 + $0x6c0] sm:$0xff]  ;;  %v862_v42 = vld [vmem:[#allocation8 + $0x6f0] sm:$0xff]  ;;  %v761_v44 = vld [vmem:[#allocation8 + $0x3c8] sm:$0xff] }
  0xc1   : > { %1608 = vmatpush1.bf16.msra.mxu1 %v1607_v50  ;;  %1590 = vmatprep.subr.bf16.mxu0 %v1589_v52  ;;  %v1667_v43 = vpack.c.bf16 %v862_v42, %v856_v41  ;;  %v767_v45 = vld [vmem:[#allocation8 + $0x3f8] sm:$0xff]  ;;  %v760_v47 = vld [vmem:[#allocation8 + $0x3c0] sm:$0xff]  ;;  %v766_v48 = vld [vmem:[#allocation8 + $0x3f0] sm:$0xff] }
  0xc2   : > { %1610 = vmatprep.subr.bf16.mxu1 %v1609_v55  ;;  %v1633_v46 = vpack.c.bf16 %v767_v45, %v761_v44  ;;  %v1635_v49 = vpack.c.bf16 %v766_v48, %v760_v47  ;;  %v869_v50 = vld [vmem:[#allocation8 + $0x728] sm:$0xff]  ;;  %v875_v51 = vld [vmem:[#allocation8 + $0x758] sm:$0xff]  ;;  %v868_v53 = vld [vmem:[#allocation8 + $0x720] sm:$0xff] }
  0xc3   : > { %v1669_v52 = vpack.c.bf16 %v875_v51, %v869_v50  ;;  %v874_v54 = vld [vmem:[#allocation8 + $0x750] sm:$0xff]  ;;  %v773_v56 = vld [vmem:[#allocation8 + $0x428] sm:$0xff]  ;;  %v779_v57 = vld [vmem:[#allocation8 + $0x458] sm:$0xff] }
  0xc4   : > { %1592 = vmatpush1.bf16.msra.mxu0 %v1591_v61  ;;  %v1671_v55 = vpack.c.bf16 %v874_v54, %v868_v53  ;;  %v1637_v58 = vpack.c.bf16 %v779_v57, %v773_v56  ;;  %v772_v59 = vld [vmem:[#allocation8 + $0x420] sm:$0xff]  ;;  %v778_v60 = vld [vmem:[#allocation8 + $0x450] sm:$0xff]  ;;  %v785_v5 = vld [vmem:[#allocation8 + $0x488] sm:$0xff]  ;;  %v357_v53 = vlaneseq }
  0xc5   : > { %1612 = vmatpush1.bf16.msra.mxu1 %v1611_v62  ;;  %1658 = vmatprep.subr.bf16.mxu0 %v1657_v63  ;;  %v1639_v61 = vpack.c.bf16 %v778_v60, %v772_v59  ;;  %v881_v62 = vld [vmem:[#allocation8 + $0x788] sm:$0xff]  ;;  %v887_v63 = vld [vmem:[#allocation8 + $0x7b8] sm:$0xff]  ;;  %v880_v2 = vld [vmem:[#allocation8 + $0x780] sm:$0xff] }
  0xc6   : > { %1614 = vmatprep.subr.bf16.mxu1 %v1613_v3  ;;  %v1673_v1 = vpack.c.bf16 %v887_v63, %v881_v62  ;;  %v886_v3 = vld [vmem:[#allocation8 + $0x7b0] sm:$0xff]  ;;  %v791_v6 = vld [vmem:[#allocation8 + $0x4b8] sm:$0xff]  ;;  %v893_v12 = vld [vmem:[#allocation8 + $0x7e8] sm:$0xff]  ;;  %v2507_v54 = vshrl.u32 %v357_v53, 7 }
  0xc7   : > { %1521 = vmatmul.mubr.msk.f32.vlgmr.msra.gmra.mrb[2].mxu0 %vm387_vm0, %v2497_v10  ;;  %v845_v10 = vld [vmem:[#allocation8 + $0x668] sm:$0xff]  ;;  %v1675_v4 = vpack.c.bf16 %v886_v3, %v880_v2  ;;  %v1641_v7 = vpack.c.bf16 %v791_v6, %v785_v5  ;;  %v899_v13 = vld [vmem:[#allocation8 + $0x818] sm:$0xff]  ;;  %v892_v15 = vld [vmem:[#allocation8 + $0x7e0] sm:$0xff] }
  0xc8   : > { %1660 = vmatpush1.bf16.msra.mxu0 %v1659_v8  ;;  %1063 = vmatprep.mubr.f32.mxu0 %v2226_v0  ;;  %v1661_v28 = vpack.c.bf16 %v851_v27, %v845_v10  ;;  %v784_v8 = vld [vmem:[#allocation8 + $0x480] sm:$0xff]  ;;  %v1677_v14 = vpack.c.bf16 %v899_v13, %v893_v12  ;;  %v797_v18 = vld [vmem:[#allocation8 + $0x4e8] sm:$0xff]  ;;  %v803_v19 = vld [vmem:[#allocation8 + $0x518] sm:$0xff]  ;;  %v367_v57 = vsub.s32 2, %v2507_v54 }
  0xc9   : > { %1616 = vmatpush1.bf16.msra.mxu1 %v1615_v9  ;;  %v790_v9 = vld [vmem:[#allocation8 + $0x4b0] sm:$0xff]  ;;  %v1645_v20 = vpack.c.bf16 %v803_v19, %v797_v18  ;;  %v796_v21 = vld [vmem:[#allocation8 + $0x4e0] sm:$0xff]  ;;  %v905_v24 = vld [vmem:[#allocation8 + $0x848] sm:$0xff] }
  0xca   : > { %1618 = vmatprep.subr.bf16.mxu1 %v1617_v11  ;;  %1662 = vmatprep.subr.bf16.mxu0 %v1661_v28  ;;  %v1643_v11 = vpack.c.bf16 %v790_v9, %v784_v8  ;;  %v911_v25 = vld [vmem:[#allocation8 + $0x878] sm:$0xff]  ;;  %v904_v10 = vld [vmem:[#allocation8 + $0x840] sm:$0xff]  ;;  %v910_v27 = vld [vmem:[#allocation8 + $0x870] sm:$0xff] }
  0xcb   : > { %v1683_v28 = vpack.c.bf16 %v910_v27, %v904_v10  ;;  %v809_v29 = vld [vmem:[#allocation8 + $0x548] sm:$0xff]  ;;  %v815_v30 = vld [vmem:[#allocation8 + $0x578] sm:$0xff]  ;;  %v814_v33 = vld [vmem:[#allocation8 + $0x570] sm:$0xff] }
  0xcc   : > { %1664 = vmatpush1.bf16.msra.mxu0 %v1663_v31  ;;  %v808_v31 = vld [vmem:[#allocation8 + $0x540] sm:$0xff]  ;;  %v1649_v32 = vpack.c.bf16 %v815_v30, %v809_v29  ;;  %v923_v35 = vld [vmem:[#allocation8 + $0x8d8] sm:$0xff]  ;;  %v922_v39 = vld [vmem:[#allocation8 + $0x8d0] sm:$0xff] }
  0xcd   : > { %1620 = vmatpush1.bf16.msra.mxu1 %v1619_v16  ;;  %1666 = vmatprep.subr.bf16.mxu0 %v1665_v40  ;;  %v898_v16 = vld [vmem:[#allocation8 + $0x810] sm:$0xff]  ;;  %v1651_v36 = vpack.c.bf16 %v814_v33, %v808_v31  ;;  %v916_v38 = vld [vmem:[#allocation8 + $0x8a0] sm:$0xff]  ;;  %v821_v40 = vld [vmem:[#allocation8 + $0x5a8] sm:$0xff] }
  0xce   : > { %1622 = vmatprep.subr.bf16.mxu1 %v1621_v17  ;;  %v1679_v17 = vpack.c.bf16 %v898_v16, %v892_v15  ;;  %v1687_v41 = vpack.c.bf16 %v922_v39, %v916_v38  ;;  %v827_v42 = vld [vmem:[#allocation8 + $0x5d8] sm:$0xff]  ;;  %v826_v44 = vld [vmem:[#allocation8 + $0x5d0] sm:$0xff]  ;;  %v649_v48 = vld [vmem:[#allocation8 + $0x48] sm:$0xff] }
  0xcf   : > { %v1653_v45 = vpack.c.bf16 %v827_v42, %v821_v40  ;;  %v643_v47 = vld [vmem:[#allocation8 + $0x18] sm:$0xff]  ;;  %v645_v50 = vld [vmem:[#allocation8 + $0x28] sm:$0xff]  ;;  %v642_v18 = vld [vmem:[#allocation8 + $0x10] sm:$0xff] }
  0xd0   : > { %1668 = vmatpush1.bf16.msra.mxu0 %v1667_v43  ;;  %v820_v43 = vld [vmem:[#allocation8 + $0x5a0] sm:$0xff]  ;;  %v651_v51 = vld [vmem:[#allocation8 + $0x58] sm:$0xff]  ;;  %v654_v10 = vld [vmem:[#allocation8 + $0x70] sm:$0xff] }
  0xd1   : > { %1624 = vmatpush1.bf16.msra.mxu1 %v1623_v22  ;;  %1670 = vmatprep.subr.bf16.mxu0 %v1669_v52  ;;  %v802_v22 = vld [vmem:[#allocation8 + $0x510] sm:$0xff]  ;;  %v1785_v52 = vpack.c.bf16 %v651_v51, %v645_v50  ;;  %v2510_v56 = vld [vmem:[#allocation7] sm:$0x3f]  ;;  %v648_v19 = vld [vmem:[#allocation8 + $0x40] sm:$0xff] }
  0xd2   : > { %1626 = vmatprep.subr.bf16.mxu1 %v1625_v23  ;;  %v1647_v23 = vpack.c.bf16 %v802_v22, %v796_v21  ;;  %v368_v60 = vrot.slane %v2510_v56, %v367_v57  ;;  %v650_v21 = vld [vmem:[#allocation8 + $0x50] sm:$0xff]  ;;  %v655_v22 = vld [vmem:[#allocation8 + $0x78] sm:$0xff]  ;;  %v660_v27 = vld [vmem:[#allocation8 + $0xa0] sm:$0xff] }
  0xd3   : > { %v667_v31 = vld [vmem:[#allocation8 + $0xd8] sm:$0xff]  ;;  %v1695_v38 = vpack.c.bf16 %v660_v27, %v654_v10  ;;  %v669_v39 = vld [vmem:[#allocation8 + $0xe8] sm:$0xff]  ;;  %v666_v42 = vld [vmem:[#allocation8 + $0xd0] sm:$0xff] }
  0xd4   : > { %1672 = vmatpush1.bf16.msra.mxu0 %v1671_v55  ;;  %v359_v55 = vsub.s32 0, %v2507_v54  ;;  %v675_v40 = vld [vmem:[#allocation8 + $0x118] sm:$0xff]  ;;  %v681_v51 = vld [vmem:[#allocation8 + $0x148] sm:$0xff]  ;;  %v684_v57 = vld [vmem:[#allocation8 + $0x160] sm:$0xff] }
  0xd5   : > { %1628 = vmatpush1.bf16.msra.mxu1 %v1627_v26  ;;  %1674 = vmatprep.subr.bf16.mxu0 %v1673_v1  ;;  %v1681_v26 = vpack.c.bf16 %v911_v25, %v905_v24  ;;  %v1691_v24 = vpack.c.bf16 %v648_v19, %v642_v18  ;;  %v657_v25 = vld [vmem:[#allocation8 + $0x88] sm:$0xff]  ;;  %v711_v19 = vld [vmem:[#allocation8 + $0x238] sm:$0xff]  ;;  %v704_v10 = vld [vmem:[#allocation8 + $0x200] sm:$0xff] }
  0xd6   : > { %1630 = vmatprep.subr.bf16.mxu1 %v1629_v34  ;;  %v917_v34 = vld [vmem:[#allocation8 + $0x8a8] sm:$0xff]  ;;  %v360_v59 = vrot.slane %v2510_v56, %v359_v55  ;;  %v678_v55 = vld [vmem:[#allocation8 + $0x130] sm:$0xff] }
  0xd7   : > { %v705_v18 = vld [vmem:[#allocation8 + $0x208] sm:$0xff]  ;;  %v710_v27 = vld [vmem:[#allocation8 + $0x230] sm:$0xff] }
  0xd8   : > { %1676 = vmatpush1.bf16.msra.mxu0 %v1675_v4 }
  0xd9   : > { %1632 = vmatpush1.bf16.msra.mxu1 %v1631_v37  ;;  %1678 = vmatprep.subr.bf16.mxu0 %v1677_v14  ;;  %v1685_v37 = vpack.c.bf16 %v923_v35, %v917_v34  ;;  %v656_v35 = vld [vmem:[#allocation8 + $0x80] sm:$0xff] }
  0xda   : > { %1634 = vmatprep.subr.bf16.mxu1 %v1633_v46  ;;  %v1655_v46 = vpack.c.bf16 %v826_v44, %v820_v43  ;;  %v672_v43 = vld [vmem:[#allocation8 + $0x100] sm:$0xff] }
  0xdb   : > { %v1699_v50 = vpack.c.bf16 %v672_v43, %v666_v42  ;;  %v729_v43 = vld [vmem:[#allocation8 + $0x2c8] sm:$0xff] }
  0xdc   : > { %1680 = vmatpush1.bf16.msra.mxu0 %v1679_v17 }
  0xdd   : > { %1636 = vmatpush1.bf16.msra.mxu1 %v1635_v49  ;;  %1682 = vmatprep.subr.bf16.mxu0 %v1681_v26  ;;  %v1689_v49 = vpack.c.bf16 %v649_v48, %v643_v47  ;;  %v663_v26 = vld [vmem:[#allocation8 + $0xb8] sm:$0xff]  ;;  %v1793_v47 = vpack.c.bf16 %v675_v40, %v669_v39  ;;  %v668_v48 = vld [vmem:[#allocation8 + $0xe0] sm:$0xff] }
  0xde   : > { %1638 = vmatprep.subr.bf16.mxu1 %v1637_v58  ;;  %v363_v58 = vsub.s32 1, %v2507_v54  ;;  %v1789_v34 = vpack.c.bf16 %v663_v26, %v657_v25  ;;  %v721_v25 = vld [vmem:[#allocation8 + $0x288] sm:$0xff]  ;;  %v1805_v26 = vpack.c.bf16 %v711_v19, %v705_v18  ;;  %v716_v40 = vld [vmem:[#allocation8 + $0x260] sm:$0xff] }
  0xdf   : > { %v752_v19 = vld [vmem:[#allocation8 + $0x380] sm:$0xff] }
  0xe0   : > { %1684 = vmatpush1.bf16.msra.mxu0 %v1683_v28 }
  0xe1   : > { %1640 = vmatpush1.bf16.msra.mxu1 %v1639_v61  ;;  %1686 = vmatprep.subr.bf16.mxu0 %v1685_v37  ;;  %v364_v61 = vrot.slane %v2510_v56, %v363_v58 }
  0xe2   : > { %1642 = vmatprep.subr.bf16.mxu1 %v1641_v7 }
  0xe4   : > { %1688 = vmatpush1.bf16.msra.mxu0 %v1687_v41 }
  0xe5   : > { %1644 = vmatpush1.bf16.msra.mxu1 %v1643_v11  ;;  %1690 = vmatprep.subr.bf16.mxu0 %v1689_v49  ;;  %v674_v49 = vld [vmem:[#allocation8 + $0x110] sm:$0xff] }
  0xe6   : > { %1646 = vmatprep.subr.bf16.mxu1 %v1645_v20  ;;  %v644_v20 = vld [vmem:[#allocation8 + $0x20] sm:$0xff]  ;;  %v1795_v58 = vpack.c.bf16 %v674_v49, %v668_v48  ;;  %v739_v49 = vld [vmem:[#allocation8 + $0x318] sm:$0xff] }
  0xe7   : > { %v1787_v29 = vpack.c.bf16 %v650_v21, %v644_v20  ;;  %v702_v21 = vld [vmem:[#allocation8 + $0x1f0] sm:$0xff] }
  0xe9   : > { %1648 = vmatpush1.bf16.msra.mxu1 %v1647_v23  ;;  %v661_v23 = vld [vmem:[#allocation8 + $0xa8] sm:$0xff] }
  0xea   : > { %1650 = vmatprep.subr.bf16.mxu1 %v1649_v32  ;;  %v1693_v30 = vpack.c.bf16 %v661_v23, %v655_v22  ;;  %v673_v32 = vld [vmem:[#allocation8 + $0x108] sm:$0xff]  ;;  %v708_v22 = vld [vmem:[#allocation8 + $0x220] sm:$0xff] }
  0xeb   : > { %v1697_v41 = vpack.c.bf16 %v673_v32, %v667_v31  ;;  %v723_v31 = vld [vmem:[#allocation8 + $0x298] sm:$0xff] }
  0xed   : > { %1652 = vmatpush1.bf16.msra.mxu1 %v1651_v36  ;;  %v662_v36 = vld [vmem:[#allocation8 + $0xb0] sm:$0xff] }
  0xee   : > { %1654 = vmatprep.subr.bf16.mxu1 %v1653_v45  ;;  %v1791_v44 = vpack.c.bf16 %v662_v36, %v656_v35  ;;  %v679_v45 = vld [vmem:[#allocation8 + $0x138] sm:$0xff]  ;;  %v1807_v35 = vpack.c.bf16 %v710_v27, %v704_v10 }
  0xef   : > { %v727_v36 = vld [vmem:[#allocation8 + $0x2b8] sm:$0xff] }
  0xf0   : > { %v775_v27 = vld [vmem:[#allocation8 + $0x438] sm:$0xff] }
  0xf1   : > { %1656 = vmatpush1.bf16.msra.mxu1 %v1655_v46  ;;  %v685_v46 = vld [vmem:[#allocation8 + $0x168] sm:$0xff] }
  0xf2   : > { %1786 = vmatprep.subr.bf16.mxu1 %v1785_v52  ;;  %v687_v52 = vld [vmem:[#allocation8 + $0x178] sm:$0xff]  ;;  %v1701_v53 = vpack.c.bf16 %v685_v46, %v679_v45  ;;  %v726_v46 = vld [vmem:[#allocation8 + $0x2b0] sm:$0xff] }
 0x186   : > { %v457_v62 = vpop.f32.mrb[0].mxu0 }
 0x187   : > { %v458_v63 = vadd.f32 %v457_v62, %v360_v59  ;;  %v528_v1 = vpop.f32.mrb[0].mxu1  ;;  %v459_v2 = vpop.f32.mrb[1].mxu0  ;;  %v691_v59 = vld [vmem:[#allocation8 + $0x198] sm:$0xff]  ;;  %v680_v62 = vld [vmem:[#allocation8 + $0x140] sm:$0xff] }
 0x188   : > { %v529_v3 = vadd.f32 %v528_v1, %v368_v60  ;;  %v460_v4 = vadd.f32 %v459_v2, %v364_v61  ;;  %v2517_v5 = vpop.f32.mrb[1].mxu1  ;;  %v697_v60 = vld [vmem:[#allocation8 + $0x1c8] sm:$0xff]  ;;  %v1797_v61 = vpack.c.bf16 %v687_v52, %v681_v51  ;;  %v1703_v1 = vpack.c.bf16 %v684_v57, %v678_v55  ;;  %v728_v52 = vld [vmem:[#allocation8 + $0x2c0] sm:$0xff] }
 0x189   : > { %v1522_v6 = vmul.f32 -1.442695, %v458_v63  ;;  %v686_v63 = vld [vmem:[#allocation8 + $0x170] sm:$0xff]  ;;  %v693_v2 = vld [vmem:[#allocation8 + $0x1a8] sm:$0xff] }
 0x18a   : > { %v1524_v7 = vmul.f32 -1.442695, %v529_v3  ;;  %v1523_v8 = vmul.f32 -1.442695, %v460_v4  ;;  %v699_v3 = vld [vmem:[#allocation8 + $0x1d8] sm:$0xff]  ;;  %v1705_v4 = vpack.c.bf16 %v697_v60, %v691_v59  ;;  %v741_v57 = vld [vmem:[#allocation8 + $0x328] sm:$0xff] }
 0x18b   : > { %1977 = vpow2.f32 %v1522_v6  ;;  %v690_v6 = vld [vmem:[#allocation8 + $0x190] sm:$0xff] }
 0x18c   : > { %1979 = vpow2.f32 %v1524_v7  ;;  %v696_v7 = vld [vmem:[#allocation8 + $0x1c0] sm:$0xff]  ;;  %v738_v60 = vld [vmem:[#allocation8 + $0x310] sm:$0xff] }
 0x18d   : > { %1981 = vpow2.f32 %v1523_v8  ;;  %v1799_v8 = vpack.c.bf16 %v686_v63, %v680_v62  ;;  %v751_v63 = vld [vmem:[#allocation8 + $0x378] sm:$0xff] }
 0x195   : > { %v1978_v9 = vpop.eup %1977 }
 0x196   : > { %v1980_v11 = vpop.eup %1979  ;;  %v622_v13 = vadd.f32 1.0, %v1978_v9  ;;  %v703_v9 = vld [vmem:[#allocation8 + $0x1f8] sm:$0xff] }
 0x197   : > { %v1982_v12 = vpop.eup %1981  ;;  %v624_v14 = vadd.f32 1.0, %v1980_v11  ;;  %v709_v11 = vld [vmem:[#allocation8 + $0x228] sm:$0xff] }
 0x198   : > { %v623_v15 = vadd.f32 1.0, %v1982_v12  ;;  %v1801_v12 = vpack.c.bf16 %v699_v3, %v693_v2  ;;  %v1709_v20 = vpack.c.bf16 %v709_v11, %v703_v9  ;;  %v740_v3 = vld [vmem:[#allocation8 + $0x320] sm:$0xff]  ;;  %v750_v11 = vld [vmem:[#allocation8 + $0x370] sm:$0xff] }
 0x199   : > { %1983 = vrcp.f32 %v624_v14  ;;  %v698_v14 = vld [vmem:[#allocation8 + $0x1d0] sm:$0xff] }
 0x19a   : > { %1985 = vrcp.f32 %v623_v15  ;;  %v2519_v16 = vpop.f32.mrb[2].mxu0  ;;  %v1707_v15 = vpack.c.bf16 %v696_v7, %v690_v6  ;;  %v753_v7 = vld [vmem:[#allocation8 + $0x388] sm:$0xff] }
 0x19b   : > { %1987 = vrcp.f32 %v622_v13  ;;  %v2521_v17 = vpop.f32.mrb[3].mxu0  ;;  %v692_v13 = vld [vmem:[#allocation8 + $0x1a0] sm:$0xff] }
 0x19c   : > { %v1803_v23 = vpack.c.bf16 %v698_v14, %v692_v13  ;;  %v763_v14 = vld [vmem:[#allocation8 + $0x3d8] sm:$0xff] }
 0x1a3   : > { %v2523_v28 = vpop.eup %1983 }
 0x1a4   : > { %v1986_v33 = vpop.eup %1985  ;;  %1064 = vmatmul.mubr.f32.vlgmr.msra.gmra.mrb[4].mxu0 %v2523_v28 }
 0x1a5   : > { %v2526_v37 = vpop.eup %1987  ;;  %1692 = vmatpush1.bf16.msra.mxu0 %v1691_v24  ;;  %992 = vmatprep.mubr.f32.mxu1 %v1986_v33  ;;  %v715_v24 = vld [vmem:[#allocation8 + $0x258] sm:$0xff] }
 0x1a6   : > { %1134 = vmatprep.mubr.f32.mxu0 %v1986_v33  ;;  %993 = vmatmul.mubr.f32.vlgmr.msra.gmra.mrb[2].mxu1 %v2526_v37  ;;  %v1713_v32 = vpack.c.bf16 %v721_v25, %v715_v24  ;;  %v762_v25 = vld [vmem:[#allocation8 + $0x3d0] sm:$0xff] }
 0x1a7   : > { %1788 = vmatpush1.bf16.msra.mxu1 %v1787_v29  ;;  %1694 = vmatprep.subr.bf16.mxu0 %v1693_v30  ;;  %v1711_v29 = vpack.c.bf16 %v708_v22, %v702_v21  ;;  %v717_v30 = vld [vmem:[#allocation8 + $0x268] sm:$0xff] }
 0x1a8   : > { %1276 = vmatprep.mubr.f32.mxu1 %v1986_v33  ;;  %1790 = vmatprep.subr.bf16.mxu1 %v1789_v34  ;;  %v714_v33 = vld [vmem:[#allocation8 + $0x250] sm:$0xff]  ;;  %v720_v34 = vld [vmem:[#allocation8 + $0x280] sm:$0xff]  ;;  %v1809_v39 = vpack.c.bf16 %v723_v31, %v717_v30  ;;  %v765_v22 = vld [vmem:[#allocation8 + $0x3e8] sm:$0xff] }
 0x1a9   : > { %1696 = vmatpush1.bf16.msra.mxu0 %v1695_v38  ;;  %v733_v38 = vld [vmem:[#allocation8 + $0x2e8] sm:$0xff]  ;;  %v1715_v42 = vpack.c.bf16 %v720_v34, %v714_v33  ;;  %v764_v31 = vld [vmem:[#allocation8 + $0x3e0] sm:$0xff] }
 0x1aa   : > { %1698 = vmatprep.subr.bf16.mxu0 %v1697_v41  ;;  %v722_v41 = vld [vmem:[#allocation8 + $0x290] sm:$0xff]  ;;  %v1717_v45 = vpack.c.bf16 %v733_v38, %v727_v36  ;;  %v777_v34 = vld [vmem:[#allocation8 + $0x448] sm:$0xff] }
 0x1ab   : > { %1792 = vmatpush1.bf16.msra.mxu1 %v1791_v44  ;;  %v735_v44 = vld [vmem:[#allocation8 + $0x2f8] sm:$0xff]  ;;  %v1811_v48 = vpack.c.bf16 %v722_v41, %v716_v40  ;;  %v774_v38 = vld [vmem:[#allocation8 + $0x430] sm:$0xff] }
 0x1ac   : > { %1794 = vmatprep.subr.bf16.mxu1 %v1793_v47  ;;  %v732_v47 = vld [vmem:[#allocation8 + $0x2e0] sm:$0xff]  ;;  %v1813_v51 = vpack.c.bf16 %v735_v44, %v729_v43  ;;  %v787_v41 = vld [vmem:[#allocation8 + $0x498] sm:$0xff] }
 0x1ad   : > { %1700 = vmatpush1.bf16.msra.mxu0 %v1699_v50  ;;  %v745_v50 = vld [vmem:[#allocation8 + $0x348] sm:$0xff]  ;;  %v1719_v55 = vpack.c.bf16 %v732_v47, %v726_v46  ;;  %v776_v44 = vld [vmem:[#allocation8 + $0x440] sm:$0xff] }
 0x1ae   : > { %1702 = vmatprep.subr.bf16.mxu0 %v1701_v53  ;;  %v734_v53 = vld [vmem:[#allocation8 + $0x2f0] sm:$0xff]  ;;  %v1721_v59 = vpack.c.bf16 %v745_v50, %v739_v49  ;;  %v789_v47 = vld [vmem:[#allocation8 + $0x4a8] sm:$0xff] }
 0x1af   : > { %1796 = vmatpush1.bf16.msra.mxu1 %v1795_v58  ;;  %v747_v58 = vld [vmem:[#allocation8 + $0x358] sm:$0xff]  ;;  %v1815_v62 = vpack.c.bf16 %v734_v53, %v728_v52  ;;  %v786_v50 = vld [vmem:[#allocation8 + $0x490] sm:$0xff] }
 0x1b0   : > { %1798 = vmatprep.subr.bf16.mxu1 %v1797_v61  ;;  %v744_v61 = vld [vmem:[#allocation8 + $0x340] sm:$0xff]  ;;  %v1817_v2 = vpack.c.bf16 %v747_v58, %v741_v57  ;;  %v799_v53 = vld [vmem:[#allocation8 + $0x4f8] sm:$0xff] }
 0x1b1   : > { %1704 = vmatpush1.bf16.msra.mxu0 %v1703_v1  ;;  %v757_v1 = vld [vmem:[#allocation8 + $0x3a8] sm:$0xff]  ;;  %v1723_v6 = vpack.c.bf16 %v744_v61, %v738_v60  ;;  %v788_v58 = vld [vmem:[#allocation8 + $0x4a0] sm:$0xff] }
 0x1b2   : > { %1706 = vmatprep.subr.bf16.mxu0 %v1705_v4  ;;  %v746_v4 = vld [vmem:[#allocation8 + $0x350] sm:$0xff]  ;;  %v1725_v9 = vpack.c.bf16 %v757_v1, %v751_v63  ;;  %v801_v61 = vld [vmem:[#allocation8 + $0x508] sm:$0xff] }
 0x1b3   : > { %1800 = vmatpush1.bf16.msra.mxu1 %v1799_v8  ;;  %v759_v8 = vld [vmem:[#allocation8 + $0x3b8] sm:$0xff]  ;;  %v1819_v13 = vpack.c.bf16 %v746_v4, %v740_v3  ;;  %v798_v1 = vld [vmem:[#allocation8 + $0x4f0] sm:$0xff] }
 0x1b4   : > { %1802 = vmatprep.subr.bf16.mxu1 %v1801_v12  ;;  %v756_v12 = vld [vmem:[#allocation8 + $0x3a0] sm:$0xff]  ;;  %v1821_v18 = vpack.c.bf16 %v759_v8, %v753_v7  ;;  %v811_v4 = vld [vmem:[#allocation8 + $0x558] sm:$0xff] }
 0x1b5   : > { %1708 = vmatpush1.bf16.msra.mxu0 %v1707_v15  ;;  %v769_v15 = vld [vmem:[#allocation8 + $0x408] sm:$0xff]  ;;  %v1727_v21 = vpack.c.bf16 %v756_v12, %v750_v11  ;;  %v800_v8 = vld [vmem:[#allocation8 + $0x500] sm:$0xff] }
 0x1b6   : > { %1710 = vmatprep.subr.bf16.mxu0 %v1709_v20  ;;  %v758_v20 = vld [vmem:[#allocation8 + $0x3b0] sm:$0xff]  ;;  %v1729_v24 = vpack.c.bf16 %v769_v15, %v763_v14  ;;  %v813_v12 = vld [vmem:[#allocation8 + $0x568] sm:$0xff] }
 0x1b7   : > { %1804 = vmatpush1.bf16.msra.mxu1 %v1803_v23  ;;  %v771_v23 = vld [vmem:[#allocation8 + $0x418] sm:$0xff]  ;;  %v1823_v10 = vpack.c.bf16 %v758_v20, %v752_v19  ;;  %v810_v15 = vld [vmem:[#allocation8 + $0x550] sm:$0xff] }
 0x1b8   : > { %1806 = vmatprep.subr.bf16.mxu1 %v1805_v26  ;;  %v768_v26 = vld [vmem:[#allocation8 + $0x400] sm:$0xff]  ;;  %v1825_v30 = vpack.c.bf16 %v771_v23, %v765_v22  ;;  %v823_v20 = vld [vmem:[#allocation8 + $0x5b8] sm:$0xff] }
 0x1b9   : > { %1712 = vmatpush1.bf16.msra.mxu0 %v1711_v29  ;;  %v781_v29 = vld [vmem:[#allocation8 + $0x468] sm:$0xff]  ;;  %v1731_v33 = vpack.c.bf16 %v768_v26, %v762_v25  ;;  %v812_v23 = vld [vmem:[#allocation8 + $0x560] sm:$0xff] }
 0x1ba   : > { %1714 = vmatprep.subr.bf16.mxu0 %v1713_v32  ;;  %v770_v32 = vld [vmem:[#allocation8 + $0x410] sm:$0xff]  ;;  %v1733_v36 = vpack.c.bf16 %v781_v29, %v775_v27  ;;  %v825_v26 = vld [vmem:[#allocation8 + $0x5c8] sm:$0xff] }
 0x1bb   : > { %1808 = vmatpush1.bf16.msra.mxu1 %v1807_v35  ;;  %v783_v35 = vld [vmem:[#allocation8 + $0x478] sm:$0xff]  ;;  %v1827_v40 = vpack.c.bf16 %v770_v32, %v764_v31  ;;  %v822_v29 = vld [vmem:[#allocation8 + $0x5b0] sm:$0xff] }
 0x1bc   : > { %1810 = vmatprep.subr.bf16.mxu1 %v1809_v39  ;;  %v780_v39 = vld [vmem:[#allocation8 + $0x460] sm:$0xff]  ;;  %v1829_v43 = vpack.c.bf16 %v783_v35, %v777_v34  ;;  %v835_v32 = vld [vmem:[#allocation8 + $0x618] sm:$0xff] }
 0x1bd   : > { %1716 = vmatpush1.bf16.msra.mxu0 %v1715_v42  ;;  %v793_v42 = vld [vmem:[#allocation8 + $0x4c8] sm:$0xff]  ;;  %v1735_v46 = vpack.c.bf16 %v780_v39, %v774_v38  ;;  %v824_v35 = vld [vmem:[#allocation8 + $0x5c0] sm:$0xff] }
 0x1be   : > { %1718 = vmatprep.subr.bf16.mxu0 %v1717_v45  ;;  %v782_v45 = vld [vmem:[#allocation8 + $0x470] sm:$0xff]  ;;  %v1737_v49 = vpack.c.bf16 %v793_v42, %v787_v41  ;;  %v837_v39 = vld [vmem:[#allocation8 + $0x628] sm:$0xff] }
 0x1bf   : > { %1812 = vmatpush1.bf16.msra.mxu1 %v1811_v48  ;;  %v795_v48 = vld [vmem:[#allocation8 + $0x4d8] sm:$0xff]  ;;  %v1831_v52 = vpack.c.bf16 %v782_v45, %v776_v44  ;;  %v834_v42 = vld [vmem:[#allocation8 + $0x610] sm:$0xff] }
 0x1c0   : > { %1814 = vmatprep.subr.bf16.mxu1 %v1813_v51  ;;  %v792_v51 = vld [vmem:[#allocation8 + $0x4c0] sm:$0xff]  ;;  %v1833_v57 = vpack.c.bf16 %v795_v48, %v789_v47  ;;  %v847_v45 = vld [vmem:[#allocation8 + $0x678] sm:$0xff] }
 0x1c1   : > { %1720 = vmatpush1.bf16.msra.mxu0 %v1719_v55  ;;  %v805_v55 = vld [vmem:[#allocation8 + $0x528] sm:$0xff]  ;;  %v1739_v60 = vpack.c.bf16 %v792_v51, %v786_v50  ;;  %v836_v48 = vld [vmem:[#allocation8 + $0x620] sm:$0xff] }
 0x1c2   : > { %1722 = vmatprep.subr.bf16.mxu0 %v1721_v59  ;;  %v794_v59 = vld [vmem:[#allocation8 + $0x4d0] sm:$0xff]  ;;  %v1741_v63 = vpack.c.bf16 %v805_v55, %v799_v53  ;;  %v849_v51 = vld [vmem:[#allocation8 + $0x688] sm:$0xff] }
 0x1c3   : > { %1816 = vmatpush1.bf16.msra.mxu1 %v1815_v62  ;;  %v807_v62 = vld [vmem:[#allocation8 + $0x538] sm:$0xff]  ;;  %v1835_v3 = vpack.c.bf16 %v794_v59, %v788_v58  ;;  %v846_v55 = vld [vmem:[#allocation8 + $0x670] sm:$0xff] }
 0x1c4   : > { %1818 = vmatprep.subr.bf16.mxu1 %v1817_v2  ;;  %v804_v2 = vld [vmem:[#allocation8 + $0x520] sm:$0xff]  ;;  %v1837_v7 = vpack.c.bf16 %v807_v62, %v801_v61  ;;  %v859_v59 = vld [vmem:[#allocation8 + $0x6d8] sm:$0xff] }
 0x1c5   : > { %1724 = vmatpush1.bf16.msra.mxu0 %v1723_v6  ;;  %v817_v6 = vld [vmem:[#allocation8 + $0x588] sm:$0xff]  ;;  %v1743_v11 = vpack.c.bf16 %v804_v2, %v798_v1  ;;  %v848_v62 = vld [vmem:[#allocation8 + $0x680] sm:$0xff] }
 0x1c6   : > { %1726 = vmatprep.subr.bf16.mxu0 %v1725_v9  ;;  %v806_v9 = vld [vmem:[#allocation8 + $0x530] sm:$0xff]  ;;  %v1745_v14 = vpack.c.bf16 %v817_v6, %v811_v4  ;;  %v861_v2 = vld [vmem:[#allocation8 + $0x6e8] sm:$0xff] }
 0x1c7   : > { %1820 = vmatpush1.bf16.msra.mxu1 %v1819_v13  ;;  %v819_v13 = vld [vmem:[#allocation8 + $0x598] sm:$0xff]  ;;  %v1839_v19 = vpack.c.bf16 %v806_v9, %v800_v8  ;;  %v858_v6 = vld [vmem:[#allocation8 + $0x6d0] sm:$0xff] }
 0x1c8   : > { %1822 = vmatprep.subr.bf16.mxu1 %v1821_v18  ;;  %v816_v18 = vld [vmem:[#allocation8 + $0x580] sm:$0xff]  ;;  %v1841_v22 = vpack.c.bf16 %v819_v13, %v813_v12  ;;  %v871_v9 = vld [vmem:[#allocation8 + $0x738] sm:$0xff] }
 0x1c9   : > { %1728 = vmatpush1.bf16.msra.mxu0 %v1727_v21  ;;  %v829_v21 = vld [vmem:[#allocation8 + $0x5e8] sm:$0xff]  ;;  %v1747_v25 = vpack.c.bf16 %v816_v18, %v810_v15  ;;  %v860_v13 = vld [vmem:[#allocation8 + $0x6e0] sm:$0xff] }
 0x1ca   : > { %1730 = vmatprep.subr.bf16.mxu0 %v1729_v24  ;;  %v818_v24 = vld [vmem:[#allocation8 + $0x590] sm:$0xff]  ;;  %v1749_v27 = vpack.c.bf16 %v829_v21, %v823_v20  ;;  %v873_v18 = vld [vmem:[#allocation8 + $0x748] sm:$0xff]  ;;  %v876_v21 = vld [vmem:[#allocation8 + $0x760] sm:$0xff] }
 0x1cb   : > { %1824 = vmatpush1.bf16.msra.mxu1 %v1823_v10  ;;  %v831_v10 = vld [vmem:[#allocation8 + $0x5f8] sm:$0xff]  ;;  %v1843_v31 = vpack.c.bf16 %v818_v24, %v812_v23  ;;  %v870_v20 = vld [vmem:[#allocation8 + $0x730] sm:$0xff]  ;;  %v889_v24 = vld [vmem:[#allocation8 + $0x7c8] sm:$0xff] }
 0x1cc   : > { %1826 = vmatprep.subr.bf16.mxu1 %v1825_v30  ;;  %v828_v30 = vld [vmem:[#allocation8 + $0x5e0] sm:$0xff]  ;;  %v1845_v34 = vpack.c.bf16 %v831_v10, %v825_v26  ;;  %v883_v23 = vld [vmem:[#allocation8 + $0x798] sm:$0xff]  ;;  %v1767_v10 = vpack.c.bf16 %v876_v21, %v870_v20 }
 0x1cd   : > { %1732 = vmatpush1.bf16.msra.mxu0 %v1731_v33  ;;  %v841_v33 = vld [vmem:[#allocation8 + $0x648] sm:$0xff]  ;;  %v1751_v38 = vpack.c.bf16 %v828_v30, %v822_v29  ;;  %v872_v26 = vld [vmem:[#allocation8 + $0x740] sm:$0xff]  ;;  %v891_v29 = vld [vmem:[#allocation8 + $0x7d8] sm:$0xff]  ;;  %v1769_v30 = vpack.c.bf16 %v889_v24, %v883_v23 }
 0x1ce   : > { %1734 = vmatprep.subr.bf16.mxu0 %v1733_v36  ;;  %v830_v36 = vld [vmem:[#allocation8 + $0x5f0] sm:$0xff]  ;;  %v1753_v41 = vpack.c.bf16 %v841_v33, %v835_v32  ;;  %v888_v32 = vld [vmem:[#allocation8 + $0x7c0] sm:$0xff] }
 0x1cf   : > { %1828 = vmatpush1.bf16.msra.mxu1 %v1827_v40  ;;  %v843_v40 = vld [vmem:[#allocation8 + $0x658] sm:$0xff]  ;;  %v1847_v44 = vpack.c.bf16 %v830_v36, %v824_v35  ;;  %v901_v35 = vld [vmem:[#allocation8 + $0x828] sm:$0xff] }
 0x1d0   : > { %1830 = vmatprep.subr.bf16.mxu1 %v1829_v43  ;;  %v840_v43 = vld [vmem:[#allocation8 + $0x640] sm:$0xff]  ;;  %v1849_v47 = vpack.c.bf16 %v843_v40, %v837_v39  ;;  %v890_v39 = vld [vmem:[#allocation8 + $0x7d0] sm:$0xff] }
 0x1d1   : > { %1736 = vmatpush1.bf16.msra.mxu0 %v1735_v46  ;;  %v853_v46 = vld [vmem:[#allocation8 + $0x6a8] sm:$0xff]  ;;  %v1755_v50 = vpack.c.bf16 %v840_v43, %v834_v42  ;;  %v903_v42 = vld [vmem:[#allocation8 + $0x838] sm:$0xff] }
 0x1d2   : > { %1738 = vmatprep.subr.bf16.mxu0 %v1737_v49  ;;  %v842_v49 = vld [vmem:[#allocation8 + $0x650] sm:$0xff]  ;;  %v1757_v53 = vpack.c.bf16 %v853_v46, %v847_v45  ;;  %v900_v45 = vld [vmem:[#allocation8 + $0x820] sm:$0xff] }
 0x1d3   : > { %1832 = vmatpush1.bf16.msra.mxu1 %v1831_v52  ;;  %v855_v52 = vld [vmem:[#allocation8 + $0x6b8] sm:$0xff]  ;;  %v1851_v58 = vpack.c.bf16 %v842_v49, %v836_v48  ;;  %v913_v48 = vld [vmem:[#allocation8 + $0x888] sm:$0xff] }
 0x1d4   : > { %1834 = vmatprep.subr.bf16.mxu1 %v1833_v57  ;;  %v852_v57 = vld [vmem:[#allocation8 + $0x6a0] sm:$0xff]  ;;  %v1853_v61 = vpack.c.bf16 %v855_v52, %v849_v51  ;;  %v902_v51 = vld [vmem:[#allocation8 + $0x830] sm:$0xff] }
 0x1d5   : > { %1740 = vmatpush1.bf16.msra.mxu0 %v1739_v60  ;;  %v865_v60 = vld [vmem:[#allocation8 + $0x708] sm:$0xff]  ;;  %v1759_v1 = vpack.c.bf16 %v852_v57, %v846_v55  ;;  %v915_v55 = vld [vmem:[#allocation8 + $0x898] sm:$0xff] }
 0x1d6   : > { %1742 = vmatprep.subr.bf16.mxu0 %v1741_v63  ;;  %v854_v63 = vld [vmem:[#allocation8 + $0x6b0] sm:$0xff]  ;;  %v1761_v4 = vpack.c.bf16 %v865_v60, %v859_v59  ;;  %v912_v59 = vld [vmem:[#allocation8 + $0x880] sm:$0xff] }
 0x1d7   : > { %1836 = vmatpush1.bf16.msra.mxu1 %v1835_v3  ;;  %v867_v3 = vld [vmem:[#allocation8 + $0x718] sm:$0xff]  ;;  %v1855_v8 = vpack.c.bf16 %v854_v63, %v848_v62  ;;  %v925_v62 = vld [vmem:[#allocation8 + $0x8e8] sm:$0xff] }
 0x1d8   : > { %1838 = vmatprep.subr.bf16.mxu1 %v1837_v7  ;;  %v864_v7 = vld [vmem:[#allocation8 + $0x700] sm:$0xff]  ;;  %v1857_v12 = vpack.c.bf16 %v867_v3, %v861_v2  ;;  %v914_v2 = vld [vmem:[#allocation8 + $0x890] sm:$0xff] }
 0x1d9   : > { %1744 = vmatpush1.bf16.msra.mxu0 %v1743_v11  ;;  %v877_v11 = vld [vmem:[#allocation8 + $0x768] sm:$0xff]  ;;  %v1763_v15 = vpack.c.bf16 %v864_v7, %v858_v6  ;;  %v927_v6 = vld [vmem:[#allocation8 + $0x8f8] sm:$0xff] }
 0x1da   : > { %1746 = vmatprep.subr.bf16.mxu0 %v1745_v14  ;;  %v866_v14 = vld [vmem:[#allocation8 + $0x710] sm:$0xff] }
 0x1db   : > { %1840 = vmatpush1.bf16.msra.mxu1 %v1839_v19  ;;  %v879_v19 = vld [vmem:[#allocation8 + $0x778] sm:$0xff] }
 0x1dc   : > { %1842 = vmatprep.subr.bf16.mxu1 %v1841_v22  ;;  %v1859_v22 = vpack.c.bf16 %v866_v14, %v860_v13  ;;  %v920_v13 = vld [vmem:[#allocation8 + $0x8c0] sm:$0xff]  ;;  %v926_v14 = vld [vmem:[#allocation8 + $0x8f0] sm:$0xff] }
 0x1dd   : > { %1748 = vmatpush1.bf16.msra.mxu0 %v1747_v25  ;;  %v1861_v25 = vpack.c.bf16 %v879_v19, %v873_v18  ;;  %v1879_v18 = vpack.c.bf16 %v926_v14, %v920_v13  ;;  %v371_v19 = vsub.s32 3, %v2507_v54 }
 0x1de   : > { %1750 = vmatprep.subr.bf16.mxu0 %v1749_v27  ;;  %v885_v27 = vld [vmem:[#allocation8 + $0x7a8] sm:$0xff] }
 0x1df   : > { %1844 = vmatpush1.bf16.msra.mxu1 %v1843_v31  ;;  %v882_v31 = vld [vmem:[#allocation8 + $0x790] sm:$0xff]  ;;  %v1865_v36 = vpack.c.bf16 %v891_v29, %v885_v27  ;;  %v372_v20 = vrot.slane %v2510_v56, %v371_v19 }
 0x1e0   : > { %1846 = vmatprep.subr.bf16.mxu1 %v1845_v34  ;;  %v895_v34 = vld [vmem:[#allocation8 + $0x7f8] sm:$0xff]  ;;  %v1771_v40 = vpack.c.bf16 %v888_v32, %v882_v31 }
 0x1e1   : > { %1752 = vmatpush1.bf16.msra.mxu0 %v1751_v38  ;;  %v884_v38 = vld [vmem:[#allocation8 + $0x7a0] sm:$0xff]  ;;  %v1773_v43 = vpack.c.bf16 %v901_v35, %v895_v34 }
 0x1e2   : > { %1754 = vmatprep.subr.bf16.mxu0 %v1753_v41  ;;  %v897_v41 = vld [vmem:[#allocation8 + $0x808] sm:$0xff]  ;;  %v1867_v46 = vpack.c.bf16 %v890_v39, %v884_v38  ;;  %v379_v38 = vsub.s32 5, %v2507_v54 }
 0x1e3   : > { %1848 = vmatpush1.bf16.msra.mxu1 %v1847_v44  ;;  %v894_v44 = vld [vmem:[#allocation8 + $0x7f0] sm:$0xff]  ;;  %v1869_v49 = vpack.c.bf16 %v903_v42, %v897_v41 }
 0x1e4   : > { %1135 = vmatmul.mubr.f32.vlgmr.msra.gmra.mrb[6].mxu0 %v2526_v37  ;;  %1850 = vmatprep.subr.bf16.mxu1 %v1849_v47  ;;  %v907_v47 = vld [vmem:[#allocation8 + $0x858] sm:$0xff]  ;;  %v1775_v52 = vpack.c.bf16 %v900_v45, %v894_v44  ;;  %v380_v39 = vrot.slane %v2510_v56, %v379_v38 }
 0x1e5   : > { %1756 = vmatpush1.bf16.msra.mxu0 %v1755_v50  ;;  %1205 = vmatprep.mubr.f32.mxu0 %v2226_v0  ;;  %v896_v50 = vld [vmem:[#allocation8 + $0x800] sm:$0xff]  ;;  %v1777_v57 = vpack.c.bf16 %v913_v48, %v907_v47 }
 0x1e6   : > { %1277 = vmatmul.mubr.f32.vlgmr.msra.gmra.mrb[4].mxu1 %v2526_v37  ;;  %1758 = vmatprep.subr.bf16.mxu0 %v1757_v53  ;;  %v1765_v37 = vpack.c.bf16 %v877_v11, %v871_v9  ;;  %v909_v53 = vld [vmem:[#allocation8 + $0x868] sm:$0xff]  ;;  %v1871_v60 = vpack.c.bf16 %v902_v51, %v896_v50  ;;  %v924_v9 = vld [vmem:[#allocation8 + $0x8e0] sm:$0xff] }
 0x1e7   : > { %1852 = vmatpush1.bf16.msra.mxu1 %v1851_v58  ;;  %1347 = vmatprep.mubr.f32.mxu1 %v2226_v0  ;;  %v878_v0 = vld [vmem:[#allocation8 + $0x770] sm:$0xff]  ;;  %v1873_v63 = vpack.c.bf16 %v915_v55, %v909_v53  ;;  %v1528_v55 = vld [vmem:[#allocation10] ss:$0 sm:$0xff] }
 0x1e8   : > { %1854 = vmatprep.subr.bf16.mxu1 %v1853_v61  ;;  %v1863_v33 = vpack.c.bf16 %v878_v0, %v872_v26  ;;  %v906_v58 = vld [vmem:[#allocation8 + $0x850] sm:$0xff]  ;;  %v919_v61 = vld [vmem:[#allocation8 + $0x8b8] sm:$0xff] }
 0x1e9   : > { %1760 = vmatpush1.bf16.msra.mxu0 %v1759_v1  ;;  %v908_v1 = vld [vmem:[#allocation8 + $0x860] sm:$0xff]  ;;  %v1779_v3 = vpack.c.bf16 %v912_v59, %v906_v58  ;;  %v1781_v7 = vpack.c.bf16 %v925_v62, %v919_v61 }
 0x1ea   : > { %1762 = vmatprep.subr.bf16.mxu0 %v1761_v4  ;;  %v921_v4 = vld [vmem:[#allocation8 + $0x8c8] sm:$0xff]  ;;  %v1875_v11 = vpack.c.bf16 %v914_v2, %v908_v1 }
 0x1eb   : > { %1856 = vmatpush1.bf16.msra.mxu1 %v1855_v8  ;;  %v918_v8 = vld [vmem:[#allocation8 + $0x8b0] sm:$0xff] }
 0x1ec   : > { %1858 = vmatprep.subr.bf16.mxu1 %v1857_v12  ;;  %v1877_v12 = vpack.c.bf16 %v927_v6, %v921_v4 }
 0x1ed   : > { %1764 = vmatpush1.bf16.msra.mxu0 %v1763_v15  ;;  %v1783_v15 = vpack.c.bf16 %v924_v9, %v918_v8 }
 0x1ee   : > { %1766 = vmatprep.subr.bf16.mxu0 %v1765_v37  ;;  %v375_v37 = vsub.s32 4, %v2507_v54 }
 0x1ef   : > { %1860 = vmatpush1.bf16.msra.mxu1 %v1859_v22  ;;  %v531_v22 = vadd.f32 %v2517_v5, %v372_v20 }
 0x1f0   : > { %1862 = vmatprep.subr.bf16.mxu1 %v1861_v25  ;;  %v376_v21 = vrot.slane %v2510_v56, %v375_v37 }
 0x1f1   : > { %1768 = vmatpush1.bf16.msra.mxu0 %v1767_v10  ;;  %v1525_v24 = vmul.f32 -1.442695, %v531_v22 }
 0x1f2   : > { %1770 = vmatprep.subr.bf16.mxu0 %v1769_v30  ;;  %v600_v23 = vadd.f32 %v2519_v16, %v376_v21 }
 0x1f3   : > { %1864 = vmatpush1.bf16.msra.mxu1 %v1863_v33  ;;  %1989 = vpow2.f32 %v1525_v24 }
 0x1f4   : > { %1866 = vmatprep.subr.bf16.mxu1 %v1865_v36  ;;  %v1526_v25 = vmul.f32 -1.442695, %v600_v23 }
 0x1f5   : > { %1772 = vmatpush1.bf16.msra.mxu0 %v1771_v40  ;;  %v602_v40 = vadd.f32 %v2521_v17, %v380_v39 }
 0x1f6   : > { %1774 = vmatprep.subr.bf16.mxu0 %v1773_v43  ;;  %1991 = vpow2.f32 %v1526_v25 }
 0x1f7   : > { %1868 = vmatpush1.bf16.msra.mxu1 %v1867_v46  ;;  %v1527_v41 = vmul.f32 -1.442695, %v602_v40 }
 0x1f8   : > { %1870 = vmatprep.subr.bf16.mxu1 %v1869_v49 }
 0x1f9   : > { %1776 = vmatpush1.bf16.msra.mxu0 %v1775_v52 }
 0x1fa   : > { %1778 = vmatprep.subr.bf16.mxu0 %v1777_v57 }
 0x1fb   : > { %1872 = vmatpush1.bf16.msra.mxu1 %v1871_v60 }
 0x1fc   : > { %1874 = vmatprep.subr.bf16.mxu1 %v1873_v63 }
 0x1fd   : > { %1780 = vmatpush1.bf16.msra.mxu0 %v1779_v3  ;;  %v1990_v26 = vpop.eup %1989 }
 0x1fe   : > { %1782 = vmatprep.subr.bf16.mxu0 %v1781_v7  ;;  %v625_v10 = vadd.f32 1.0, %v1990_v26 }
 0x1ff   : > { %1876 = vmatpush1.bf16.msra.mxu1 %v1875_v11 }
 0x200   : > { %1878 = vmatprep.subr.bf16.mxu1 %v1877_v12  ;;  %v1992_v0 = vpop.eup %1991  ;;  %1993 = vrcp.f32 %v625_v10 }
 0x201   : > { %1784 = vmatpush1.bf16.msra.mxu0 %v1783_v15 }
 0x203   : > { %1880 = vmatpush1.bf16.msra.mxu1 %v1879_v18 }
 0x204   : > { %1206 = vmatmul.mubr.f32.vlgmr.msra.gmra.mrb[6].mxu0 %v2523_v28 }
 0x206   : > { %1348 = vmatmul.mubr.f32.vlgmr.msra.gmra.mrb[4].mxu1 %v2523_v28  ;;  %v626_v28 = vadd.f32 1.0, %v1992_v0 }
 0x208   : > { %1995 = vrcp.f32 %v626_v28 }
 0x209   : > { %1997 = vpow2.f32 %v1527_v41 }
 0x20a   : > { %v1994_v33 = vpop.eup %1993 }
 0x212   : > { %v1996_v5 = vpop.eup %1995 }
 0x213   : > { %v1998_v42 = vpop.eup %1997 }
 0x214   : > { %v627_v43 = vadd.f32 1.0, %v1998_v42 }
 0x216   : > { %1999 = vrcp.f32 %v627_v43 }
 0x220   : > { %v2000_v44 = vpop.eup %1999 }
 0x277   : > { %v1065_v27 = vpop.f32.mrb[4].mxu0 }
 0x278   : > { %v1067_v29 = vpop.f32.mrb[5].mxu0 }
 0x279   : > { %v994_v30 = vpop.f32.mrb[2].mxu1 }
 0x27a   : > { %v1066_v31 = vadd.f32 %v1065_v27, %v994_v30  ;;  %v996_v32 = vpop.f32.mrb[3].mxu1 }
 0x27b   : > { %v1068_v34 = vadd.f32 %v1067_v29, %v996_v32 }
 0x27c   : > { %v1354_v35 = vmul.f32 %v1994_v33, %v1066_v31 }
 0x27d   : > { %v1355_v16 = vmul.f32 %v1996_v5, %v1068_v34 }
 0x27f   : > { %v1357_v36 = vadd.f32 %v1355_v16, %v1354_v35 }
 0x2d7   : > { %v1207_v45 = vpop.f32.mrb[6].mxu0 }
 0x2d8   : > { %v1356_v46 = vmul.f32 %v2000_v44, %v1207_v45  ;;  %v1209_v47 = vpop.f32.mrb[7].mxu0 }
 0x2d9   : > { %v1361_v48 = vmul.f32 %v1994_v33, %v1209_v47  ;;  %v1349_v49 = vpop.f32.mrb[4].mxu1 }
 0x2da   : > { %v1362_v50 = vmul.f32 %v1996_v5, %v1349_v49  ;;  %v1351_v51 = vpop.f32.mrb[5].mxu1  ;;  %v1358_v54 = vadd.f32 %v1357_v36, %v1356_v46 }
 0x2db   : > { %v1363_v52 = vmul.f32 %v2000_v44, %v1351_v51 }
 0x2dc   : > { %v1364_v56 = vadd.f32 %v1362_v50, %v1361_v48  ;;  %1359 = vadd.xlane.f32.xlu0 %v1358_v54 }
 0x2de   : > { %v1365_v17 = vadd.f32 %v1364_v56, %v1363_v52 }
 0x2e0   : > { %1366 = vadd.xlane.f32.xlu0 %v1365_v17 }
 0x369   : > { %v1360_v53 = vpop.xlane.xlu0 %1359 }
 0x36d   : > { %v1367_v57 = vpop.xlane.xlu0 %1366 }
 0x36e   : > { %v1369_v58 = vsel %vm1368_vm1, %v1360_v53, %v1367_v57 }
 0x36f   : > { %v1371_v59 = vsel %vm1370_vm2, %v1369_v58, 0.0 }
 0x370   : > { %v1379_v60 = vadd.f32 %v1528_v55, %v1371_v59 }
 0x372   : > { %1380 = vst [vmem:[%s293_s8] sm:$0xff] %v1379_v60 }
 0x373   : > { %2156 = shalt.err (!%p2153_p0)
}
 0x374   : > { %s2157_s17 = scalar_lea.hbm %s2550_s6, 128  ;;  %s2161_s7 = scalar_lea.hbm %s2599_s5, 256 }
 0x375   : > { %p2158_p2 = scmp.ne.s32.totalorder %s2550_s6, %s2157_s17  ;;  %p2162_p10 = scmp.lt.u32.totalorder %s2550_s6, %s2599_s5 }
 0x376   : > { %p2163_p11 = scmp.lt.u32.totalorder %s2161_s7, %s2157_s17  ;;  %p2165_p6 = scmp.lt.u32.totalorder %s2157_s17, %s2550_s6 }
 0x377   : > { %p2159_p8 = pnand %p2158_p2, %p2617_p5 }
 0x378   : > { %p2164_p1 = por %p2163_p11, %p2162_p10 }
 0x379   : > { %p2160_p4 = pneg %p2159_p8 }
 0x37a   : > { %p2166_p7 = por %p2165_p6, %p2164_p1 }
 0x37c   : > { %p2167_p9 = pnand %p2166_p7, %p2160_p4 }
 0x37e   : > { %2170 = shalt.err (!%p2167_p9)
}
 0x37f   : > { %1905 = dma.vmem_to_hbm [thread:$0]  (%p2617_p5), %s2552_s22, 128, %s2550_s6, %s1382_s16  }
 0x380 PF: > { %s1407_s25 = sand.u32 1, %s2205_s18   ;;  %p2618_p12 = scmp.ne.s32.totalorder %s2610_s23, 0 }
 0x381   : > { %p2619_p3 = scmp.ge.s32.totalorder %s2217_s21, 2  ;;  %s1408_s8 = scalar_lea.sflag [#allocation4], %s1407_s25 }
 0x383   : > { %p1925_p13 = pnand %p2619_p3, %p2618_p12 }
 0x385   : > { %2200 = dma.done.wait (!%p1925_p13), %s1408_s8, 128  }
 0x386   : > { %2202 = vsyncadd (!%p1925_p13), %s1408_s8, 4294967168  ;;  %p20_p0 = scmp.ge.s32.totalorder %s2398_s28, 4   ;;  %s2620_s18 = smov %s2209_s19 }
 0x387   : > { %s2621_s19 = smov %s2213_s20  ;;  %s2622_s20 = smov %s2409_s15 }
 0x388   : > { %s2623_s21 = smov %s2398_s28  ;;  %22 = sbr.rel (!%p20_p0) target bundleno = 7 (0x7), region = 101 }
 0x38f   :  { %1413 = vsyncpa [#allocation3], 1 }
 0x390   :  { %1415 = vsyncpa [#allocation3 + $0x1], 1 }
 0x391   :  { %1416 = vsyncpa [#allocation6], 1 }
 0x392   :  { %1417 = vsyncpa [#allocation9], 1 }
 0x393   :  { %1418 = vsyncpa [#allocation4], 1 }
 0x394   :  { %1420 = vsyncpa [#allocation4 + $0x1], 1 }

// kernel: tpu_custom_call.1
= control target key start
LH: loop header
LB: loop body
LE: loop exit
PB: predicated region body
PF: predicated region fallthrough
CT: control target
= control target key end

     0   :  { %10 = vsyncpa [#allocation3], 0  ;;  %s2594_s0 = inlined_call_operand.hbm [shape: f32[16,80], index: 0, kind: input, shape index: {}]   ;;  %s2595_s1 = inlined_call_operand.hbm [shape: f32[80,768], index: 1, kind: input, shape index: {}]   ;;  %s2596_s2 = inlined_call_operand.hbm [shape: f32[1,768], index: 2, kind: input, shape index: {}]   ;;  %s2597_s3 = inlined_call_operand.hbm [shape: f32[384,768], index: 3, kind: input, shape index: {}]   ;;  %s2598_s4 = inlined_call_operand.hbm [shape: f32[1,128], index: 4, kind: input, shape index: {}]   ;;  %s2599_s5 = inlined_call_operand.hbm [shape: f32[16,128], index: 5, kind: output, shape index: {}]  }
   0x1   :  { %12 = vsyncpa [#allocation3 + $0x1], 0 }
   0x2   :  { %13 = vsyncpa [#allocation6], 0 }
   0x3   :  { %14 = vsyncpa [#allocation9], 0 }
   0x4   :  { %15 = vsyncpa [#allocation4], 0 }
   0x5   :  { %17 = vsyncpa [#allocation4 + $0x1], 0  ;;  %s2258_s18 = smov 0   ;;  %s2260_s19 = smov 0  }
   0x6   :  { %s2262_s20 = smov 0   ;;  %s2264_s21 = smov 0  }
   0x7 LB: > { %s2219_s22 = smov [#allocation5]   ;;  %s2279_s24 = sadd.s32 4294967295, %s2217_s21   ;;  %s2217_s21 = sphi %s2264_s21, %s2623_s21   ;;  %s2213_s20 = sphi %s2262_s20, %s2622_s20   ;;  %s2209_s19 = sphi %s2260_s19, %s2621_s19   ;;  %s2205_s18 = sphi %s2258_s18, %s2620_s18  }
   0x8   : > { %s176_s23 = sshll.u32 %s2219_s22, 4  ;;  %p1504_p0 = scmp.ge.s32.totalorder %s2217_s21, 1  ;;  %s2284_s23 = int_to_ptr.vmem [resolvable:$true] %s176_s23 }
   0x9   : > { %p2600_p1 = scmp.eq.s32.totalorder %s2279_s24, 0  ;;  %p164_p2 = scmp.lt.s32.totalorder %s2217_s21, 3 }
   0xa   : > { %s2220_s26 = smov [#allocation8]   ;;  %s2221_s29 = smov [#allocation7]  }
   0xb   : > { %p2286_p3 = pnand %p1504_p0, %p164_p2  ;;  %s200_s27 = sshll.u32 %s2220_s26, 4  ;;  %s2299_s27 = int_to_ptr.vmem [resolvable:$true] %s200_s27 }
   0xc   : > { %s190_s30 = sshll.u32 %s2221_s29, 4  ;;  %s2001_s8 = scalar_lea.hbm %s2595_s1, 7680  ;;  %s2301_s30 = int_to_ptr.vmem [resolvable:$true] %s190_s30 }
   0xd   : > { %s2603_s25 = scalar_select %p2286_p3, 1, 0 }
   0xe   : > { %p1907_p5 = pneg %p2286_p3  ;;  %p2002_p7 = scmp.ne.s32.totalorder %s2595_s1, %s2001_s8 }
   0xf   : > { %p2008_p11 = scmp.lt.u32.totalorder %s2001_s8, %s2595_s1 }
  0x10   : > { %p2295_p6 = pnand %p1907_p5, %p2600_p1 }
  0x12   : > { %p2311_p8 = pneg %p2295_p6 }
  0x14   : > { %p2004_p9 = pnand %p2311_p8, %p2002_p7 }
  0x16   : > { %p2005_p10 = pneg %p2004_p9 }
  0x18   : > { %p2010_p12 = pnand %p2008_p11, %p2005_p10 }
  0x1a   : > { %2013 = shalt.err (!%p2010_p12)
}
  0x1b   : > { %s2014_s14 = scalar_lea.vmem %s2284_s23, 7680  ;;  %p2022_p5 = scmp.lt.s32.totalorder %s2284_s23, %s2284_s23 }
  0x1c   : > { %p2015_p13 = scmp.ne.s32.totalorder %s2284_s23, %s2014_s14  ;;  %p2023_p4 = scmp.lt.s32.totalorder %s2014_s14, %s2014_s14 }
  0x1e   : > { %p2017_p0 = pnand %p2015_p13, %p2311_p8  ;;  %p2024_p7 = por %p2023_p4, %p2022_p5 }
  0x20   : > { %p2018_p2 = pneg %p2017_p0 }
  0x22   : > { %p2025_p9 = pnand %p2024_p7, %p2018_p2 }
  0x24   : > { %2028 = shalt.err (!%p2025_p9)
}
  0x25   : > { %s2222_s15 = smov 768   ;;  %s2223_s16 = smov 48  }
  0x26   : > { %1910 = dma.hbm_to_vmem [thread:$0]  (!%p2295_p6), %s2595_s1, 7680, %s2284_s23, [#allocation6], %s2222_s15, %s2222_s15, %s2223_s16  }
  0x27   : > { %s2029_s6 = scalar_lea.hbm %s2597_s3, 36864 }
  0x28   : > { %p2030_p4 = scmp.ne.s32.totalorder %s2597_s3, %s2029_s6  ;;  %p2036_p12 = scmp.lt.u32.totalorder %s2029_s6, %s2597_s3 }
  0x2a   : > { %p2032_p10 = pnand %p2030_p4, %p2311_p8 }
  0x2c   : > { %p2033_p11 = pneg %p2032_p10 }
  0x2e   : > { %p2038_p13 = pnand %p2036_p12, %p2033_p11 }
  0x30   : > { %2041 = shalt.err (!%p2038_p13)
}
  0x31   : > { %s2042_s23 = scalar_lea.vmem %s2299_s27, 36864  ;;  %p2050_p7 = scmp.lt.s32.totalorder %s2299_s27, %s2299_s27 }
  0x32   : > { %p2043_p0 = scmp.ne.s32.totalorder %s2299_s27, %s2042_s23  ;;  %p2051_p9 = scmp.lt.s32.totalorder %s2042_s23, %s2042_s23 }
  0x34   : > { %p2045_p2 = pnand %p2043_p0, %p2311_p8  ;;  %p2052_p4 = por %p2051_p9, %p2050_p7 }
  0x36   : > { %p2046_p5 = pneg %p2045_p2 }
  0x38   : > { %p2053_p10 = pnand %p2052_p4, %p2046_p5 }
  0x3a   : > { %2056 = shalt.err (!%p2053_p10)
}
  0x3b   : > { %1916 = dma.hbm_to_vmem [thread:$0]  (!%p2295_p6), %s2597_s3, 36864, %s2299_s27, [#allocation9], %s2222_s15, %s2222_s15, %s2223_s16  }
  0x3c   : > { %s2057_s22 = scalar_lea.hbm %s2596_s2, 96 }
  0x3d   : > { %p2058_p11 = scmp.ne.s32.totalorder %s2596_s2, %s2057_s22  ;;  %p2064_p0 = scmp.lt.u32.totalorder %s2057_s22, %s2596_s2 }
  0x3f   : > { %p2060_p12 = pnand %p2058_p11, %p2311_p8 }
  0x41   : > { %p2061_p13 = pneg %p2060_p12 }
  0x43   : > { %p2066_p2 = pnand %p2064_p0, %p2061_p13 }
  0x45   : > { %2069 = shalt.err (!%p2066_p2)
}
  0x46   : > { %s2070_s27 = scalar_lea.vmem %s2301_s30, 96  ;;  %p2078_p4 = scmp.lt.s32.totalorder %s2301_s30, %s2301_s30 }
  0x47   : > { %p2071_p5 = scmp.ne.s32.totalorder %s2301_s30, %s2070_s27  ;;  %p2079_p10 = scmp.lt.s32.totalorder %s2070_s27, %s2070_s27 }
  0x49   : > { %p2073_p7 = pnand %p2071_p5, %p2311_p8  ;;  %p2080_p11 = por %p2079_p10, %p2078_p4 }
  0x4b   : > { %p2074_p9 = pneg %p2073_p7 }
  0x4d   : > { %p2081_p12 = pnand %p2080_p11, %p2074_p9 }
  0x4f   : > { %2084 = shalt.err (!%p2081_p12)
}
  0x50   : > { %1913 = dma.hbm_to_vmem [thread:$0]  (!%p2295_p6), %s2596_s2, 96, %s2301_s30, [#allocation6]  }
  0x51   : > { %s2224_s8 = smov [#allocation10]   ;;  %s2085_s12 = scalar_lea.hbm %s2598_s4, 16 }
  0x52   : > { %s214_s9 = sshll.u32 %s2224_s8, 4  ;;  %p2086_p13 = scmp.ne.s32.totalorder %s2598_s4, %s2085_s12  ;;  %s215_s9 = int_to_ptr.vmem [resolvable:$true] %s214_s9 }
  0x53   : > { %p2092_p5 = scmp.lt.u32.totalorder %s2085_s12, %s2598_s4 }
  0x54   : > { %p2088_p0 = pnand %p2086_p13, %p2311_p8 }
  0x56   : > { %p2089_p2 = pneg %p2088_p0 }
  0x58   : > { %p2094_p7 = pnand %p2092_p5, %p2089_p2 }
  0x5a   : > { %2097 = shalt.err (!%p2094_p7)
}
  0x5b   : > { %s2098_s30 = scalar_lea.vmem %s215_s9, 16  ;;  %s2105_s26 = scalar_lea.vmem %s215_s9, 32 }
  0x5c   : > { %p2099_p9 = scmp.ne.s32.totalorder %s215_s9, %s2098_s30  ;;  %p2106_p11 = scmp.lt.s32.totalorder %s215_s9, %s215_s9 }
  0x5d   : > { %p2107_p12 = scmp.lt.s32.totalorder %s2105_s26, %s2098_s30 }
  0x5e   : > { %p2101_p4 = pnand %p2099_p9, %p2311_p8 }
  0x5f   : > { %p2108_p1 = por %p2107_p12, %p2106_p11 }
  0x60   : > { %p2102_p10 = pneg %p2101_p4 }
  0x62   : > { %p2109_p3 = pnand %p2108_p1, %p2102_p10 }
  0x64   : > { %2112 = shalt.err (!%p2109_p3)
}
  0x65   : > { %1919 = dma.hbm_to_vmem [thread:$0]  (!%p2295_p6), %s2598_s4, 16, %s215_s9, [#allocation9]  }
  0x66   : > { %s1503_s11 = sadd.s32 4294967294, %s2217_s21   ;;  %s2398_s28 = sadd.s32 1, %s2217_s21  }
  0x67   : > { %s27_s7 = ssub.s32 %s2217_s21, %s2398_s28  ;;  %s30_s27 = sadd.s32 1, %s2213_s20 }
  0x68   : > { %p28_p1 = scmp.eq.s32.totalorder %s27_s7, 0  ;;  %p37_p3 = scmp.ne.s32.totalorder %s2213_s20, %s2209_s19 }
  0x69   : > { %p38_p8 = scmp.eq.s32.totalorder %s2217_s21, 0  ;;  %p43_p13 = scmp.ne.s32.totalorder %s2209_s19, %s2205_s18 }
  0x6a   : > { %s2409_s15 = scalar_select %p28_p1, %s2213_s20, %s30_s27  }
  0x6b   : > { %p2411_p0 = por %p38_p8, %p37_p3  ;;  %p2607_p2 = scmp.eq.s32.totalorder %s2279_s24, 0 }
  0x6c   : > { %p151_p5 = scmp.eq.s32.totalorder %s2279_s24, 1  ;;  %p157_p7 = scmp.eq.s32.totalorder %s1503_s11, 1 }
  0x6d   : > { %p2417_p6 = por %p2607_p2, %p43_p13  ;;  %p1932_p9 = scmp.lt.s32.totalorder %s2217_s21, 2 }
  0x6e   : > { %s225_s9 = sand.u32 1, %s2213_s20   ;;  %p2424_p4 = por %p151_p5, %p37_p3 }
  0x6f   : > { %p2428_p10 = por %p157_p7, %p43_p13  ;;  %s1510_s12 = sshll.u32 %s225_s9, 3 }
  0x70   : > { %s2609_s10 = scalar_select %p2424_p4, 1, 0 }
  0x71   : > { %s2610_s23 = scalar_select %p2428_p10, 1, 0 }
  0x72   : > { %s1511_s13 = sshll.u32 %s2217_s21, 7  ;;  %s229_s30 = scalar_lea.vmem [#allocation2], %s1510_s12 }
  0x73   : > { %s2436_s22 = scalar_lea.hbm %s2594_s0, %s1511_s13  ;;  %s236_s26 = sshll.u32 %s229_s30, 4  ;;  %s2438_s26 = int_to_ptr.vmem [resolvable:$true] %s236_s26 }
  0x74   : > { %p2442_p11 = pnand %p1932_p9, %p2411_p0  ;;  %s226_s6 = scalar_lea.sflag [#allocation3], %s225_s9 }
  0x75   : > { %s2113_s11 = scalar_lea.hbm %s2436_s22, 128  ;;  %s2118_s12 = scalar_lea.hbm %s2594_s0, 256 }
  0x76   : > { %p2114_p12 = scmp.ne.s32.totalorder %s2436_s22, %s2113_s11  ;;  %p2115_p1 = pneg %p2442_p11 }
  0x77   : > { %p2119_p13 = scmp.lt.u32.totalorder %s2436_s22, %s2594_s0  ;;  %p2120_p0 = scmp.lt.u32.totalorder %s2118_s12, %s2113_s11 }
  0x78   : > { %p2116_p3 = pnand %p2115_p1, %p2114_p12  ;;  %p2122_p5 = scmp.lt.u32.totalorder %s2113_s11, %s2436_s22 }
  0x79   : > { %p2121_p2 = por %p2120_p0, %p2119_p13 }
  0x7a   : > { %p2117_p8 = pneg %p2116_p3 }
  0x7b   : > { %p2123_p7 = por %p2122_p5, %p2121_p2 }
  0x7d   : > { %p2124_p9 = pnand %p2123_p7, %p2117_p8 }
  0x7f   : > { %2127 = shalt.err (!%p2124_p9)
}
  0x80   : > { %s2128_s9 = scalar_lea.vmem %s2438_s26, 128  ;;  %s2225_s14 = smov [#allocation2]  }
  0x81   : > { %p2129_p12 = scmp.ne.s32.totalorder %s2438_s26, %s2128_s9  ;;  %s2133_s17 = sshll.u32 %s2225_s14, 4  ;;  %s2134_s17 = int_to_ptr.vmem [resolvable:$false] %s2133_s17 }
  0x82   : > { %s2135_s30 = scalar_lea.vmem %s2134_s17, 256  ;;  %p2136_p4 = scmp.lt.s32.totalorder %s2438_s26, %s2134_s17 }
  0x83   : > { %p2131_p3 = pnand %p2129_p12, %p2115_p1  ;;  %p2137_p13 = scmp.lt.s32.totalorder %s2135_s30, %s2128_s9 }
  0x85   : > { %p2132_p10 = pneg %p2131_p3  ;;  %p2138_p0 = por %p2137_p13, %p2136_p4 }
  0x87   : > { %p2139_p2 = pnand %p2138_p0, %p2132_p10 }
  0x89   : > { %2142 = shalt.err (!%p2139_p2)
}
  0x8a   : > { %1923 = dma.hbm_to_vmem [thread:$0]  (!%p2442_p11), %s2436_s22, 128, %s2438_s26, %s226_s6  }
  0x8b   : > { %p2612_p8 = scmp.ne.s32.totalorder %s2603_s25, 0 }
  0x8c   : > { %s2474_s11 = sand.u32 (!%p2612_p8), 1, %s2209_s19  }
  0x8d   : > { %245 = sbr.rel (%p2612_p8) target bundleno = 896 (0x380), region = 40  ;;  %s1513_s7 = sshll.u32 (!%p2612_p8), %s2474_s11, 3 }
  0x8e   : > { %s248_s27 = scalar_lea.sflag (!%p2612_p8), [#allocation3], %s2474_s11  ;;  %s2480_s12 = scalar_lea.vmem (!%p2612_p8), [#allocation2], %s1513_s7 }
  0x94   : > { %2188 = dma.done.wait (%p2417_p6), %s248_s27, 128  }
  0x95   : > { %2190 = vsyncadd (%p2417_p6), %s248_s27, 4294967168  ;;  %p2613_p4 = scmp.eq.s32.totalorder %s2279_s24, 0 }
  0x97   : > { %2192 = dma.done.wait (%p2613_p4), [#allocation6], 7776   ;;  %p2614_p10 = pmov %p2613_p4 }
  0x98   : > { %p2615_p11 = pmov %p2613_p4 }
  0x99   : > { %2194 = vsyncadd (%p2614_p10), [#allocation6], 4294959520 }
  0x9a   : > { %2196 = dma.done.wait (%p2615_p11), [#allocation9], 36880   ;;  %p2616_p1 = pmov %p2613_p4 }
  0x9b   : > { %v2226_v0 = vmov 0.0   ;;  %v296_v1 = vld [vmem:[#allocation5 + $0x8] sm:$0xff]  ;;  %v302_v2 = vld [vmem:[#allocation5 + $0x38] sm:$0xff]  ;;  %v295_v6 = vld [vmem:[#allocation5] sm:$0xff]  ;;  %vm387_vm0 = vcmask 654336   ;;  %vm1368_vm1 = vcmask 7168  }
  0x9c   : > { %2198 = vsyncadd (%p2616_p1), [#allocation9], 4294930416  ;;  %455 = vmatprep.mubr.f32.mxu0 %v2226_v0  ;;  %526 = vmatprep.mubr.f32.mxu1 %v2226_v0  ;;  %v298_v3 = vld [vmem:[#allocation5 + $0x18] sm:$0xff]  ;;  %v1533_v4 = vpack.c.bf16 %v302_v2, %v296_v1  ;;  %v304_v5 = vld [vmem:[#allocation5 + $0x48] sm:$0xff]  ;;  %vm1370_vm2 = vcmask 15360   ;;  %s1530_s25 = sshll.u32 %s2279_s24, 7 }
  0x9d   : > { %v301_v7 = vld [vmem:[#allocation5 + $0x30] sm:$0xff]  ;;  %v1553_v8 = vpack.c.bf16 %v304_v5, %v298_v3  ;;  %v303_v11 = vld [vmem:[#allocation5 + $0x40] sm:$0xff]  ;;  %v308_v12 = vld [vmem:[#allocation5 + $0x68] sm:$0xff]  ;;  %s293_s8 = scalar_lea.vmem [#allocation11], %s1513_s7  ;;  %s2550_s6 = scalar_lea.hbm %s2599_s5, %s1530_s25 }
  0x9e   : > { %v1535_v9 = vpack.c.bf16 %v301_v7, %v295_v6  ;;  %v297_v10 = vld [vmem:[#allocation5 + $0x10] sm:$0xff]  ;;  %1534 = vmatprep.subr.bf16.mxu0 %v1533_v4  ;;  %v314_v14 = vld [vmem:[#allocation5 + $0x98] sm:$0xff]  ;;  %v316_v16 = vld [vmem:[#allocation5 + $0xa8] sm:$0xff]  ;;  %s1395_s22 = sshll.u32 %s293_s8, 4  ;;  %s1382_s16 = scalar_lea.sflag [#allocation4], %s2474_s11  ;;  %s2552_s22 = int_to_ptr.vmem [resolvable:$true] %s1395_s22 }
  0x9f   : > { %v1555_v13 = vpack.c.bf16 %v303_v11, %v297_v10  ;;  %v310_v15 = vld [vmem:[#allocation5 + $0x78] sm:$0xff]  ;;  %1554 = vmatprep.subr.bf16.mxu1 %v1553_v8  ;;  %v1537_v17 = vpack.c.bf16 %v314_v14, %v308_v12  ;;  %v307_v19 = vld [vmem:[#allocation5 + $0x60] sm:$0xff]  ;;  %v313_v20 = vld [vmem:[#allocation5 + $0x90] sm:$0xff]  ;;  %s2143_s13 = scalar_lea.vmem %s2552_s22, 128  ;;  %p2617_p5 = scmp.ne.s32.totalorder %s2609_s10, 0 }
  0xa0   : > { %1536 = vmatpush1.bf16.msra.mxu0 %v1535_v9  ;;  %v1557_v18 = vpack.c.bf16 %v316_v16, %v310_v15  ;;  %v309_v21 = vld [vmem:[#allocation5 + $0x70] sm:$0xff]  ;;  %v1539_v22 = vpack.c.bf16 %v313_v20, %v307_v19  ;;  %v315_v23 = vld [vmem:[#allocation5 + $0xa0] sm:$0xff]  ;;  %v320_v24 = vld [vmem:[#allocation5 + $0xc8] sm:$0xff]  ;;  %p2144_p6 = scmp.ne.s32.totalorder %s2552_s22, %s2143_s13  ;;  %s2227_s24 = smov [#allocation11]  }
  0xa1   : > { %1556 = vmatpush1.bf16.msra.mxu1 %v1555_v13  ;;  %v326_v25 = vld [vmem:[#allocation5 + $0xf8] sm:$0xff]  ;;  %1538 = vmatprep.subr.bf16.mxu0 %v1537_v17  ;;  %v1559_v26 = vpack.c.bf16 %v315_v23, %v309_v21  ;;  %v328_v29 = vld [vmem:[#allocation5 + $0x108] sm:$0xff]  ;;  %v319_v30 = vld [vmem:[#allocation5 + $0xc0] sm:$0xff]  ;;  %s2147_s9 = sshll.u32 %s2227_s24, 4  ;;  %s2148_s9 = int_to_ptr.vmem [resolvable:$false] %s2147_s9 }
  0xa2   : > { %1558 = vmatprep.subr.bf16.mxu1 %v1557_v18  ;;  %v1541_v27 = vpack.c.bf16 %v326_v25, %v320_v24  ;;  %v322_v28 = vld [vmem:[#allocation5 + $0xd8] sm:$0xff]  ;;  %v325_v32 = vld [vmem:[#allocation5 + $0xf0] sm:$0xff]  ;;  %v327_v34 = vld [vmem:[#allocation5 + $0x100] sm:$0xff]  ;;  %p2145_p7 = pnand %p2144_p6, %p2617_p5  ;;  %s2149_s14 = scalar_lea.vmem %s2148_s9, 256 }
  0xa3   : > { %v1561_v31 = vpack.c.bf16 %v328_v29, %v322_v28  ;;  %v321_v33 = vld [vmem:[#allocation5 + $0xd0] sm:$0xff]  ;;  %v1543_v35 = vpack.c.bf16 %v325_v32, %v319_v30  ;;  %v332_v36 = vld [vmem:[#allocation5 + $0x128] sm:$0xff]  ;;  %v338_v37 = vld [vmem:[#allocation5 + $0x158] sm:$0xff]  ;;  %p2150_p12 = scmp.lt.s32.totalorder %s2552_s22, %s2148_s9  ;;  %p2151_p3 = scmp.lt.s32.totalorder %s2149_s14, %s2143_s13 }
  0xa4   : > { %1540 = vmatpush1.bf16.msra.mxu0 %v1539_v22  ;;  %v334_v38 = vld [vmem:[#allocation5 + $0x138] sm:$0xff]  ;;  %v1563_v39 = vpack.c.bf16 %v327_v34, %v321_v33  ;;  %v1545_v40 = vpack.c.bf16 %v338_v37, %v332_v36  ;;  %v340_v41 = vld [vmem:[#allocation5 + $0x168] sm:$0xff]  ;;  %v331_v42 = vld [vmem:[#allocation5 + $0x120] sm:$0xff]  ;;  %p2146_p9 = pneg %p2145_p7 }
  0xa5   : > { %1560 = vmatpush1.bf16.msra.mxu1 %v1559_v26  ;;  %1542 = vmatprep.subr.bf16.mxu0 %v1541_v27  ;;  %v337_v43 = vld [vmem:[#allocation5 + $0x150] sm:$0xff]  ;;  %v1565_v44 = vpack.c.bf16 %v340_v41, %v334_v38  ;;  %v339_v46 = vld [vmem:[#allocation5 + $0x160] sm:$0xff]  ;;  %v344_v47 = vld [vmem:[#allocation5 + $0x188] sm:$0xff]  ;;  %p2152_p13 = por %p2151_p3, %p2150_p12 }
  0xa6   : > { %1562 = vmatprep.subr.bf16.mxu1 %v1561_v31  ;;  %v333_v45 = vld [vmem:[#allocation5 + $0x130] sm:$0xff]  ;;  %v350_v48 = vld [vmem:[#allocation5 + $0x1b8] sm:$0xff]  ;;  %v352_v50 = vld [vmem:[#allocation5 + $0x1c8] sm:$0xff]  ;;  %v1547_v51 = vpack.c.bf16 %v337_v43, %v331_v42 }
  0xa7   : > { %v346_v49 = vld [vmem:[#allocation5 + $0x198] sm:$0xff]  ;;  %v1567_v52 = vpack.c.bf16 %v339_v46, %v333_v45  ;;  %v1549_v53 = vpack.c.bf16 %v350_v48, %v344_v47  ;;  %v343_v54 = vld [vmem:[#allocation5 + $0x180] sm:$0xff]  ;;  %v349_v55 = vld [vmem:[#allocation5 + $0x1b0] sm:$0xff]  ;;  %p2153_p0 = pnand %p2152_p13, %p2146_p9 }
  0xa8   : > { %1544 = vmatpush1.bf16.msra.mxu0 %v1543_v35  ;;  %v1569_v56 = vpack.c.bf16 %v352_v50, %v346_v49  ;;  %v345_v57 = vld [vmem:[#allocation5 + $0x190] sm:$0xff]  ;;  %v351_v58 = vld [vmem:[#allocation5 + $0x1c0] sm:$0xff]  ;;  %v1551_v61 = vpack.c.bf16 %v349_v55, %v343_v54  ;;  %v300_v2 = vld [vmem:[#allocation5 + $0x28] sm:$0xff] }
  0xa9   : > { %1564 = vmatpush1.bf16.msra.mxu1 %v1563_v39  ;;  %1546 = vmatprep.subr.bf16.mxu0 %v1545_v40  ;;  %v641_v59 = vld [vmem:[#allocation8 + $0x8] sm:$0xff]  ;;  %v647_v60 = vld [vmem:[#allocation8 + $0x38] sm:$0xff]  ;;  %v1571_v62 = vpack.c.bf16 %v351_v58, %v345_v57  ;;  %v640_v63 = vld [vmem:[#allocation8] sm:$0xff] }
  0xaa   : > { %1566 = vmatprep.subr.bf16.mxu1 %v1565_v44  ;;  %v646_v1 = vld [vmem:[#allocation8 + $0x30] sm:$0xff]  ;;  %v1593_v3 = vpack.c.bf16 %v647_v60, %v641_v59  ;;  %v299_v5 = vld [vmem:[#allocation5 + $0x20] sm:$0xff]  ;;  %v653_v7 = vld [vmem:[#allocation8 + $0x68] sm:$0xff] }
  0xab   : > { %v306_v4 = vld [vmem:[#allocation5 + $0x58] sm:$0xff]  ;;  %v305_v6 = vld [vmem:[#allocation5 + $0x50] sm:$0xff]  ;;  %v312_v12 = vld [vmem:[#allocation5 + $0x88] sm:$0xff]  ;;  %v1595_v14 = vpack.c.bf16 %v646_v1, %v640_v63 }
  0xac   : > { %1548 = vmatpush1.bf16.msra.mxu0 %v1547_v51  ;;  %v659_v8 = vld [vmem:[#allocation8 + $0x98] sm:$0xff]  ;;  %v1573_v9 = vpack.c.bf16 %v306_v4, %v300_v2  ;;  %v1575_v11 = vpack.c.bf16 %v305_v6, %v299_v5  ;;  %v317_v17 = vld [vmem:[#allocation5 + $0xb0] sm:$0xff]  ;;  %v652_v19 = vld [vmem:[#allocation8 + $0x60] sm:$0xff] }
  0xad   : > { %1568 = vmatpush1.bf16.msra.mxu1 %v1567_v52  ;;  %1550 = vmatprep.subr.bf16.mxu0 %v1549_v53  ;;  %v2497_v10 = vld [vmem:[%s2480_s12] sm:$0xff]  ;;  %v311_v16 = vld [vmem:[#allocation5 + $0x80] sm:$0xff]  ;;  %v1597_v18 = vpack.c.bf16 %v659_v8, %v653_v7  ;;  %v324_v23 = vld [vmem:[#allocation5 + $0xe8] sm:$0xff] }
  0xae   : > { %1570 = vmatprep.subr.bf16.mxu1 %v1569_v56  ;;  %v318_v13 = vld [vmem:[#allocation5 + $0xb8] sm:$0xff]  ;;  %v665_v21 = vld [vmem:[#allocation8 + $0xc8] sm:$0xff]  ;;  %v1579_v25 = vpack.c.bf16 %v317_v17, %v311_v16  ;;  %v664_v27 = vld [vmem:[#allocation8 + $0xc0] sm:$0xff] }
  0xaf   : > { %v1577_v15 = vpack.c.bf16 %v318_v13, %v312_v12  ;;  %v658_v20 = vld [vmem:[#allocation8 + $0x90] sm:$0xff]  ;;  %v671_v22 = vld [vmem:[#allocation8 + $0xf8] sm:$0xff]  ;;  %v336_v33 = vld [vmem:[#allocation5 + $0x148] sm:$0xff] }
  0xb0   : > { %1552 = vmatpush1.bf16.msra.mxu0 %v1551_v61  ;;  %v330_v24 = vld [vmem:[#allocation5 + $0x118] sm:$0xff]  ;;  %v1599_v26 = vpack.c.bf16 %v658_v20, %v652_v19  ;;  %v323_v29 = vld [vmem:[#allocation5 + $0xe0] sm:$0xff]  ;;  %v329_v30 = vld [vmem:[#allocation5 + $0x110] sm:$0xff]  ;;  %v1601_v31 = vpack.c.bf16 %v671_v22, %v665_v21 }
  0xb1   : > { %1572 = vmatpush1.bf16.msra.mxu1 %v1571_v62  ;;  %1574 = vmatprep.subr.bf16.mxu0 %v1573_v9  ;;  %v1581_v28 = vpack.c.bf16 %v330_v24, %v324_v23  ;;  %v670_v32 = vld [vmem:[#allocation8 + $0xf0] sm:$0xff]  ;;  %v677_v35 = vld [vmem:[#allocation8 + $0x128] sm:$0xff]  ;;  %v683_v36 = vld [vmem:[#allocation8 + $0x158] sm:$0xff]  ;;  %v1583_v37 = vpack.c.bf16 %v329_v30, %v323_v29 }
  0xb2   : > { %1594 = vmatprep.subr.bf16.mxu1 %v1593_v3  ;;  %v342_v34 = vld [vmem:[#allocation5 + $0x178] sm:$0xff]  ;;  %v1603_v38 = vpack.c.bf16 %v670_v32, %v664_v27  ;;  %v676_v39 = vld [vmem:[#allocation8 + $0x120] sm:$0xff]  ;;  %v341_v42 = vld [vmem:[#allocation5 + $0x170] sm:$0xff]  ;;  %v1605_v43 = vpack.c.bf16 %v683_v36, %v677_v35 }
  0xb3   : > { %1519 = vmatmul.mubr.msk.f32.vlgmr.msra.gmra.mrb[0].mxu0 %vm387_vm0, %v2497_v10  ;;  %v1585_v40 = vpack.c.bf16 %v342_v34, %v336_v33  ;;  %v335_v41 = vld [vmem:[#allocation5 + $0x140] sm:$0xff]  ;;  %v682_v44 = vld [vmem:[#allocation8 + $0x150] sm:$0xff]  ;;  %v348_v45 = vld [vmem:[#allocation5 + $0x1a8] sm:$0xff] }
  0xb4   : > { %1520 = vmatmul.mubr.msk.f32.vlgmr.msra.gmra.mrb[0].mxu1 %vm387_vm0, %v2497_v10  ;;  %1576 = vmatpush1.bf16.msra.mxu0 %v1575_v11  ;;  %v354_v46 = vld [vmem:[#allocation5 + $0x1d8] sm:$0xff]  ;;  %v689_v47 = vld [vmem:[#allocation8 + $0x188] sm:$0xff]  ;;  %v1587_v49 = vpack.c.bf16 %v341_v42, %v335_v41  ;;  %v1607_v50 = vpack.c.bf16 %v682_v44, %v676_v39  ;;  %v688_v51 = vld [vmem:[#allocation8 + $0x180] sm:$0xff] }
  0xb5   : > { %1596 = vmatpush1.bf16.msra.mxu1 %v1595_v14  ;;  %1578 = vmatprep.subr.bf16.mxu0 %v1577_v15  ;;  %v695_v48 = vld [vmem:[#allocation8 + $0x1b8] sm:$0xff]  ;;  %v1589_v52 = vpack.c.bf16 %v354_v46, %v348_v45  ;;  %v353_v54 = vld [vmem:[#allocation5 + $0x1d0] sm:$0xff]  ;;  %v832_v1 = vld [vmem:[#allocation8 + $0x600] sm:$0xff] }
  0xb6   : > { %1598 = vmatprep.subr.bf16.mxu1 %v1597_v18  ;;  %597 = vmatprep.mubr.f32.mxu0 %v2226_v0  ;;  %v347_v53 = vld [vmem:[#allocation5 + $0x1a0] sm:$0xff]  ;;  %v1609_v55 = vpack.c.bf16 %v695_v48, %v689_v47  ;;  %v694_v56 = vld [vmem:[#allocation8 + $0x1b0] sm:$0xff]  ;;  %v833_v57 = vld [vmem:[#allocation8 + $0x608] sm:$0xff] }
  0xb7   : > { %v839_v58 = vld [vmem:[#allocation8 + $0x638] sm:$0xff]  ;;  %v701_v59 = vld [vmem:[#allocation8 + $0x1e8] sm:$0xff]  ;;  %v1591_v61 = vpack.c.bf16 %v353_v54, %v347_v53  ;;  %v1611_v62 = vpack.c.bf16 %v694_v56, %v688_v51  ;;  %v838_v2 = vld [vmem:[#allocation8 + $0x630] sm:$0xff] }
  0xb8   : > { %1580 = vmatpush1.bf16.msra.mxu0 %v1579_v25  ;;  %v707_v60 = vld [vmem:[#allocation8 + $0x218] sm:$0xff]  ;;  %v1657_v63 = vpack.c.bf16 %v839_v58, %v833_v57  ;;  %v700_v4 = vld [vmem:[#allocation8 + $0x1e0] sm:$0xff]  ;;  %v706_v5 = vld [vmem:[#allocation8 + $0x210] sm:$0xff]  ;;  %v1659_v8 = vpack.c.bf16 %v838_v2, %v832_v1 }
  0xb9   : > { %1600 = vmatpush1.bf16.msra.mxu1 %v1599_v26  ;;  %1582 = vmatprep.subr.bf16.mxu0 %v1581_v28  ;;  %v1613_v3 = vpack.c.bf16 %v707_v60, %v701_v59  ;;  %v713_v6 = vld [vmem:[#allocation8 + $0x248] sm:$0xff]  ;;  %v719_v7 = vld [vmem:[#allocation8 + $0x278] sm:$0xff]  ;;  %v1615_v9 = vpack.c.bf16 %v706_v5, %v700_v4  ;;  %v712_v12 = vld [vmem:[#allocation8 + $0x240] sm:$0xff] }
  0xba   : > { %1602 = vmatprep.subr.bf16.mxu1 %v1601_v31  ;;  %v1617_v11 = vpack.c.bf16 %v719_v7, %v713_v6  ;;  %v718_v13 = vld [vmem:[#allocation8 + $0x270] sm:$0xff]  ;;  %v725_v14 = vld [vmem:[#allocation8 + $0x2a8] sm:$0xff]  ;;  %v731_v15 = vld [vmem:[#allocation8 + $0x2d8] sm:$0xff] }
  0xbb   : > { %v1619_v16 = vpack.c.bf16 %v718_v13, %v712_v12  ;;  %v1621_v17 = vpack.c.bf16 %v731_v15, %v725_v14  ;;  %v724_v18 = vld [vmem:[#allocation8 + $0x2a0] sm:$0xff]  ;;  %v730_v19 = vld [vmem:[#allocation8 + $0x2d0] sm:$0xff]  ;;  %v737_v20 = vld [vmem:[#allocation8 + $0x308] sm:$0xff] }
  0xbc   : > { %1584 = vmatpush1.bf16.msra.mxu0 %v1583_v37  ;;  %v743_v21 = vld [vmem:[#allocation8 + $0x338] sm:$0xff]  ;;  %v1623_v22 = vpack.c.bf16 %v730_v19, %v724_v18  ;;  %v736_v24 = vld [vmem:[#allocation8 + $0x300] sm:$0xff]  ;;  %v742_v25 = vld [vmem:[#allocation8 + $0x330] sm:$0xff] }
  0xbd   : > { %1604 = vmatpush1.bf16.msra.mxu1 %v1603_v38  ;;  %1586 = vmatprep.subr.bf16.mxu0 %v1585_v40  ;;  %v1625_v23 = vpack.c.bf16 %v743_v21, %v737_v20  ;;  %v1627_v26 = vpack.c.bf16 %v742_v25, %v736_v24  ;;  %v851_v27 = vld [vmem:[#allocation8 + $0x698] sm:$0xff]  ;;  %v844_v29 = vld [vmem:[#allocation8 + $0x660] sm:$0xff]  ;;  %v850_v30 = vld [vmem:[#allocation8 + $0x690] sm:$0xff] }
  0xbe   : > { %1606 = vmatprep.subr.bf16.mxu1 %v1605_v43  ;;  %v1663_v31 = vpack.c.bf16 %v850_v30, %v844_v29  ;;  %v749_v32 = vld [vmem:[#allocation8 + $0x368] sm:$0xff]  ;;  %v755_v33 = vld [vmem:[#allocation8 + $0x398] sm:$0xff]  ;;  %v748_v35 = vld [vmem:[#allocation8 + $0x360] sm:$0xff] }
  0xbf   : > { %v1629_v34 = vpack.c.bf16 %v755_v33, %v749_v32  ;;  %v754_v36 = vld [vmem:[#allocation8 + $0x390] sm:$0xff]  ;;  %v857_v38 = vld [vmem:[#allocation8 + $0x6c8] sm:$0xff]  ;;  %v863_v39 = vld [vmem:[#allocation8 + $0x6f8] sm:$0xff] }
  0xc0   : > { %1588 = vmatpush1.bf16.msra.mxu0 %v1587_v49  ;;  %v1631_v37 = vpack.c.bf16 %v754_v36, %v748_v35  ;;  %v1665_v40 = vpack.c.bf16 %v863_v39, %v857_v38  ;;  %v856_v41 = vld [vmem:[#allocation8 + $0x6c0] sm:$0xff]  ;;  %v862_v42 = vld [vmem:[#allocation8 + $0x6f0] sm:$0xff]  ;;  %v761_v44 = vld [vmem:[#allocation8 + $0x3c8] sm:$0xff] }
  0xc1   : > { %1608 = vmatpush1.bf16.msra.mxu1 %v1607_v50  ;;  %1590 = vmatprep.subr.bf16.mxu0 %v1589_v52  ;;  %v1667_v43 = vpack.c.bf16 %v862_v42, %v856_v41  ;;  %v767_v45 = vld [vmem:[#allocation8 + $0x3f8] sm:$0xff]  ;;  %v760_v47 = vld [vmem:[#allocation8 + $0x3c0] sm:$0xff]  ;;  %v766_v48 = vld [vmem:[#allocation8 + $0x3f0] sm:$0xff] }
  0xc2   : > { %1610 = vmatprep.subr.bf16.mxu1 %v1609_v55  ;;  %v1633_v46 = vpack.c.bf16 %v767_v45, %v761_v44  ;;  %v1635_v49 = vpack.c.bf16 %v766_v48, %v760_v47  ;;  %v869_v50 = vld [vmem:[#allocation8 + $0x728] sm:$0xff]  ;;  %v875_v51 = vld [vmem:[#allocation8 + $0x758] sm:$0xff]  ;;  %v868_v53 = vld [vmem:[#allocation8 + $0x720] sm:$0xff] }
  0xc3   : > { %v1669_v52 = vpack.c.bf16 %v875_v51, %v869_v50  ;;  %v874_v54 = vld [vmem:[#allocation8 + $0x750] sm:$0xff]  ;;  %v773_v56 = vld [vmem:[#allocation8 + $0x428] sm:$0xff]  ;;  %v779_v57 = vld [vmem:[#allocation8 + $0x458] sm:$0xff] }
  0xc4   : > { %1592 = vmatpush1.bf16.msra.mxu0 %v1591_v61  ;;  %v1671_v55 = vpack.c.bf16 %v874_v54, %v868_v53  ;;  %v1637_v58 = vpack.c.bf16 %v779_v57, %v773_v56  ;;  %v772_v59 = vld [vmem:[#allocation8 + $0x420] sm:$0xff]  ;;  %v778_v60 = vld [vmem:[#allocation8 + $0x450] sm:$0xff]  ;;  %v785_v5 = vld [vmem:[#allocation8 + $0x488] sm:$0xff]  ;;  %v357_v53 = vlaneseq }
  0xc5   : > { %1612 = vmatpush1.bf16.msra.mxu1 %v1611_v62  ;;  %1658 = vmatprep.subr.bf16.mxu0 %v1657_v63  ;;  %v1639_v61 = vpack.c.bf16 %v778_v60, %v772_v59  ;;  %v881_v62 = vld [vmem:[#allocation8 + $0x788] sm:$0xff]  ;;  %v887_v63 = vld [vmem:[#allocation8 + $0x7b8] sm:$0xff]  ;;  %v880_v2 = vld [vmem:[#allocation8 + $0x780] sm:$0xff] }
  0xc6   : > { %1614 = vmatprep.subr.bf16.mxu1 %v1613_v3  ;;  %v1673_v1 = vpack.c.bf16 %v887_v63, %v881_v62  ;;  %v886_v3 = vld [vmem:[#allocation8 + $0x7b0] sm:$0xff]  ;;  %v791_v6 = vld [vmem:[#allocation8 + $0x4b8] sm:$0xff]  ;;  %v893_v12 = vld [vmem:[#allocation8 + $0x7e8] sm:$0xff]  ;;  %v2507_v54 = vshrl.u32 %v357_v53, 7 }
  0xc7   : > { %1521 = vmatmul.mubr.msk.f32.vlgmr.msra.gmra.mrb[2].mxu0 %vm387_vm0, %v2497_v10  ;;  %v845_v10 = vld [vmem:[#allocation8 + $0x668] sm:$0xff]  ;;  %v1675_v4 = vpack.c.bf16 %v886_v3, %v880_v2  ;;  %v1641_v7 = vpack.c.bf16 %v791_v6, %v785_v5  ;;  %v899_v13 = vld [vmem:[#allocation8 + $0x818] sm:$0xff]  ;;  %v892_v15 = vld [vmem:[#allocation8 + $0x7e0] sm:$0xff] }
  0xc8   : > { %1660 = vmatpush1.bf16.msra.mxu0 %v1659_v8  ;;  %1063 = vmatprep.mubr.f32.mxu0 %v2226_v0  ;;  %v1661_v28 = vpack.c.bf16 %v851_v27, %v845_v10  ;;  %v784_v8 = vld [vmem:[#allocation8 + $0x480] sm:$0xff]  ;;  %v1677_v14 = vpack.c.bf16 %v899_v13, %v893_v12  ;;  %v797_v18 = vld [vmem:[#allocation8 + $0x4e8] sm:$0xff]  ;;  %v803_v19 = vld [vmem:[#allocation8 + $0x518] sm:$0xff]  ;;  %v367_v57 = vsub.s32 2, %v2507_v54 }
  0xc9   : > { %1616 = vmatpush1.bf16.msra.mxu1 %v1615_v9  ;;  %v790_v9 = vld [vmem:[#allocation8 + $0x4b0] sm:$0xff]  ;;  %v1645_v20 = vpack.c.bf16 %v803_v19, %v797_v18  ;;  %v796_v21 = vld [vmem:[#allocation8 + $0x4e0] sm:$0xff]  ;;  %v905_v24 = vld [vmem:[#allocation8 + $0x848] sm:$0xff] }
  0xca   : > { %1618 = vmatprep.subr.bf16.mxu1 %v1617_v11  ;;  %1662 = vmatprep.subr.bf16.mxu0 %v1661_v28  ;;  %v1643_v11 = vpack.c.bf16 %v790_v9, %v784_v8  ;;  %v911_v25 = vld [vmem:[#allocation8 + $0x878] sm:$0xff]  ;;  %v904_v10 = vld [vmem:[#allocation8 + $0x840] sm:$0xff]  ;;  %v910_v27 = vld [vmem:[#allocation8 + $0x870] sm:$0xff] }
  0xcb   : > { %v1683_v28 = vpack.c.bf16 %v910_v27, %v904_v10  ;;  %v809_v29 = vld [vmem:[#allocation8 + $0x548] sm:$0xff]  ;;  %v815_v30 = vld [vmem:[#allocation8 + $0x578] sm:$0xff]  ;;  %v814_v33 = vld [vmem:[#allocation8 + $0x570] sm:$0xff] }
  0xcc   : > { %1664 = vmatpush1.bf16.msra.mxu0 %v1663_v31  ;;  %v808_v31 = vld [vmem:[#allocation8 + $0x540] sm:$0xff]  ;;  %v1649_v32 = vpack.c.bf16 %v815_v30, %v809_v29  ;;  %v923_v35 = vld [vmem:[#allocation8 + $0x8d8] sm:$0xff]  ;;  %v922_v39 = vld [vmem:[#allocation8 + $0x8d0] sm:$0xff] }
  0xcd   : > { %1620 = vmatpush1.bf16.msra.mxu1 %v1619_v16  ;;  %1666 = vmatprep.subr.bf16.mxu0 %v1665_v40  ;;  %v898_v16 = vld [vmem:[#allocation8 + $0x810] sm:$0xff]  ;;  %v1651_v36 = vpack.c.bf16 %v814_v33, %v808_v31  ;;  %v916_v38 = vld [vmem:[#allocation8 + $0x8a0] sm:$0xff]  ;;  %v821_v40 = vld [vmem:[#allocation8 + $0x5a8] sm:$0xff] }
  0xce   : > { %1622 = vmatprep.subr.bf16.mxu1 %v1621_v17  ;;  %v1679_v17 = vpack.c.bf16 %v898_v16, %v892_v15  ;;  %v1687_v41 = vpack.c.bf16 %v922_v39, %v916_v38  ;;  %v827_v42 = vld [vmem:[#allocation8 + $0x5d8] sm:$0xff]  ;;  %v826_v44 = vld [vmem:[#allocation8 + $0x5d0] sm:$0xff]  ;;  %v649_v48 = vld [vmem:[#allocation8 + $0x48] sm:$0xff] }
  0xcf   : > { %v1653_v45 = vpack.c.bf16 %v827_v42, %v821_v40  ;;  %v643_v47 = vld [vmem:[#allocation8 + $0x18] sm:$0xff]  ;;  %v645_v50 = vld [vmem:[#allocation8 + $0x28] sm:$0xff]  ;;  %v642_v18 = vld [vmem:[#allocation8 + $0x10] sm:$0xff] }
  0xd0   : > { %1668 = vmatpush1.bf16.msra.mxu0 %v1667_v43  ;;  %v820_v43 = vld [vmem:[#allocation8 + $0x5a0] sm:$0xff]  ;;  %v651_v51 = vld [vmem:[#allocation8 + $0x58] sm:$0xff]  ;;  %v654_v10 = vld [vmem:[#allocation8 + $0x70] sm:$0xff] }
  0xd1   : > { %1624 = vmatpush1.bf16.msra.mxu1 %v1623_v22  ;;  %1670 = vmatprep.subr.bf16.mxu0 %v1669_v52  ;;  %v802_v22 = vld [vmem:[#allocation8 + $0x510] sm:$0xff]  ;;  %v1785_v52 = vpack.c.bf16 %v651_v51, %v645_v50  ;;  %v2510_v56 = vld [vmem:[#allocation7] sm:$0x3f]  ;;  %v648_v19 = vld [vmem:[#allocation8 + $0x40] sm:$0xff] }
  0xd2   : > { %1626 = vmatprep.subr.bf16.mxu1 %v1625_v23  ;;  %v1647_v23 = vpack.c.bf16 %v802_v22, %v796_v21  ;;  %v368_v60 = vrot.slane %v2510_v56, %v367_v57  ;;  %v650_v21 = vld [vmem:[#allocation8 + $0x50] sm:$0xff]  ;;  %v655_v22 = vld [vmem:[#allocation8 + $0x78] sm:$0xff]  ;;  %v660_v27 = vld [vmem:[#allocation8 + $0xa0] sm:$0xff] }
  0xd3   : > { %v667_v31 = vld [vmem:[#allocation8 + $0xd8] sm:$0xff]  ;;  %v1695_v38 = vpack.c.bf16 %v660_v27, %v654_v10  ;;  %v669_v39 = vld [vmem:[#allocation8 + $0xe8] sm:$0xff]  ;;  %v666_v42 = vld [vmem:[#allocation8 + $0xd0] sm:$0xff] }
  0xd4   : > { %1672 = vmatpush1.bf16.msra.mxu0 %v1671_v55  ;;  %v359_v55 = vsub.s32 0, %v2507_v54  ;;  %v675_v40 = vld [vmem:[#allocation8 + $0x118] sm:$0xff]  ;;  %v681_v51 = vld [vmem:[#allocation8 + $0x148] sm:$0xff]  ;;  %v684_v57 = vld [vmem:[#allocation8 + $0x160] sm:$0xff] }
  0xd5   : > { %1628 = vmatpush1.bf16.msra.mxu1 %v1627_v26  ;;  %1674 = vmatprep.subr.bf16.mxu0 %v1673_v1  ;;  %v1681_v26 = vpack.c.bf16 %v911_v25, %v905_v24  ;;  %v1691_v24 = vpack.c.bf16 %v648_v19, %v642_v18  ;;  %v657_v25 = vld [vmem:[#allocation8 + $0x88] sm:$0xff]  ;;  %v711_v19 = vld [vmem:[#allocation8 + $0x238] sm:$0xff]  ;;  %v704_v10 = vld [vmem:[#allocation8 + $0x200] sm:$0xff] }
  0xd6   : > { %1630 = vmatprep.subr.bf16.mxu1 %v1629_v34  ;;  %v917_v34 = vld [vmem:[#allocation8 + $0x8a8] sm:$0xff]  ;;  %v360_v59 = vrot.slane %v2510_v56, %v359_v55  ;;  %v678_v55 = vld [vmem:[#allocation8 + $0x130] sm:$0xff] }
  0xd7   : > { %v705_v18 = vld [vmem:[#allocation8 + $0x208] sm:$0xff]  ;;  %v710_v27 = vld [vmem:[#allocation8 + $0x230] sm:$0xff] }
  0xd8   : > { %1676 = vmatpush1.bf16.msra.mxu0 %v1675_v4 }
  0xd9   : > { %1632 = vmatpush1.bf16.msra.mxu1 %v1631_v37  ;;  %1678 = vmatprep.subr.bf16.mxu0 %v1677_v14  ;;  %v1685_v37 = vpack.c.bf16 %v923_v35, %v917_v34  ;;  %v656_v35 = vld [vmem:[#allocation8 + $0x80] sm:$0xff] }
  0xda   : > { %1634 = vmatprep.subr.bf16.mxu1 %v1633_v46  ;;  %v1655_v46 = vpack.c.bf16 %v826_v44, %v820_v43  ;;  %v672_v43 = vld [vmem:[#allocation8 + $0x100] sm:$0xff] }
  0xdb   : > { %v1699_v50 = vpack.c.bf16 %v672_v43, %v666_v42  ;;  %v729_v43 = vld [vmem:[#allocation8 + $0x2c8] sm:$0xff] }
  0xdc   : > { %1680 = vmatpush1.bf16.msra.mxu0 %v1679_v17 }
  0xdd   : > { %1636 = vmatpush1.bf16.msra.mxu1 %v1635_v49  ;;  %1682 = vmatprep.subr.bf16.mxu0 %v1681_v26  ;;  %v1689_v49 = vpack.c.bf16 %v649_v48, %v643_v47  ;;  %v663_v26 = vld [vmem:[#allocation8 + $0xb8] sm:$0xff]  ;;  %v1793_v47 = vpack.c.bf16 %v675_v40, %v669_v39  ;;  %v668_v48 = vld [vmem:[#allocation8 + $0xe0] sm:$0xff] }
  0xde   : > { %1638 = vmatprep.subr.bf16.mxu1 %v1637_v58  ;;  %v363_v58 = vsub.s32 1, %v2507_v54  ;;  %v1789_v34 = vpack.c.bf16 %v663_v26, %v657_v25  ;;  %v721_v25 = vld [vmem:[#allocation8 + $0x288] sm:$0xff]  ;;  %v1805_v26 = vpack.c.bf16 %v711_v19, %v705_v18  ;;  %v716_v40 = vld [vmem:[#allocation8 + $0x260] sm:$0xff] }
  0xdf   : > { %v752_v19 = vld [vmem:[#allocation8 + $0x380] sm:$0xff] }
  0xe0   : > { %1684 = vmatpush1.bf16.msra.mxu0 %v1683_v28 }
  0xe1   : > { %1640 = vmatpush1.bf16.msra.mxu1 %v1639_v61  ;;  %1686 = vmatprep.subr.bf16.mxu0 %v1685_v37  ;;  %v364_v61 = vrot.slane %v2510_v56, %v363_v58 }
  0xe2   : > { %1642 = vmatprep.subr.bf16.mxu1 %v1641_v7 }
  0xe4   : > { %1688 = vmatpush1.bf16.msra.mxu0 %v1687_v41 }
  0xe5   : > { %1644 = vmatpush1.bf16.msra.mxu1 %v1643_v11  ;;  %1690 = vmatprep.subr.bf16.mxu0 %v1689_v49  ;;  %v674_v49 = vld [vmem:[#allocation8 + $0x110] sm:$0xff] }
  0xe6   : > { %1646 = vmatprep.subr.bf16.mxu1 %v1645_v20  ;;  %v644_v20 = vld [vmem:[#allocation8 + $0x20] sm:$0xff]  ;;  %v1795_v58 = vpack.c.bf16 %v674_v49, %v668_v48  ;;  %v739_v49 = vld [vmem:[#allocation8 + $0x318] sm:$0xff] }
  0xe7   : > { %v1787_v29 = vpack.c.bf16 %v650_v21, %v644_v20  ;;  %v702_v21 = vld [vmem:[#allocation8 + $0x1f0] sm:$0xff] }
  0xe9   : > { %1648 = vmatpush1.bf16.msra.mxu1 %v1647_v23  ;;  %v661_v23 = vld [vmem:[#allocation8 + $0xa8] sm:$0xff] }
  0xea   : > { %1650 = vmatprep.subr.bf16.mxu1 %v1649_v32  ;;  %v1693_v30 = vpack.c.bf16 %v661_v23, %v655_v22  ;;  %v673_v32 = vld [vmem:[#allocation8 + $0x108] sm:$0xff]  ;;  %v708_v22 = vld [vmem:[#allocation8 + $0x220] sm:$0xff] }
  0xeb   : > { %v1697_v41 = vpack.c.bf16 %v673_v32, %v667_v31  ;;  %v723_v31 = vld [vmem:[#allocation8 + $0x298] sm:$0xff] }
  0xed   : > { %1652 = vmatpush1.bf16.msra.mxu1 %v1651_v36  ;;  %v662_v36 = vld [vmem:[#allocation8 + $0xb0] sm:$0xff] }
  0xee   : > { %1654 = vmatprep.subr.bf16.mxu1 %v1653_v45  ;;  %v1791_v44 = vpack.c.bf16 %v662_v36, %v656_v35  ;;  %v679_v45 = vld [vmem:[#allocation8 + $0x138] sm:$0xff]  ;;  %v1807_v35 = vpack.c.bf16 %v710_v27, %v704_v10 }
  0xef   : > { %v727_v36 = vld [vmem:[#allocation8 + $0x2b8] sm:$0xff] }
  0xf0   : > { %v775_v27 = vld [vmem:[#allocation8 + $0x438] sm:$0xff] }
  0xf1   : > { %1656 = vmatpush1.bf16.msra.mxu1 %v1655_v46  ;;  %v685_v46 = vld [vmem:[#allocation8 + $0x168] sm:$0xff] }
  0xf2   : > { %1786 = vmatprep.subr.bf16.mxu1 %v1785_v52  ;;  %v687_v52 = vld [vmem:[#allocation8 + $0x178] sm:$0xff]  ;;  %v1701_v53 = vpack.c.bf16 %v685_v46, %v679_v45  ;;  %v726_v46 = vld [vmem:[#allocation8 + $0x2b0] sm:$0xff] }
 0x186   : > { %v457_v62 = vpop.f32.mrb[0].mxu0 }
 0x187   : > { %v458_v63 = vadd.f32 %v457_v62, %v360_v59  ;;  %v528_v1 = vpop.f32.mrb[0].mxu1  ;;  %v459_v2 = vpop.f32.mrb[1].mxu0  ;;  %v691_v59 = vld [vmem:[#allocation8 + $0x198] sm:$0xff]  ;;  %v680_v62 = vld [vmem:[#allocation8 + $0x140] sm:$0xff] }
 0x188   : > { %v529_v3 = vadd.f32 %v528_v1, %v368_v60  ;;  %v460_v4 = vadd.f32 %v459_v2, %v364_v61  ;;  %v2517_v5 = vpop.f32.mrb[1].mxu1  ;;  %v697_v60 = vld [vmem:[#allocation8 + $0x1c8] sm:$0xff]  ;;  %v1797_v61 = vpack.c.bf16 %v687_v52, %v681_v51  ;;  %v1703_v1 = vpack.c.bf16 %v684_v57, %v678_v55  ;;  %v728_v52 = vld [vmem:[#allocation8 + $0x2c0] sm:$0xff] }
 0x189   : > { %v1522_v6 = vmul.f32 -1.442695, %v458_v63  ;;  %v686_v63 = vld [vmem:[#allocation8 + $0x170] sm:$0xff]  ;;  %v693_v2 = vld [vmem:[#allocation8 + $0x1a8] sm:$0xff] }
 0x18a   : > { %v1524_v7 = vmul.f32 -1.442695, %v529_v3  ;;  %v1523_v8 = vmul.f32 -1.442695, %v460_v4  ;;  %v699_v3 = vld [vmem:[#allocation8 + $0x1d8] sm:$0xff]  ;;  %v1705_v4 = vpack.c.bf16 %v697_v60, %v691_v59  ;;  %v741_v57 = vld [vmem:[#allocation8 + $0x328] sm:$0xff] }
 0x18b   : > { %1977 = vpow2.f32 %v1522_v6  ;;  %v690_v6 = vld [vmem:[#allocation8 + $0x190] sm:$0xff] }
 0x18c   : > { %1979 = vpow2.f32 %v1524_v7  ;;  %v696_v7 = vld [vmem:[#allocation8 + $0x1c0] sm:$0xff]  ;;  %v738_v60 = vld [vmem:[#allocation8 + $0x310] sm:$0xff] }
 0x18d   : > { %1981 = vpow2.f32 %v1523_v8  ;;  %v1799_v8 = vpack.c.bf16 %v686_v63, %v680_v62  ;;  %v751_v63 = vld [vmem:[#allocation8 + $0x378] sm:$0xff] }
 0x195   : > { %v1978_v9 = vpop.eup %1977 }
 0x196   : > { %v1980_v11 = vpop.eup %1979  ;;  %v622_v13 = vadd.f32 1.0, %v1978_v9  ;;  %v703_v9 = vld [vmem:[#allocation8 + $0x1f8] sm:$0xff] }
 0x197   : > { %v1982_v12 = vpop.eup %1981  ;;  %v624_v14 = vadd.f32 1.0, %v1980_v11  ;;  %v709_v11 = vld [vmem:[#allocation8 + $0x228] sm:$0xff] }
 0x198   : > { %v623_v15 = vadd.f32 1.0, %v1982_v12  ;;  %v1801_v12 = vpack.c.bf16 %v699_v3, %v693_v2  ;;  %v1709_v20 = vpack.c.bf16 %v709_v11, %v703_v9  ;;  %v740_v3 = vld [vmem:[#allocation8 + $0x320] sm:$0xff]  ;;  %v750_v11 = vld [vmem:[#allocation8 + $0x370] sm:$0xff] }
 0x199   : > { %1983 = vrcp.f32 %v624_v14  ;;  %v698_v14 = vld [vmem:[#allocation8 + $0x1d0] sm:$0xff] }
 0x19a   : > { %1985 = vrcp.f32 %v623_v15  ;;  %v2519_v16 = vpop.f32.mrb[2].mxu0  ;;  %v1707_v15 = vpack.c.bf16 %v696_v7, %v690_v6  ;;  %v753_v7 = vld [vmem:[#allocation8 + $0x388] sm:$0xff] }
 0x19b   : > { %1987 = vrcp.f32 %v622_v13  ;;  %v2521_v17 = vpop.f32.mrb[3].mxu0  ;;  %v692_v13 = vld [vmem:[#allocation8 + $0x1a0] sm:$0xff] }
 0x19c   : > { %v1803_v23 = vpack.c.bf16 %v698_v14, %v692_v13  ;;  %v763_v14 = vld [vmem:[#allocation8 + $0x3d8] sm:$0xff] }
 0x1a3   : > { %v2523_v28 = vpop.eup %1983 }
 0x1a4   : > { %v1986_v33 = vpop.eup %1985  ;;  %1064 = vmatmul.mubr.f32.vlgmr.msra.gmra.mrb[4].mxu0 %v2523_v28 }
 0x1a5   : > { %v2526_v37 = vpop.eup %1987  ;;  %1692 = vmatpush1.bf16.msra.mxu0 %v1691_v24  ;;  %992 = vmatprep.mubr.f32.mxu1 %v1986_v33  ;;  %v715_v24 = vld [vmem:[#allocation8 + $0x258] sm:$0xff] }
 0x1a6   : > { %1134 = vmatprep.mubr.f32.mxu0 %v1986_v33  ;;  %993 = vmatmul.mubr.f32.vlgmr.msra.gmra.mrb[2].mxu1 %v2526_v37  ;;  %v1713_v32 = vpack.c.bf16 %v721_v25, %v715_v24  ;;  %v762_v25 = vld [vmem:[#allocation8 + $0x3d0] sm:$0xff] }
 0x1a7   : > { %1788 = vmatpush1.bf16.msra.mxu1 %v1787_v29  ;;  %1694 = vmatprep.subr.bf16.mxu0 %v1693_v30  ;;  %v1711_v29 = vpack.c.bf16 %v708_v22, %v702_v21  ;;  %v717_v30 = vld [vmem:[#allocation8 + $0x268] sm:$0xff] }
 0x1a8   : > { %1276 = vmatprep.mubr.f32.mxu1 %v1986_v33  ;;  %1790 = vmatprep.subr.bf16.mxu1 %v1789_v34  ;;  %v714_v33 = vld [vmem:[#allocation8 + $0x250] sm:$0xff]  ;;  %v720_v34 = vld [vmem:[#allocation8 + $0x280] sm:$0xff]  ;;  %v1809_v39 = vpack.c.bf16 %v723_v31, %v717_v30  ;;  %v765_v22 = vld [vmem:[#allocation8 + $0x3e8] sm:$0xff] }
 0x1a9   : > { %1696 = vmatpush1.bf16.msra.mxu0 %v1695_v38  ;;  %v733_v38 = vld [vmem:[#allocation8 + $0x2e8] sm:$0xff]  ;;  %v1715_v42 = vpack.c.bf16 %v720_v34, %v714_v33  ;;  %v764_v31 = vld [vmem:[#allocation8 + $0x3e0] sm:$0xff] }
 0x1aa   : > { %1698 = vmatprep.subr.bf16.mxu0 %v1697_v41  ;;  %v722_v41 = vld [vmem:[#allocation8 + $0x290] sm:$0xff]  ;;  %v1717_v45 = vpack.c.bf16 %v733_v38, %v727_v36  ;;  %v777_v34 = vld [vmem:[#allocation8 + $0x448] sm:$0xff] }
 0x1ab   : > { %1792 = vmatpush1.bf16.msra.mxu1 %v1791_v44  ;;  %v735_v44 = vld [vmem:[#allocation8 + $0x2f8] sm:$0xff]  ;;  %v1811_v48 = vpack.c.bf16 %v722_v41, %v716_v40  ;;  %v774_v38 = vld [vmem:[#allocation8 + $0x430] sm:$0xff] }
 0x1ac   : > { %1794 = vmatprep.subr.bf16.mxu1 %v1793_v47  ;;  %v732_v47 = vld [vmem:[#allocation8 + $0x2e0] sm:$0xff]  ;;  %v1813_v51 = vpack.c.bf16 %v735_v44, %v729_v43  ;;  %v787_v41 = vld [vmem:[#allocation8 + $0x498] sm:$0xff] }
 0x1ad   : > { %1700 = vmatpush1.bf16.msra.mxu0 %v1699_v50  ;;  %v745_v50 = vld [vmem:[#allocation8 + $0x348] sm:$0xff]  ;;  %v1719_v55 = vpack.c.bf16 %v732_v47, %v726_v46  ;;  %v776_v44 = vld [vmem:[#allocation8 + $0x440] sm:$0xff] }
 0x1ae   : > { %1702 = vmatprep.subr.bf16.mxu0 %v1701_v53  ;;  %v734_v53 = vld [vmem:[#allocation8 + $0x2f0] sm:$0xff]  ;;  %v1721_v59 = vpack.c.bf16 %v745_v50, %v739_v49  ;;  %v789_v47 = vld [vmem:[#allocation8 + $0x4a8] sm:$0xff] }
 0x1af   : > { %1796 = vmatpush1.bf16.msra.mxu1 %v1795_v58  ;;  %v747_v58 = vld [vmem:[#allocation8 + $0x358] sm:$0xff]  ;;  %v1815_v62 = vpack.c.bf16 %v734_v53, %v728_v52  ;;  %v786_v50 = vld [vmem:[#allocation8 + $0x490] sm:$0xff] }
 0x1b0   : > { %1798 = vmatprep.subr.bf16.mxu1 %v1797_v61  ;;  %v744_v61 = vld [vmem:[#allocation8 + $0x340] sm:$0xff]  ;;  %v1817_v2 = vpack.c.bf16 %v747_v58, %v741_v57  ;;  %v799_v53 = vld [vmem:[#allocation8 + $0x4f8] sm:$0xff] }
 0x1b1   : > { %1704 = vmatpush1.bf16.msra.mxu0 %v1703_v1  ;;  %v757_v1 = vld [vmem:[#allocation8 + $0x3a8] sm:$0xff]  ;;  %v1723_v6 = vpack.c.bf16 %v744_v61, %v738_v60  ;;  %v788_v58 = vld [vmem:[#allocation8 + $0x4a0] sm:$0xff] }
 0x1b2   : > { %1706 = vmatprep.subr.bf16.mxu0 %v1705_v4  ;;  %v746_v4 = vld [vmem:[#allocation8 + $0x350] sm:$0xff]  ;;  %v1725_v9 = vpack.c.bf16 %v757_v1, %v751_v63  ;;  %v801_v61 = vld [vmem:[#allocation8 + $0x508] sm:$0xff] }
 0x1b3   : > { %1800 = vmatpush1.bf16.msra.mxu1 %v1799_v8  ;;  %v759_v8 = vld [vmem:[#allocation8 + $0x3b8] sm:$0xff]  ;;  %v1819_v13 = vpack.c.bf16 %v746_v4, %v740_v3  ;;  %v798_v1 = vld [vmem:[#allocation8 + $0x4f0] sm:$0xff] }
 0x1b4   : > { %1802 = vmatprep.subr.bf16.mxu1 %v1801_v12  ;;  %v756_v12 = vld [vmem:[#allocation8 + $0x3a0] sm:$0xff]  ;;  %v1821_v18 = vpack.c.bf16 %v759_v8, %v753_v7  ;;  %v811_v4 = vld [vmem:[#allocation8 + $0x558] sm:$0xff] }
 0x1b5   : > { %1708 = vmatpush1.bf16.msra.mxu0 %v1707_v15  ;;  %v769_v15 = vld [vmem:[#allocation8 + $0x408] sm:$0xff]  ;;  %v1727_v21 = vpack.c.bf16 %v756_v12, %v750_v11  ;;  %v800_v8 = vld [vmem:[#allocation8 + $0x500] sm:$0xff] }
 0x1b6   : > { %1710 = vmatprep.subr.bf16.mxu0 %v1709_v20  ;;  %v758_v20 = vld [vmem:[#allocation8 + $0x3b0] sm:$0xff]  ;;  %v1729_v24 = vpack.c.bf16 %v769_v15, %v763_v14  ;;  %v813_v12 = vld [vmem:[#allocation8 + $0x568] sm:$0xff] }
 0x1b7   : > { %1804 = vmatpush1.bf16.msra.mxu1 %v1803_v23  ;;  %v771_v23 = vld [vmem:[#allocation8 + $0x418] sm:$0xff]  ;;  %v1823_v10 = vpack.c.bf16 %v758_v20, %v752_v19  ;;  %v810_v15 = vld [vmem:[#allocation8 + $0x550] sm:$0xff] }
 0x1b8   : > { %1806 = vmatprep.subr.bf16.mxu1 %v1805_v26  ;;  %v768_v26 = vld [vmem:[#allocation8 + $0x400] sm:$0xff]  ;;  %v1825_v30 = vpack.c.bf16 %v771_v23, %v765_v22  ;;  %v823_v20 = vld [vmem:[#allocation8 + $0x5b8] sm:$0xff] }
 0x1b9   : > { %1712 = vmatpush1.bf16.msra.mxu0 %v1711_v29  ;;  %v781_v29 = vld [vmem:[#allocation8 + $0x468] sm:$0xff]  ;;  %v1731_v33 = vpack.c.bf16 %v768_v26, %v762_v25  ;;  %v812_v23 = vld [vmem:[#allocation8 + $0x560] sm:$0xff] }
 0x1ba   : > { %1714 = vmatprep.subr.bf16.mxu0 %v1713_v32  ;;  %v770_v32 = vld [vmem:[#allocation8 + $0x410] sm:$0xff]  ;;  %v1733_v36 = vpack.c.bf16 %v781_v29, %v775_v27  ;;  %v825_v26 = vld [vmem:[#allocation8 + $0x5c8] sm:$0xff] }
 0x1bb   : > { %1808 = vmatpush1.bf16.msra.mxu1 %v1807_v35  ;;  %v783_v35 = vld [vmem:[#allocation8 + $0x478] sm:$0xff]  ;;  %v1827_v40 = vpack.c.bf16 %v770_v32, %v764_v31  ;;  %v822_v29 = vld [vmem:[#allocation8 + $0x5b0] sm:$0xff] }
 0x1bc   : > { %1810 = vmatprep.subr.bf16.mxu1 %v1809_v39  ;;  %v780_v39 = vld [vmem:[#allocation8 + $0x460] sm:$0xff]  ;;  %v1829_v43 = vpack.c.bf16 %v783_v35, %v777_v34  ;;  %v835_v32 = vld [vmem:[#allocation8 + $0x618] sm:$0xff] }
 0x1bd   : > { %1716 = vmatpush1.bf16.msra.mxu0 %v1715_v42  ;;  %v793_v42 = vld [vmem:[#allocation8 + $0x4c8] sm:$0xff]  ;;  %v1735_v46 = vpack.c.bf16 %v780_v39, %v774_v38  ;;  %v824_v35 = vld [vmem:[#allocation8 + $0x5c0] sm:$0xff] }
 0x1be   : > { %1718 = vmatprep.subr.bf16.mxu0 %v1717_v45  ;;  %v782_v45 = vld [vmem:[#allocation8 + $0x470] sm:$0xff]  ;;  %v1737_v49 = vpack.c.bf16 %v793_v42, %v787_v41  ;;  %v837_v39 = vld [vmem:[#allocation8 + $0x628] sm:$0xff] }
 0x1bf   : > { %1812 = vmatpush1.bf16.msra.mxu1 %v1811_v48  ;;  %v795_v48 = vld [vmem:[#allocation8 + $0x4d8] sm:$0xff]  ;;  %v1831_v52 = vpack.c.bf16 %v782_v45, %v776_v44  ;;  %v834_v42 = vld [vmem:[#allocation8 + $0x610] sm:$0xff] }
 0x1c0   : > { %1814 = vmatprep.subr.bf16.mxu1 %v1813_v51  ;;  %v792_v51 = vld [vmem:[#allocation8 + $0x4c0] sm:$0xff]  ;;  %v1833_v57 = vpack.c.bf16 %v795_v48, %v789_v47  ;;  %v847_v45 = vld [vmem:[#allocation8 + $0x678] sm:$0xff] }
 0x1c1   : > { %1720 = vmatpush1.bf16.msra.mxu0 %v1719_v55  ;;  %v805_v55 = vld [vmem:[#allocation8 + $0x528] sm:$0xff]  ;;  %v1739_v60 = vpack.c.bf16 %v792_v51, %v786_v50  ;;  %v836_v48 = vld [vmem:[#allocation8 + $0x620] sm:$0xff] }
 0x1c2   : > { %1722 = vmatprep.subr.bf16.mxu0 %v1721_v59  ;;  %v794_v59 = vld [vmem:[#allocation8 + $0x4d0] sm:$0xff]  ;;  %v1741_v63 = vpack.c.bf16 %v805_v55, %v799_v53  ;;  %v849_v51 = vld [vmem:[#allocation8 + $0x688] sm:$0xff] }
 0x1c3   : > { %1816 = vmatpush1.bf16.msra.mxu1 %v1815_v62  ;;  %v807_v62 = vld [vmem:[#allocation8 + $0x538] sm:$0xff]  ;;  %v1835_v3 = vpack.c.bf16 %v794_v59, %v788_v58  ;;  %v846_v55 = vld [vmem:[#allocation8 + $0x670] sm:$0xff] }
 0x1c4   : > { %1818 = vmatprep.subr.bf16.mxu1 %v1817_v2  ;;  %v804_v2 = vld [vmem:[#allocation8 + $0x520] sm:$0xff]  ;;  %v1837_v7 = vpack.c.bf16 %v807_v62, %v801_v61  ;;  %v859_v59 = vld [vmem:[#allocation8 + $0x6d8] sm:$0xff] }
 0x1c5   : > { %1724 = vmatpush1.bf16.msra.mxu0 %v1723_v6  ;;  %v817_v6 = vld [vmem:[#allocation8 + $0x588] sm:$0xff]  ;;  %v1743_v11 = vpack.c.bf16 %v804_v2, %v798_v1  ;;  %v848_v62 = vld [vmem:[#allocation8 + $0x680] sm:$0xff] }
 0x1c6   : > { %1726 = vmatprep.subr.bf16.mxu0 %v1725_v9  ;;  %v806_v9 = vld [vmem:[#allocation8 + $0x530] sm:$0xff]  ;;  %v1745_v14 = vpack.c.bf16 %v817_v6, %v811_v4  ;;  %v861_v2 = vld [vmem:[#allocation8 + $0x6e8] sm:$0xff] }
 0x1c7   : > { %1820 = vmatpush1.bf16.msra.mxu1 %v1819_v13  ;;  %v819_v13 = vld [vmem:[#allocation8 + $0x598] sm:$0xff]  ;;  %v1839_v19 = vpack.c.bf16 %v806_v9, %v800_v8  ;;  %v858_v6 = vld [vmem:[#allocation8 + $0x6d0] sm:$0xff] }
 0x1c8   : > { %1822 = vmatprep.subr.bf16.mxu1 %v1821_v18  ;;  %v816_v18 = vld [vmem:[#allocation8 + $0x580] sm:$0xff]  ;;  %v1841_v22 = vpack.c.bf16 %v819_v13, %v813_v12  ;;  %v871_v9 = vld [vmem:[#allocation8 + $0x738] sm:$0xff] }
 0x1c9   : > { %1728 = vmatpush1.bf16.msra.mxu0 %v1727_v21  ;;  %v829_v21 = vld [vmem:[#allocation8 + $0x5e8] sm:$0xff]  ;;  %v1747_v25 = vpack.c.bf16 %v816_v18, %v810_v15  ;;  %v860_v13 = vld [vmem:[#allocation8 + $0x6e0] sm:$0xff] }
 0x1ca   : > { %1730 = vmatprep.subr.bf16.mxu0 %v1729_v24  ;;  %v818_v24 = vld [vmem:[#allocation8 + $0x590] sm:$0xff]  ;;  %v1749_v27 = vpack.c.bf16 %v829_v21, %v823_v20  ;;  %v873_v18 = vld [vmem:[#allocation8 + $0x748] sm:$0xff]  ;;  %v876_v21 = vld [vmem:[#allocation8 + $0x760] sm:$0xff] }
 0x1cb   : > { %1824 = vmatpush1.bf16.msra.mxu1 %v1823_v10  ;;  %v831_v10 = vld [vmem:[#allocation8 + $0x5f8] sm:$0xff]  ;;  %v1843_v31 = vpack.c.bf16 %v818_v24, %v812_v23  ;;  %v870_v20 = vld [vmem:[#allocation8 + $0x730] sm:$0xff]  ;;  %v889_v24 = vld [vmem:[#allocation8 + $0x7c8] sm:$0xff] }
 0x1cc   : > { %1826 = vmatprep.subr.bf16.mxu1 %v1825_v30  ;;  %v828_v30 = vld [vmem:[#allocation8 + $0x5e0] sm:$0xff]  ;;  %v1845_v34 = vpack.c.bf16 %v831_v10, %v825_v26  ;;  %v883_v23 = vld [vmem:[#allocation8 + $0x798] sm:$0xff]  ;;  %v1767_v10 = vpack.c.bf16 %v876_v21, %v870_v20 }
 0x1cd   : > { %1732 = vmatpush1.bf16.msra.mxu0 %v1731_v33  ;;  %v841_v33 = vld [vmem:[#allocation8 + $0x648] sm:$0xff]  ;;  %v1751_v38 = vpack.c.bf16 %v828_v30, %v822_v29  ;;  %v872_v26 = vld [vmem:[#allocation8 + $0x740] sm:$0xff]  ;;  %v891_v29 = vld [vmem:[#allocation8 + $0x7d8] sm:$0xff]  ;;  %v1769_v30 = vpack.c.bf16 %v889_v24, %v883_v23 }
 0x1ce   : > { %1734 = vmatprep.subr.bf16.mxu0 %v1733_v36  ;;  %v830_v36 = vld [vmem:[#allocation8 + $0x5f0] sm:$0xff]  ;;  %v1753_v41 = vpack.c.bf16 %v841_v33, %v835_v32  ;;  %v888_v32 = vld [vmem:[#allocation8 + $0x7c0] sm:$0xff] }
 0x1cf   : > { %1828 = vmatpush1.bf16.msra.mxu1 %v1827_v40  ;;  %v843_v40 = vld [vmem:[#allocation8 + $0x658] sm:$0xff]  ;;  %v1847_v44 = vpack.c.bf16 %v830_v36, %v824_v35  ;;  %v901_v35 = vld [vmem:[#allocation8 + $0x828] sm:$0xff] }
 0x1d0   : > { %1830 = vmatprep.subr.bf16.mxu1 %v1829_v43  ;;  %v840_v43 = vld [vmem:[#allocation8 + $0x640] sm:$0xff]  ;;  %v1849_v47 = vpack.c.bf16 %v843_v40, %v837_v39  ;;  %v890_v39 = vld [vmem:[#allocation8 + $0x7d0] sm:$0xff] }
 0x1d1   : > { %1736 = vmatpush1.bf16.msra.mxu0 %v1735_v46  ;;  %v853_v46 = vld [vmem:[#allocation8 + $0x6a8] sm:$0xff]  ;;  %v1755_v50 = vpack.c.bf16 %v840_v43, %v834_v42  ;;  %v903_v42 = vld [vmem:[#allocation8 + $0x838] sm:$0xff] }
 0x1d2   : > { %1738 = vmatprep.subr.bf16.mxu0 %v1737_v49  ;;  %v842_v49 = vld [vmem:[#allocation8 + $0x650] sm:$0xff]  ;;  %v1757_v53 = vpack.c.bf16 %v853_v46, %v847_v45  ;;  %v900_v45 = vld [vmem:[#allocation8 + $0x820] sm:$0xff] }
 0x1d3   : > { %1832 = vmatpush1.bf16.msra.mxu1 %v1831_v52  ;;  %v855_v52 = vld [vmem:[#allocation8 + $0x6b8] sm:$0xff]  ;;  %v1851_v58 = vpack.c.bf16 %v842_v49, %v836_v48  ;;  %v913_v48 = vld [vmem:[#allocation8 + $0x888] sm:$0xff] }
 0x1d4   : > { %1834 = vmatprep.subr.bf16.mxu1 %v1833_v57  ;;  %v852_v57 = vld [vmem:[#allocation8 + $0x6a0] sm:$0xff]  ;;  %v1853_v61 = vpack.c.bf16 %v855_v52, %v849_v51  ;;  %v902_v51 = vld [vmem:[#allocation8 + $0x830] sm:$0xff] }
 0x1d5   : > { %1740 = vmatpush1.bf16.msra.mxu0 %v1739_v60  ;;  %v865_v60 = vld [vmem:[#allocation8 + $0x708] sm:$0xff]  ;;  %v1759_v1 = vpack.c.bf16 %v852_v57, %v846_v55  ;;  %v915_v55 = vld [vmem:[#allocation8 + $0x898] sm:$0xff] }
 0x1d6   : > { %1742 = vmatprep.subr.bf16.mxu0 %v1741_v63  ;;  %v854_v63 = vld [vmem:[#allocation8 + $0x6b0] sm:$0xff]  ;;  %v1761_v4 = vpack.c.bf16 %v865_v60, %v859_v59  ;;  %v912_v59 = vld [vmem:[#allocation8 + $0x880] sm:$0xff] }
 0x1d7   : > { %1836 = vmatpush1.bf16.msra.mxu1 %v1835_v3  ;;  %v867_v3 = vld [vmem:[#allocation8 + $0x718] sm:$0xff]  ;;  %v1855_v8 = vpack.c.bf16 %v854_v63, %v848_v62  ;;  %v925_v62 = vld [vmem:[#allocation8 + $0x8e8] sm:$0xff] }
 0x1d8   : > { %1838 = vmatprep.subr.bf16.mxu1 %v1837_v7  ;;  %v864_v7 = vld [vmem:[#allocation8 + $0x700] sm:$0xff]  ;;  %v1857_v12 = vpack.c.bf16 %v867_v3, %v861_v2  ;;  %v914_v2 = vld [vmem:[#allocation8 + $0x890] sm:$0xff] }
 0x1d9   : > { %1744 = vmatpush1.bf16.msra.mxu0 %v1743_v11  ;;  %v877_v11 = vld [vmem:[#allocation8 + $0x768] sm:$0xff]  ;;  %v1763_v15 = vpack.c.bf16 %v864_v7, %v858_v6  ;;  %v927_v6 = vld [vmem:[#allocation8 + $0x8f8] sm:$0xff] }
 0x1da   : > { %1746 = vmatprep.subr.bf16.mxu0 %v1745_v14  ;;  %v866_v14 = vld [vmem:[#allocation8 + $0x710] sm:$0xff] }
 0x1db   : > { %1840 = vmatpush1.bf16.msra.mxu1 %v1839_v19  ;;  %v879_v19 = vld [vmem:[#allocation8 + $0x778] sm:$0xff] }
 0x1dc   : > { %1842 = vmatprep.subr.bf16.mxu1 %v1841_v22  ;;  %v1859_v22 = vpack.c.bf16 %v866_v14, %v860_v13  ;;  %v920_v13 = vld [vmem:[#allocation8 + $0x8c0] sm:$0xff]  ;;  %v926_v14 = vld [vmem:[#allocation8 + $0x8f0] sm:$0xff] }
 0x1dd   : > { %1748 = vmatpush1.bf16.msra.mxu0 %v1747_v25  ;;  %v1861_v25 = vpack.c.bf16 %v879_v19, %v873_v18  ;;  %v1879_v18 = vpack.c.bf16 %v926_v14, %v920_v13  ;;  %v371_v19 = vsub.s32 3, %v2507_v54 }
 0x1de   : > { %1750 = vmatprep.subr.bf16.mxu0 %v1749_v27  ;;  %v885_v27 = vld [vmem:[#allocation8 + $0x7a8] sm:$0xff] }
 0x1df   : > { %1844 = vmatpush1.bf16.msra.mxu1 %v1843_v31  ;;  %v882_v31 = vld [vmem:[#allocation8 + $0x790] sm:$0xff]  ;;  %v1865_v36 = vpack.c.bf16 %v891_v29, %v885_v27  ;;  %v372_v20 = vrot.slane %v2510_v56, %v371_v19 }
 0x1e0   : > { %1846 = vmatprep.subr.bf16.mxu1 %v1845_v34  ;;  %v895_v34 = vld [vmem:[#allocation8 + $0x7f8] sm:$0xff]  ;;  %v1771_v40 = vpack.c.bf16 %v888_v32, %v882_v31 }
 0x1e1   : > { %1752 = vmatpush1.bf16.msra.mxu0 %v1751_v38  ;;  %v884_v38 = vld [vmem:[#allocation8 + $0x7a0] sm:$0xff]  ;;  %v1773_v43 = vpack.c.bf16 %v901_v35, %v895_v34 }
 0x1e2   : > { %1754 = vmatprep.subr.bf16.mxu0 %v1753_v41  ;;  %v897_v41 = vld [vmem:[#allocation8 + $0x808] sm:$0xff]  ;;  %v1867_v46 = vpack.c.bf16 %v890_v39, %v884_v38  ;;  %v379_v38 = vsub.s32 5, %v2507_v54 }
 0x1e3   : > { %1848 = vmatpush1.bf16.msra.mxu1 %v1847_v44  ;;  %v894_v44 = vld [vmem:[#allocation8 + $0x7f0] sm:$0xff]  ;;  %v1869_v49 = vpack.c.bf16 %v903_v42, %v897_v41 }
 0x1e4   : > { %1135 = vmatmul.mubr.f32.vlgmr.msra.gmra.mrb[6].mxu0 %v2526_v37  ;;  %1850 = vmatprep.subr.bf16.mxu1 %v1849_v47  ;;  %v907_v47 = vld [vmem:[#allocation8 + $0x858] sm:$0xff]  ;;  %v1775_v52 = vpack.c.bf16 %v900_v45, %v894_v44  ;;  %v380_v39 = vrot.slane %v2510_v56, %v379_v38 }
 0x1e5   : > { %1756 = vmatpush1.bf16.msra.mxu0 %v1755_v50  ;;  %1205 = vmatprep.mubr.f32.mxu0 %v2226_v0  ;;  %v896_v50 = vld [vmem:[#allocation8 + $0x800] sm:$0xff]  ;;  %v1777_v57 = vpack.c.bf16 %v913_v48, %v907_v47 }
 0x1e6   : > { %1277 = vmatmul.mubr.f32.vlgmr.msra.gmra.mrb[4].mxu1 %v2526_v37  ;;  %1758 = vmatprep.subr.bf16.mxu0 %v1757_v53  ;;  %v1765_v37 = vpack.c.bf16 %v877_v11, %v871_v9  ;;  %v909_v53 = vld [vmem:[#allocation8 + $0x868] sm:$0xff]  ;;  %v1871_v60 = vpack.c.bf16 %v902_v51, %v896_v50  ;;  %v924_v9 = vld [vmem:[#allocation8 + $0x8e0] sm:$0xff] }
 0x1e7   : > { %1852 = vmatpush1.bf16.msra.mxu1 %v1851_v58  ;;  %1347 = vmatprep.mubr.f32.mxu1 %v2226_v0  ;;  %v878_v0 = vld [vmem:[#allocation8 + $0x770] sm:$0xff]  ;;  %v1873_v63 = vpack.c.bf16 %v915_v55, %v909_v53  ;;  %v1528_v55 = vld [vmem:[#allocation10] ss:$0 sm:$0xff] }
 0x1e8   : > { %1854 = vmatprep.subr.bf16.mxu1 %v1853_v61  ;;  %v1863_v33 = vpack.c.bf16 %v878_v0, %v872_v26  ;;  %v906_v58 = vld [vmem:[#allocation8 + $0x850] sm:$0xff]  ;;  %v919_v61 = vld [vmem:[#allocation8 + $0x8b8] sm:$0xff] }
 0x1e9   : > { %1760 = vmatpush1.bf16.msra.mxu0 %v1759_v1  ;;  %v908_v1 = vld [vmem:[#allocation8 + $0x860] sm:$0xff]  ;;  %v1779_v3 = vpack.c.bf16 %v912_v59, %v906_v58  ;;  %v1781_v7 = vpack.c.bf16 %v925_v62, %v919_v61 }
 0x1ea   : > { %1762 = vmatprep.subr.bf16.mxu0 %v1761_v4  ;;  %v921_v4 = vld [vmem:[#allocation8 + $0x8c8] sm:$0xff]  ;;  %v1875_v11 = vpack.c.bf16 %v914_v2, %v908_v1 }
 0x1eb   : > { %1856 = vmatpush1.bf16.msra.mxu1 %v1855_v8  ;;  %v918_v8 = vld [vmem:[#allocation8 + $0x8b0] sm:$0xff] }
 0x1ec   : > { %1858 = vmatprep.subr.bf16.mxu1 %v1857_v12  ;;  %v1877_v12 = vpack.c.bf16 %v927_v6, %v921_v4 }
 0x1ed   : > { %1764 = vmatpush1.bf16.msra.mxu0 %v1763_v15  ;;  %v1783_v15 = vpack.c.bf16 %v924_v9, %v918_v8 }
 0x1ee   : > { %1766 = vmatprep.subr.bf16.mxu0 %v1765_v37  ;;  %v375_v37 = vsub.s32 4, %v2507_v54 }
 0x1ef   : > { %1860 = vmatpush1.bf16.msra.mxu1 %v1859_v22  ;;  %v531_v22 = vadd.f32 %v2517_v5, %v372_v20 }
 0x1f0   : > { %1862 = vmatprep.subr.bf16.mxu1 %v1861_v25  ;;  %v376_v21 = vrot.slane %v2510_v56, %v375_v37 }
 0x1f1   : > { %1768 = vmatpush1.bf16.msra.mxu0 %v1767_v10  ;;  %v1525_v24 = vmul.f32 -1.442695, %v531_v22 }
 0x1f2   : > { %1770 = vmatprep.subr.bf16.mxu0 %v1769_v30  ;;  %v600_v23 = vadd.f32 %v2519_v16, %v376_v21 }
 0x1f3   : > { %1864 = vmatpush1.bf16.msra.mxu1 %v1863_v33  ;;  %1989 = vpow2.f32 %v1525_v24 }
 0x1f4   : > { %1866 = vmatprep.subr.bf16.mxu1 %v1865_v36  ;;  %v1526_v25 = vmul.f32 -1.442695, %v600_v23 }
 0x1f5   : > { %1772 = vmatpush1.bf16.msra.mxu0 %v1771_v40  ;;  %v602_v40 = vadd.f32 %v2521_v17, %v380_v39 }
 0x1f6   : > { %1774 = vmatprep.subr.bf16.mxu0 %v1773_v43  ;;  %1991 = vpow2.f32 %v1526_v25 }
 0x1f7   : > { %1868 = vmatpush1.bf16.msra.mxu1 %v1867_v46  ;;  %v1527_v41 = vmul.f32 -1.442695, %v602_v40 }
 0x1f8   : > { %1870 = vmatprep.subr.bf16.mxu1 %v1869_v49 }
 0x1f9   : > { %1776 = vmatpush1.bf16.msra.mxu0 %v1775_v52 }
 0x1fa   : > { %1778 = vmatprep.subr.bf16.mxu0 %v1777_v57 }
 0x1fb   : > { %1872 = vmatpush1.bf16.msra.mxu1 %v1871_v60 }
 0x1fc   : > { %1874 = vmatprep.subr.bf16.mxu1 %v1873_v63 }
 0x1fd   : > { %1780 = vmatpush1.bf16.msra.mxu0 %v1779_v3  ;;  %v1990_v26 = vpop.eup %1989 }
 0x1fe   : > { %1782 = vmatprep.subr.bf16.mxu0 %v1781_v7  ;;  %v625_v10 = vadd.f32 1.0, %v1990_v26 }
 0x1ff   : > { %1876 = vmatpush1.bf16.msra.mxu1 %v1875_v11 }
 0x200   : > { %1878 = vmatprep.subr.bf16.mxu1 %v1877_v12  ;;  %v1992_v0 = vpop.eup %1991  ;;  %1993 = vrcp.f32 %v625_v10 }
 0x201   : > { %1784 = vmatpush1.bf16.msra.mxu0 %v1783_v15 }
 0x203   : > { %1880 = vmatpush1.bf16.msra.mxu1 %v1879_v18 }
 0x204   : > { %1206 = vmatmul.mubr.f32.vlgmr.msra.gmra.mrb[6].mxu0 %v2523_v28 }
 0x206   : > { %1348 = vmatmul.mubr.f32.vlgmr.msra.gmra.mrb[4].mxu1 %v2523_v28  ;;  %v626_v28 = vadd.f32 1.0, %v1992_v0 }
 0x208   : > { %1995 = vrcp.f32 %v626_v28 }
 0x209   : > { %1997 = vpow2.f32 %v1527_v41 }
 0x20a   : > { %v1994_v33 = vpop.eup %1993 }
 0x212   : > { %v1996_v5 = vpop.eup %1995 }
 0x213   : > { %v1998_v42 = vpop.eup %1997 }
 0x214   : > { %v627_v43 = vadd.f32 1.0, %v1998_v42 }
 0x216   : > { %1999 = vrcp.f32 %v627_v43 }
 0x220   : > { %v2000_v44 = vpop.eup %1999 }
 0x277   : > { %v1065_v27 = vpop.f32.mrb[4].mxu0 }
 0x278   : > { %v1067_v29 = vpop.f32.mrb[5].mxu0 }
 0x279   : > { %v994_v30 = vpop.f32.mrb[2].mxu1 }
 0x27a   : > { %v1066_v31 = vadd.f32 %v1065_v27, %v994_v30  ;;  %v996_v32 = vpop.f32.mrb[3].mxu1 }
 0x27b   : > { %v1068_v34 = vadd.f32 %v1067_v29, %v996_v32 }
 0x27c   : > { %v1354_v35 = vmul.f32 %v1994_v33, %v1066_v31 }
 0x27d   : > { %v1355_v16 = vmul.f32 %v1996_v5, %v1068_v34 }
 0x27f   : > { %v1357_v36 = vadd.f32 %v1355_v16, %v1354_v35 }
 0x2d7   : > { %v1207_v45 = vpop.f32.mrb[6].mxu0 }
 0x2d8   : > { %v1356_v46 = vmul.f32 %v2000_v44, %v1207_v45  ;;  %v1209_v47 = vpop.f32.mrb[7].mxu0 }
 0x2d9   : > { %v1361_v48 = vmul.f32 %v1994_v33, %v1209_v47  ;;  %v1349_v49 = vpop.f32.mrb[4].mxu1 }
 0x2da   : > { %v1362_v50 = vmul.f32 %v1996_v5, %v1349_v49  ;;  %v1351_v51 = vpop.f32.mrb[5].mxu1  ;;  %v1358_v54 = vadd.f32 %v1357_v36, %v1356_v46 }
 0x2db   : > { %v1363_v52 = vmul.f32 %v2000_v44, %v1351_v51 }
 0x2dc   : > { %v1364_v56 = vadd.f32 %v1362_v50, %v1361_v48  ;;  %1359 = vadd.xlane.f32.xlu0 %v1358_v54 }
 0x2de   : > { %v1365_v17 = vadd.f32 %v1364_v56, %v1363_v52 }
 0x2e0   : > { %1366 = vadd.xlane.f32.xlu0 %v1365_v17 }
 0x369   : > { %v1360_v53 = vpop.xlane.xlu0 %1359 }
 0x36d   : > { %v1367_v57 = vpop.xlane.xlu0 %1366 }
 0x36e   : > { %v1369_v58 = vsel %vm1368_vm1, %v1360_v53, %v1367_v57 }
 0x36f   : > { %v1371_v59 = vsel %vm1370_vm2, %v1369_v58, 0.0 }
 0x370   : > { %v1379_v60 = vadd.f32 %v1528_v55, %v1371_v59 }
 0x372   : > { %1380 = vst [vmem:[%s293_s8] sm:$0xff] %v1379_v60 }
 0x373   : > { %2156 = shalt.err (!%p2153_p0)
}
 0x374   : > { %s2157_s17 = scalar_lea.hbm %s2550_s6, 128  ;;  %s2161_s7 = scalar_lea.hbm %s2599_s5, 256 }
 0x375   : > { %p2158_p2 = scmp.ne.s32.totalorder %s2550_s6, %s2157_s17  ;;  %p2162_p10 = scmp.lt.u32.totalorder %s2550_s6, %s2599_s5 }
 0x376   : > { %p2163_p11 = scmp.lt.u32.totalorder %s2161_s7, %s2157_s17  ;;  %p2165_p6 = scmp.lt.u32.totalorder %s2157_s17, %s2550_s6 }
 0x377   : > { %p2159_p8 = pnand %p2158_p2, %p2617_p5 }
 0x378   : > { %p2164_p1 = por %p2163_p11, %p2162_p10 }
 0x379   : > { %p2160_p4 = pneg %p2159_p8 }
 0x37a   : > { %p2166_p7 = por %p2165_p6, %p2164_p1 }
 0x37c   : > { %p2167_p9 = pnand %p2166_p7, %p2160_p4 }
 0x37e   : > { %2170 = shalt.err (!%p2167_p9)
}
 0x37f   : > { %1905 = dma.vmem_to_hbm [thread:$0]  (%p2617_p5), %s2552_s22, 128, %s2550_s6, %s1382_s16  }
 0x380 PF: > { %s1407_s25 = sand.u32 1, %s2205_s18   ;;  %p2618_p12 = scmp.ne.s32.totalorder %s2610_s23, 0 }
 0x381   : > { %p2619_p3 = scmp.ge.s32.totalorder %s2217_s21, 2  ;;  %s1408_s8 = scalar_lea.sflag [#allocation4], %s1407_s25 }
 0x383   : > { %p1925_p13 = pnand %p2619_p3, %p2618_p12 }
 0x385   : > { %2200 = dma.done.wait (!%p1925_p13), %s1408_s8, 128  }
 0x386   : > { %2202 = vsyncadd (!%p1925_p13), %s1408_s8, 4294967168  ;;  %p20_p0 = scmp.ge.s32.totalorder %s2398_s28, 4   ;;  %s2620_s18 = smov %s2209_s19 }
 0x387   : > { %s2621_s19 = smov %s2213_s20  ;;  %s2622_s20 = smov %s2409_s15 }
 0x388   : > { %s2623_s21 = smov %s2398_s28  ;;  %22 = sbr.rel (!%p20_p0) target bundleno = 7 (0x7), region = 101 }
 0x38f   :  { %1413 = vsyncpa [#allocation3], 1 }
 0x390   :  { %1415 = vsyncpa [#allocation3 + $0x1], 1 }
 0x391   :  { %1416 = vsyncpa [#allocation6], 1 }
 0x392   :  { %1417 = vsyncpa [#allocation9], 1 }
 0x393   :  { %1418 = vsyncpa [#allocation4], 1 }
 0x394   :  { %1420 = vsyncpa [#allocation4 + $0x1], 1 }

</bundles_post_ra>
